<compile_context>
chip_gen: v7x
topology: tpu7x:2x2x1
jax: 0.10.0
libtpu: 0.0.40
codegen_flags: <defaults>
</compile_context>

<pallas_src>
import functools
import math

import jax
import jax.numpy as jnp
import numpy as np
from jax import lax
from jax.experimental import pallas as pl
from jax.experimental.pallas import tpu as pltpu

LRELU_SLOPE = 0.2
LRELU_SCALE = math.sqrt(2.0)                     # FusedLeakyReLU output scale
BLUR_KERNEL_1D = (1.0, 3.0, 3.0, 1.0)            # module hyper-parameter (static)
BLUR_TAPS = tuple(v / sum(BLUR_KERNEL_1D) for v in BLUR_KERNEL_1D)
VMEM_LIMIT_BYTES = 48 * 1024 * 1024              # sized with headroom for v7x 64MiB


def _round_up(x, m):
    return (x + m - 1) // m * m


# ---------------------------------------------------------------------------
# Pallas kernels
# ---------------------------------------------------------------------------
def _conv3x3_s1_kernel(x_ref, w_ref, b_ref, o_ref, *, wp, n_rows):
    """3x3 stride-1 conv + FusedLeakyReLU on one padded, row-flattened image.

    x_ref: (1, Lin, Cin)       padded image, spatial dims flattened, bf16
    w_ref: (9, Cin, tn)        pre-scaled taps (row = dy*3+dx), bf16
    b_ref: (1, tn)             bias (f32, zero-padded to tn)
    o_ref: (1, n_rows*wp, tn)  output over the PADDED width; the last 2 columns
                               of every row are garbage and are sliced in glue.
    """
    L = n_rows * wp
    x = x_ref[0]                                           # (Lin, Cin)
    acc = jnp.zeros((L, o_ref.shape[-1]), jnp.float32)
    for dy in range(3):
        for dx in range(3):
            s = dy * wp + dx
            acc = acc + jnp.dot(x[s:s + L, :], w_ref[dy * 3 + dx],
                                preferred_element_type=jnp.float32)
    acc = acc + b_ref[...]
    acc = jnp.where(acc >= 0.0, acc, acc * LRELU_SLOPE) * LRELU_SCALE
    o_ref[0] = acc.astype(o_ref.dtype)


def _blur_sep_kernel(x_ref, o_ref, *, taps, n_rows, n_cols):
    """Separable 4-tap FIR (upfirdn2d up=down=1), channels on the lane axis."""
    x = x_ref[0].astype(jnp.float32)                       # (Hp, Wp, cb)
    # vertical pass (unrolled scalar-tap FMAs -> pure VPU, no XLU reduction)
    v = x[0:n_rows, :, :] * taps[0]
    for t in range(1, len(taps)):
        v = v + x[t:t + n_rows, :, :] * taps[t]
    # horizontal pass
    o = v[:, 0:n_cols, :] * taps[0]
    for t in range(1, len(taps)):
        o = o + v[:, t:t + n_cols, :] * taps[t]
    o_ref[0] = o.astype(o_ref.dtype)


def _gemm_kernel(*refs, has_bias, has_res, activate, out_scale):
    """Tiled GEMM: K-axis accumulation in f32 scratch, fused epilogue."""
    a_ref, w_ref = refs[0], refs[1]
    i = 2
    bias_ref = refs[i] if has_bias else None
    i += int(has_bias)
    res_ref = refs[i] if has_res else None
    i += int(has_res)
    o_ref, acc_ref = refs[i], refs[i + 1]

    k = pl.program_id(2)

    @pl.when(k == 0)
    def _():
        acc_ref[...] = jnp.zeros_like(acc_ref)

    acc_ref[...] += jnp.dot(a_ref[...], w_ref[...],
                            preferred_element_type=jnp.float32)

    @pl.when(k == pl.num_programs(2) - 1)
    def _():
        acc = acc_ref[...]
        if has_bias:
            acc = acc + bias_ref[...]
        if activate:                                       # FusedLeakyReLU
            acc = jnp.where(acc >= 0.0, acc, acc * LRELU_SLOPE) * LRELU_SCALE
        if has_res:                                        # fused residual add
            acc = acc + res_ref[...].astype(jnp.float32)
        if out_scale != 1.0:
            acc = acc * out_scale
        o_ref[...] = acc.astype(o_ref.dtype)


# ---------------------------------------------------------------------------
# pallas_call wrappers
# ---------------------------------------------------------------------------
def conv3x3_s1_flrelu(x_nhwc, w_taps, b_pad, n_out):
    """EqualConv2d 3x3, stride 1, pad 1 + FusedLeakyReLU (no HBM im2col)."""
    N, H, W, Cin = x_nhwc.shape
    xp = jnp.pad(x_nhwc, ((0, 0), (1, 1), (1, 1), (0, 0)))
    Hp, Wp = H + 2, W + 2
    Ho, Wo = H, W
    Cout_p = w_taps.shape[-1]
    L = Ho * Wp                          # output rows incl. 2 garbage cols/row
    Lin = L + 2 * Wp + 2                 # flat length incl. tap-shift overhang
    x_flat = xp.reshape(N, Hp * Wp, Cin)
    x_flat = jnp.pad(x_flat, ((0, 0), (0, Lin - Hp * Wp), (0, 0)))

    tn = 256 if Cout_p % 256 == 0 else 128
    grid = (N, Cout_p // tn)
    out = pl.pallas_call(
        functools.partial(_conv3x3_s1_kernel, wp=Wp, n_rows=Ho),
        out_shape=jax.ShapeDtypeStruct((N, L, Cout_p), jnp.bfloat16),
        grid=grid,
        in_specs=[
            pl.BlockSpec((1, Lin, Cin), lambda n, j: (n, 0, 0)),
            pl.BlockSpec((9, Cin, tn), lambda n, j: (0, 0, j)),
            pl.BlockSpec((1, tn), lambda n, j: (0, j)),
        ],
        out_specs=pl.BlockSpec((1, L, tn), lambda n, j: (n, 0, j)),
        compiler_params=pltpu.CompilerParams(
            dimension_semantics=("parallel", "parallel"),
            vmem_limit_bytes=VMEM_LIMIT_BYTES),
    )(x_flat, w_taps, b_pad)
    # drop the padded-width garbage columns and the Cout zero padding
    return out.reshape(N, Ho, Wp, Cout_p)[:, :, :Wo, :n_out]


def blur_upfirdn(x_nhwc, taps, pad):
    """Blur module: upfirdn2d(x, make_kernel(k), pad) with up=down=1."""
    N, H, W, C = x_nhwc.shape
    p0, p1 = pad
    T = len(taps)
    xp = jnp.pad(x_nhwc, ((0, 0), (p0, p1), (p0, p1), (0, 0)))
    Hp, Wp = H + p0 + p1, W + p0 + p1
    Ho, Wo = Hp - (T - 1), Wp - (T - 1)
    cb = 128 if C % 128 == 0 else C      # lane-dense channel tile when possible
    grid = (N, C // cb)
    return pl.pallas_call(
        functools.partial(_blur_sep_kernel, taps=taps, n_rows=Ho, n_cols=Wo),
        out_shape=jax.ShapeDtypeStruct((N, Ho, Wo, C), jnp.bfloat16),
        grid=grid,
        in_specs=[pl.BlockSpec((1, Hp, Wp, cb), lambda n, c: (n, 0, 0, c))],
        out_specs=pl.BlockSpec((1, Ho, Wo, cb), lambda n, c: (n, 0, 0, c)),
        compiler_params=pltpu.CompilerParams(
            dimension_semantics=("parallel", "parallel"),
            vmem_limit_bytes=VMEM_LIMIT_BYTES),
    )(xp)


def _tiled_gemm(a, w, *, bias=None, res=None, activate=False, out_scale=1.0,
                out_dtype=jnp.float32, tm=256, tn=256, tk=512):
    """bf16-operand, f32-accumulate tiled GEMM with fused epilogue."""
    M, K = a.shape
    Kw, Nc = w.shape
    assert K == Kw
    tm = min(tm, _round_up(M, 8))
    tn_full = _round_up(Nc, 128)
    tn = min(tn, tn_full)
    if tn_full % tn:
        tn = 128
    tk_full = _round_up(K, 128)
    tk = min(tk, tk_full)
    if tk_full % tk:
        tk = 128
    Mp, Kp, Np = _round_up(M, tm), _round_up(K, tk), _round_up(Nc, tn)

    a_p = jnp.pad(a, ((0, Mp - M), (0, Kp - K))).astype(jnp.bfloat16)
    w_p = jnp.pad(w, ((0, Kp - K), (0, Np - Nc))).astype(jnp.bfloat16)
    inputs = [a_p, w_p]
    in_specs = [pl.BlockSpec((tm, tk), lambda i, j, k: (i, k)),
                pl.BlockSpec((tk, tn), lambda i, j, k: (k, j))]
    if bias is not None:
        b_p = jnp.pad(bias.reshape(1, Nc).astype(jnp.float32),
                      ((0, 0), (0, Np - Nc)))
        inputs.append(b_p)
        in_specs.append(pl.BlockSpec((1, tn), lambda i, j, k: (0, j)))
    if res is not None:
        r_p = jnp.pad(res, ((0, Mp - M), (0, Np - Nc))).astype(jnp.bfloat16)
        inputs.append(r_p)
        in_specs.append(pl.BlockSpec((tm, tn), lambda i, j, k: (i, j)))

    kern = functools.partial(_gemm_kernel, has_bias=bias is not None,
                             has_res=res is not None, activate=activate,
                             out_scale=out_scale)
    out = pl.pallas_call(
        kern,
        out_shape=jax.ShapeDtypeStruct((Mp, Np), out_dtype),
        grid=(Mp // tm, Np // tn, Kp // tk),
        in_specs=in_specs,
        out_specs=pl.BlockSpec((tm, tn), lambda i, j, k: (i, j)),
        scratch_shapes=[pltpu.VMEM((tm, tn), jnp.float32)],
        compiler_params=pltpu.CompilerParams(
            dimension_semantics=("parallel", "parallel", "arbitrary"),
            vmem_limit_bytes=VMEM_LIMIT_BYTES),
    )(*inputs)
    return out[:M, :Nc]


# ---------------------------------------------------------------------------
# JAX glue
# ---------------------------------------------------------------------------
def _im2col_3x3_s2(x_nhwc):
    """im2col for the stride-2 3x3 conv (tap-major, channel-minor)."""
    N, H, W, C = x_nhwc.shape
    Ho = (H - 3) // 2 + 1
    Wo = (W - 3) // 2 + 1
    cols = []
    for dy in range(3):
        for dx in range(3):
            cols.append(x_nhwc[:, dy:dy + 2 * (Ho - 1) + 1:2,
                               dx:dx + 2 * (Wo - 1) + 1:2, :])
    p = jnp.stack(cols, axis=3)                            # (N, Ho, Wo, 9, C)
    return p.reshape(N * Ho * Wo, 9 * C), Ho, Wo


# ---------------------------------------------------------------------------
# Parameter prep (hoisted out of the forward hot path) & ResBlock forward
# ---------------------------------------------------------------------------
def prepare_params(p):
    """Pre-scale / re-layout / cast weights once per parameter set."""
    cin = p['w1'].shape[1]
    cout = p['w2'].shape[0]
    c1p = _round_up(cin, 128)                              # lane-dense conv1 Cout
    w1t = (p['w1'] * p['scale1']).transpose(2, 3, 1, 0).reshape(9, cin, cin)
    w1t = jnp.pad(w1t, ((0, 0), (0, 0), (0, c1p - cin))).astype(jnp.bfloat16)
    b1p = jnp.pad(p['b1'], (0, c1p - cin)).reshape(1, c1p).astype(jnp.float32)
    w2m = (p['w2'] * p['scale2']).transpose(2, 3, 1, 0).reshape(9 * cin, cout)
    wsm = (p['ws'] * p['scale_s']).transpose(2, 3, 1, 0).reshape(cin, cout)
    return dict(w1t=w1t, b1p=b1p,
                w2m=w2m.astype(jnp.bfloat16), b2=p['b2'].astype(jnp.float32),
                wsm=wsm.astype(jnp.bfloat16))


def res_block_forward(x_nchw, prep):
    """ResBlock forward; x in NCHW (PyTorch layout), returns NCHW float32."""
    x = jnp.transpose(x_nchw, (0, 2, 3, 1)).astype(jnp.bfloat16)   # NHWC bf16
    N = x.shape[0]
    cin = x.shape[-1]
    cout = prep['w2m'].shape[1]

    # conv1: 3x3 s1 p1 + FusedLeakyReLU (in-kernel shifted-tap GEMMs)
    h1 = conv3x3_s1_flrelu(x, prep['w1t'], prep['b1p'], n_out=cin)

    # skip branch: Blur pad=(1,1) -> 1x1 s2 conv (no bias / no activation)
    sk = blur_upfirdn(x, BLUR_TAPS, (1, 1))[:, ::2, ::2, :]
    Ns, Hs, Ws, _ = sk.shape
    sk_flat = _tiled_gemm(sk.reshape(Ns * Hs * Ws, cin), prep['wsm'],
                          out_dtype=jnp.bfloat16)

    # main branch: Blur pad=(2,2) -> 3x3 s2 conv + FusedLeakyReLU, with the
    # residual add and the final 1/sqrt(2) fused into the GEMM epilogue.
    h1b = blur_upfirdn(h1, BLUR_TAPS, (2, 2))
    patches, Ho, Wo = _im2col_3x3_s2(h1b)
    y_flat = _tiled_gemm(patches, prep['w2m'], bias=prep['b2'], res=sk_flat,
                         activate=True, out_scale=1.0 / math.sqrt(2.0),
                         out_dtype=jnp.float32)

    y = y_flat.reshape(N, Ho, Wo, cout)
    return jnp.transpose(y, (0, 3, 1, 2))                          # back to NCHW


# ---------------------------------------------------------------------------
# Deterministic parameter init (shapes per module __init__)
# ---------------------------------------------------------------------------
def init_params(key, in_channel, out_channel):
    k1, k2, k3, k4, k5 = jax.random.split(key, 5)
    w1 = jax.random.normal(k1, (in_channel, in_channel, 3, 3), jnp.float32)
    w2 = jax.random.normal(k2, (out_channel, in_channel, 3, 3), jnp.float32)
    ws = jax.random.normal(k3, (out_channel, in_channel, 1, 1), jnp.float32)
    # FusedLeakyReLU biases (torch init is zeros; small randoms keep it nontrivial)
    b1 = 0.1 * jax.random.normal(k4, (in_channel,), jnp.float32)
    b2 = 0.1 * jax.random.normal(k5, (out_channel,), jnp.float32)
    k1d = jnp.array(BLUR_KERNEL_1D, jnp.float32)
    k2d = jnp.outer(k1d, k1d)
    k2d = k2d / jnp.sum(k2d)             # make_kernel (flip is a no-op: symmetric)
    return dict(
        w1=w1, b1=b1, scale1=1.0 / math.sqrt(in_channel * 9),
        w2=w2, b2=b2, scale2=1.0 / math.sqrt(in_channel * 9),
        ws=ws, scale_s=1.0 / math.sqrt(in_channel * 1),
        blur_k=k2d,
    )


# ---------------------------------------------------------------------------
# Pure-JAX reference (f32, HIGHEST precision) for correctness check
# ---------------------------------------------------------------------------
def _ref_forward(x, p):
    dn = ('NCHW', 'OIHW', 'NCHW')
    hp = lax.Precision.HIGHEST

    def conv(x, w, scale, stride, padding):
        return lax.conv_general_dilated(
            x, w * scale, (stride, stride), [(padding, padding)] * 2,
            dimension_numbers=dn, precision=hp)

    def flrelu(x, b):
        x = x + b.reshape(1, -1, 1, 1)
        return jnp.where(x >= 0, x, LRELU_SLOPE * x) * LRELU_SCALE

    def blur(x, k2d, pad):
        C = x.shape[1]
        xp = jnp.pad(x, ((0, 0), (0, 0), (pad[0], pad[1]), (pad[0], pad[1])))
        w = jnp.broadcast_to(k2d, (C, 1) + k2d.shape)
        return lax.conv_general_dilated(
            xp, w, (1, 1), 'VALID', dimension_numbers=dn,
            feature_group_count=C, precision=hp)

    out = flrelu(conv(x, p['w1'], p['scale1'], 1, 1), p['b1'])
    out = blur(out, p['blur_k'], (2, 2))
    out = flrelu(conv(out, p['w2'], p['scale2'], 2, 0), p['b2'])
    sk = blur(x, p['blur_k'], (1, 1))
    sk = conv(sk, p['ws'], p['scale_s'], 2, 0)
    return (out + sk) / math.sqrt(2.0)


if __name__ == "__main__":
    key = jax.random.PRNGKey(0)
    kx, kp = jax.random.split(key)
    N, Cin, Cout, H = 2, 4, 8, 16
    x = jax.random.normal(kx, (N, Cin, H, H), jnp.float32)
    params = init_params(kp, Cin, Cout)
    prep = prepare_params(params)        # weight prep hoisted out of the hot path

    fwd = jax.jit(res_block_forward)
    y = jax.block_until_ready(fwd(x, prep))

    assert y.shape == (N, Cout, H // 2, H // 2), y.shape
    y_ref = np.asarray(_ref_forward(x, params))
    # bf16 operands / bf16 inter-stage activations vs f32 HIGHEST reference.
    np.testing.assert_allclose(np.asarray(y), y_ref, rtol=5e-2, atol=5e-2)
    print("KERNEL_OK")
</pallas_src>

<mosaic_0001>
module attributes {stable_mosaic.version = 11 : i64} {
  func.func @_blur_sep_kernel(%arg0: i32, %arg1: i32, %arg2: memref<1x18x18x4xbf16, #tpu.memory_space<vmem>>, %arg3: memref<1x15x15x4xbf16, #tpu.memory_space<vmem>>) attributes {dimension_semantics = [#tpu.dimension_semantics<parallel>, #tpu.dimension_semantics<parallel>], iteration_bounds = array<i64: 2, 1>, scalar_prefetch = 0 : i64, scratch_operands = 0 : i64, tpu.core_type = #tpu.core_type<tc>, window_params = [{transform_indices = @transform_0, window_bounds = array<i64: 1, 18, 18, 4>}, {transform_indices = @transform_1, window_bounds = array<i64: 1, 15, 15, 4>}]} {
    %c0 = arith.constant 0 : index
    %c0_0 = arith.constant 0 : index
    %c0_1 = arith.constant 0 : index
    %c0_2 = arith.constant 0 : index
    %0 = vector.load %arg2[%c0, %c0_0, %c0_1, %c0_2] : memref<1x18x18x4xbf16, #tpu.memory_space<vmem>>, vector<1x18x18x4xbf16>
    %1 = vector.shape_cast %0 : vector<1x18x18x4xbf16> to vector<18x18x4xbf16>
    %2 = arith.extf %1 : vector<18x18x4xbf16> to vector<18x18x4xf32>
    %3 = vector.extract_strided_slice %2 {offsets = [0, 0, 0], sizes = [15, 18, 4], strides = [1, 1, 1]} : vector<18x18x4xf32> to vector<15x18x4xf32>
    %cst = arith.constant 1.250000e-01 : f32
    %4 = vector.broadcast %cst : f32 to vector<15x18x4xf32>
    %5 = arith.mulf %3, %4 : vector<15x18x4xf32>
    %6 = vector.extract_strided_slice %2 {offsets = [1, 0, 0], sizes = [15, 18, 4], strides = [1, 1, 1]} : vector<18x18x4xf32> to vector<15x18x4xf32>
    %cst_3 = arith.constant 3.750000e-01 : f32
    %7 = vector.broadcast %cst_3 : f32 to vector<15x18x4xf32>
    %8 = arith.mulf %6, %7 : vector<15x18x4xf32>
    %9 = arith.addf %5, %8 : vector<15x18x4xf32>
    %10 = vector.extract_strided_slice %2 {offsets = [2, 0, 0], sizes = [15, 18, 4], strides = [1, 1, 1]} : vector<18x18x4xf32> to vector<15x18x4xf32>
    %cst_4 = arith.constant 3.750000e-01 : f32
    %11 = vector.broadcast %cst_4 : f32 to vector<15x18x4xf32>
    %12 = arith.mulf %10, %11 : vector<15x18x4xf32>
    %13 = arith.addf %9, %12 : vector<15x18x4xf32>
    %14 = vector.extract_strided_slice %2 {offsets = [3, 0, 0], sizes = [15, 18, 4], strides = [1, 1, 1]} : vector<18x18x4xf32> to vector<15x18x4xf32>
    %cst_5 = arith.constant 1.250000e-01 : f32
    %15 = vector.broadcast %cst_5 : f32 to vector<15x18x4xf32>
    %16 = arith.mulf %14, %15 : vector<15x18x4xf32>
    %17 = arith.addf %13, %16 : vector<15x18x4xf32>
    %18 = vector.extract_strided_slice %17 {offsets = [0, 0, 0], sizes = [15, 15, 4], strides = [1, 1, 1]} : vector<15x18x4xf32> to vector<15x15x4xf32>
    %cst_6 = arith.constant 1.250000e-01 : f32
    %19 = vector.broadcast %cst_6 : f32 to vector<15x15x4xf32>
    %20 = arith.mulf %18, %19 : vector<15x15x4xf32>
    %21 = vector.extract_strided_slice %17 {offsets = [0, 1, 0], sizes = [15, 15, 4], strides = [1, 1, 1]} : vector<15x18x4xf32> to vector<15x15x4xf32>
    %cst_7 = arith.constant 3.750000e-01 : f32
    %22 = vector.broadcast %cst_7 : f32 to vector<15x15x4xf32>
    %23 = arith.mulf %21, %22 : vector<15x15x4xf32>
    %24 = arith.addf %20, %23 : vector<15x15x4xf32>
    %25 = vector.extract_strided_slice %17 {offsets = [0, 2, 0], sizes = [15, 15, 4], strides = [1, 1, 1]} : vector<15x18x4xf32> to vector<15x15x4xf32>
    %cst_8 = arith.constant 3.750000e-01 : f32
    %26 = vector.broadcast %cst_8 : f32 to vector<15x15x4xf32>
    %27 = arith.mulf %25, %26 : vector<15x15x4xf32>
    %28 = arith.addf %24, %27 : vector<15x15x4xf32>
    %29 = vector.extract_strided_slice %17 {offsets = [0, 3, 0], sizes = [15, 15, 4], strides = [1, 1, 1]} : vector<15x18x4xf32> to vector<15x15x4xf32>
    %cst_9 = arith.constant 1.250000e-01 : f32
    %30 = vector.broadcast %cst_9 : f32 to vector<15x15x4xf32>
    %31 = arith.mulf %29, %30 : vector<15x15x4xf32>
    %32 = arith.addf %28, %31 : vector<15x15x4xf32>
    %33 = arith.truncf %32 : vector<15x15x4xf32> to vector<15x15x4xbf16>
    %c0_10 = arith.constant 0 : index
    %c0_11 = arith.constant 0 : index
    %c0_12 = arith.constant 0 : index
    %c0_13 = arith.constant 0 : index
    %34 = vector.load %arg3[%c0_10, %c0_11, %c0_12, %c0_13] : memref<1x15x15x4xbf16, #tpu.memory_space<vmem>>, vector<1x15x15x4xbf16>
    %35 = vector.shape_cast %34 : vector<1x15x15x4xbf16> to vector<15x15x4xbf16>
    %36 = vector.shape_cast %33 : vector<15x15x4xbf16> to vector<1x15x15x4xbf16>
    tpu.vector_store %arg3[%c0_10, %c0_11, %c0_12, %c0_13], %36 {strides = array<i32>} : memref<1x15x15x4xbf16, #tpu.memory_space<vmem>>, vector<1x15x15x4xbf16>,
    return
  }
  func.func @transform_0(%arg0: i32, %arg1: i32) -> (i32, i32, i32, i32) {
    %c0_i32 = arith.constant 0 : i32
    %c0_i32_0 = arith.constant 0 : i32
    %c0_i32_1 = arith.constant 0 : i32
    return %arg0, %c0_i32, %c0_i32_0, %arg1 : i32, i32, i32, i32
  }
  func.func @transform_1(%arg0: i32, %arg1: i32) -> (i32, i32, i32, i32) {
    %c0_i32 = arith.constant 0 : i32
    %c0_i32_0 = arith.constant 0 : i32
    %c0_i32_1 = arith.constant 0 : i32
    return %arg0, %c0_i32, %c0_i32_0, %arg1 : i32, i32, i32, i32
  }
}

module attributes {stable_mosaic.version = 11 : i64} {
  func.func @_conv3x3_s1_kernel(%arg0: i32, %arg1: i32, %arg2: memref<1x326x4xbf16, #tpu.memory_space<vmem>>, %arg3: memref<9x4x128xbf16, #tpu.memory_space<vmem>>, %arg4: memref<1x128xf32, #tpu.memory_space<vmem>>, %arg5: memref<1x288x128xbf16, #tpu.memory_space<vmem>>) attributes {dimension_semantics = [#tpu.dimension_semantics<parallel>, #tpu.dimension_semantics<parallel>], iteration_bounds = array<i64: 2, 1>, scalar_prefetch = 0 : i64, scratch_operands = 0 : i64, tpu.core_type = #tpu.core_type<tc>, window_params = [{transform_indices = @transform_0, window_bounds = array<i64: 1, 326, 4>}, {transform_indices = @transform_1, window_bounds = array<i64: 9, 4, 128>}, {transform_indices = @transform_2, window_bounds = array<i64: 1, 128>}, {transform_indices = @transform_3, window_bounds = array<i64: 1, 288, 128>}]} {
    %c0 = arith.constant 0 : index
    %c0_0 = arith.constant 0 : index
    %c0_1 = arith.constant 0 : index
    %0 = vector.load %arg2[%c0, %c0_0, %c0_1] : memref<1x326x4xbf16, #tpu.memory_space<vmem>>, vector<1x326x4xbf16>
    %1 = vector.shape_cast %0 : vector<1x326x4xbf16> to vector<326x4xbf16>
    %cst = arith.constant 0.000000e+00 : f32
    %2 = vector.broadcast %cst : f32 to vector<288x128xf32>
    %3 = vector.extract_strided_slice %1 {offsets = [0, 0], sizes = [288, 4], strides = [1, 1]} : vector<326x4xbf16> to vector<288x4xbf16>
    %c0_2 = arith.constant 0 : index
    %c0_3 = arith.constant 0 : index
    %c0_4 = arith.constant 0 : index
    %4 = vector.load %arg3[%c0_2, %c0_3, %c0_4] : memref<9x4x128xbf16, #tpu.memory_space<vmem>>, vector<1x4x128xbf16>
    %5 = vector.shape_cast %4 : vector<1x4x128xbf16> to vector<4x128xbf16>
    %cst_5 = arith.constant dense<0.000000e+00> : vector<288x128xf32>
    %6 = tpu.matmul %3, %5, %cst_5 {dimension_numbers = #tpu.dot_dimension_numbers<[1], [0], [0], [1], [0, 0, 1, 1], [], []>} : vector<288x4xbf16>, vector<4x128xbf16>, vector<288x128xf32> -> vector<288x128xf32>
    %7 = arith.addf %2, %6 : vector<288x128xf32>
    %8 = vector.extract_strided_slice %1 {offsets = [1, 0], sizes = [288, 4], strides = [1, 1]} : vector<326x4xbf16> to vector<288x4xbf16>
    %c1 = arith.constant 1 : index
    %c0_6 = arith.constant 0 : index
    %c0_7 = arith.constant 0 : index
    %9 = vector.load %arg3[%c1, %c0_6, %c0_7] : memref<9x4x128xbf16, #tpu.memory_space<vmem>>, vector<1x4x128xbf16>
    %10 = vector.shape_cast %9 : vector<1x4x128xbf16> to vector<4x128xbf16>
    %cst_8 = arith.constant dense<0.000000e+00> : vector<288x128xf32>
    %11 = tpu.matmul %8, %10, %cst_8 {dimension_numbers = #tpu.dot_dimension_numbers<[1], [0], [0], [1], [0, 0, 1, 1], [], []>} : vector<288x4xbf16>, vector<4x128xbf16>, vector<288x128xf32> -> vector<288x128xf32>
    %12 = arith.addf %7, %11 : vector<288x128xf32>
    %13 = vector.extract_strided_slice %1 {offsets = [2, 0], sizes = [288, 4], strides = [1, 1]} : vector<326x4xbf16> to vector<288x4xbf16>
    %c2 = arith.constant 2 : index
    %c0_9 = arith.constant 0 : index
    %c0_10 = arith.constant 0 : index
    %14 = vector.load %arg3[%c2, %c0_9, %c0_10] : memref<9x4x128xbf16, #tpu.memory_space<vmem>>, vector<1x4x128xbf16>
    %15 = vector.shape_cast %14 : vector<1x4x128xbf16> to vector<4x128xbf16>
    %cst_11 = arith.constant dense<0.000000e+00> : vector<288x128xf32>
    %16 = tpu.matmul %13, %15, %cst_11 {dimension_numbers = #tpu.dot_dimension_numbers<[1], [0], [0], [1], [0, 0, 1, 1], [], []>} : vector<288x4xbf16>, vector<4x128xbf16>, vector<288x128xf32> -> vector<288x128xf32>
    %17 = arith.addf %12, %16 : vector<288x128xf32>
    %18 = vector.extract_strided_slice %1 {offsets = [18, 0], sizes = [288, 4], strides = [1, 1]} : vector<326x4xbf16> to vector<288x4xbf16>
    %c3 = arith.constant 3 : index
    %c0_12 = arith.constant 0 : index
    %c0_13 = arith.constant 0 : index
    %19 = vector.load %arg3[%c3, %c0_12, %c0_13] : memref<9x4x128xbf16, #tpu.memory_space<vmem>>, vector<1x4x128xbf16>
    %20 = vector.shape_cast %19 : vector<1x4x128xbf16> to vector<4x128xbf16>
    %cst_14 = arith.constant dense<0.000000e+00> : vector<288x128xf32>
    %21 = tpu.matmul %18, %20, %cst_14 {dimension_numbers = #tpu.dot_dimension_numbers<[1], [0], [0], [1], [0, 0, 1, 1], [], []>} : vector<288x4xbf16>, vector<4x128xbf16>, vector<288x128xf32> -> vector<288x128xf32>
    %22 = arith.addf %17, %21 : vector<288x128xf32>
    %23 = vector.extract_strided_slice %1 {offsets = [19, 0], sizes = [288, 4], strides = [1, 1]} : vector<326x4xbf16> to vector<288x4xbf16>
    %c4 = arith.constant 4 : index
    %c0_15 = arith.constant 0 : index
    %c0_16 = arith.constant 0 : index
    %24 = vector.load %arg3[%c4, %c0_15, %c0_16] : memref<9x4x128xbf16, #tpu.memory_space<vmem>>, vector<1x4x128xbf16>
    %25 = vector.shape_cast %24 : vector<1x4x128xbf16> to vector<4x128xbf16>
    %cst_17 = arith.constant dense<0.000000e+00> : vector<288x128xf32>
    %26 = tpu.matmul %23, %25, %cst_17 {dimension_numbers = #tpu.dot_dimension_numbers<[1], [0], [0], [1], [0, 0, 1, 1], [], []>} : vector<288x4xbf16>, vector<4x128xbf16>, vector<288x128xf32> -> vector<288x128xf32>
    %27 = arith.addf %22, %26 : vector<288x128xf32>
    %28 = vector.extract_strided_slice %1 {offsets = [20, 0], sizes = [288, 4], strides = [1, 1]} : vector<326x4xbf16> to vector<288x4xbf16>
    %c5 = arith.constant 5 : index
    %c0_18 = arith.constant 0 : index
    %c0_19 = arith.constant 0 : index
    %29 = vector.load %arg3[%c5, %c0_18, %c0_19] : memref<9x4x128xbf16, #tpu.memory_space<vmem>>, vector<1x4x128xbf16>
    %30 = vector.shape_cast %29 : vector<1x4x128xbf16> to vector<4x128xbf16>
    %cst_20 = arith.constant dense<0.000000e+00> : vector<288x128xf32>
    %31 = tpu.matmul %28, %30, %cst_20 {dimension_numbers = #tpu.dot_dimension_numbers<[1], [0], [0], [1], [0, 0, 1, 1], [], []>} : vector<288x4xbf16>, vector<4x128xbf16>, vector<288x128xf32> -> vector<288x128xf32>
    %32 = arith.addf %27, %31 : vector<288x128xf32>
    %33 = vector.extract_strided_slice %1 {offsets = [36, 0], sizes = [288, 4], strides = [1, 1]} : vector<326x4xbf16> to vector<288x4xbf16>
    %c6 = arith.constant 6 : index
    %c0_21 = arith.constant 0 : index
    %c0_22 = arith.constant 0 : index
    %34 = vector.load %arg3[%c6, %c0_21, %c0_22] : memref<9x4x128xbf16, #tpu.memory_space<vmem>>, vector<1x4x128xbf16>
    %35 = vector.shape_cast %34 : vector<1x4x128xbf16> to vector<4x128xbf16>
    %cst_23 = arith.constant dense<0.000000e+00> : vector<288x128xf32>
    %36 = tpu.matmul %33, %35, %cst_23 {dimension_numbers = #tpu.dot_dimension_numbers<[1], [0], [0], [1], [0, 0, 1, 1], [], []>} : vector<288x4xbf16>, vector<4x128xbf16>, vector<288x128xf32> -> vector<288x128xf32>
    %37 = arith.addf %32, %36 : vector<288x128xf32>
    %38 = vector.extract_strided_slice %1 {offsets = [37, 0], sizes = [288, 4], strides = [1, 1]} : vector<326x4xbf16> to vector<288x4xbf16>
    %c7 = arith.constant 7 : index
    %c0_24 = arith.constant 0 : index
    %c0_25 = arith.constant 0 : index
    %39 = vector.load %arg3[%c7, %c0_24, %c0_25] : memref<9x4x128xbf16, #tpu.memory_space<vmem>>, vector<1x4x128xbf16>
    %40 = vector.shape_cast %39 : vector<1x4x128xbf16> to vector<4x128xbf16>
    %cst_26 = arith.constant dense<0.000000e+00> : vector<288x128xf32>
    %41 = tpu.matmul %38, %40, %cst_26 {dimension_numbers = #tpu.dot_dimension_numbers<[1], [0], [0], [1], [0, 0, 1, 1], [], []>} : vector<288x4xbf16>, vector<4x128xbf16>, vector<288x128xf32> -> vector<288x128xf32>
    %42 = arith.addf %37, %41 : vector<288x128xf32>
    %43 = vector.extract_strided_slice %1 {offsets = [38, 0], sizes = [288, 4], strides = [1, 1]} : vector<326x4xbf16> to vector<288x4xbf16>
    %c8 = arith.constant 8 : index
    %c0_27 = arith.constant 0 : index
    %c0_28 = arith.constant 0 : index
    %44 = vector.load %arg3[%c8, %c0_27, %c0_28] : memref<9x4x128xbf16, #tpu.memory_space<vmem>>, vector<1x4x128xbf16>
    %45 = vector.shape_cast %44 : vector<1x4x128xbf16> to vector<4x128xbf16>
    %cst_29 = arith.constant dense<0.000000e+00> : vector<288x128xf32>
    %46 = tpu.matmul %43, %45, %cst_29 {dimension_numbers = #tpu.dot_dimension_numbers<[1], [0], [0], [1], [0, 0, 1, 1], [], []>} : vector<288x4xbf16>, vector<4x128xbf16>, vector<288x128xf32> -> vector<288x128xf32>
    %47 = arith.addf %42, %46 : vector<288x128xf32>
    %c0_30 = arith.constant 0 : index
    %c0_31 = arith.constant 0 : index
    %48 = vector.load %arg4[%c0_30, %c0_31] : memref<1x128xf32, #tpu.memory_space<vmem>>, vector<1x128xf32>
    %49 = vector.broadcast %48 : vector<1x128xf32> to vector<288x128xf32>
    %50 = arith.addf %47, %49 : vector<288x128xf32>
    %cst_32 = arith.constant 0.000000e+00 : f32
    %51 = vector.broadcast %cst_32 : f32 to vector<288x128xf32>
    %52 = arith.cmpf oge, %50, %51 : vector<288x128xf32>
    %cst_33 = arith.constant 2.000000e-01 : f32
    %53 = vector.broadcast %cst_33 : f32 to vector<288x128xf32>
    %54 = arith.mulf %50, %53 : vector<288x128xf32>
    %55 = arith.select %52, %50, %54 : vector<288x128xi1>, vector<288x128xf32>
    %cst_34 = arith.constant 1.41421354 : f32
    %56 = vector.broadcast %cst_34 : f32 to vector<288x128xf32>
    %57 = arith.mulf %55, %56 : vector<288x128xf32>
    %58 = arith.truncf %57 : vector<288x128xf32> to vector<288x128xbf16>
    %c0_35 = arith.constant 0 : index
    %c0_36 = arith.constant 0 : index
    %c0_37 = arith.constant 0 : index
    %59 = vector.load %arg5[%c0_35, %c0_36, %c0_37] : memref<1x288x128xbf16, #tpu.memory_space<vmem>>, vector<1x288x128xbf16>
    %60 = vector.shape_cast %59 : vector<1x288x128xbf16> to vector<288x128xbf16>
    %61 = vector.shape_cast %58 : vector<288x128xbf16> to vector<1x288x128xbf16>
    tpu.vector_store %arg5[%c0_35, %c0_36, %c0_37], %61 {strides = array<i32>} : memref<1x288x128xbf16, #tpu.memory_space<vmem>>, vector<1x288x128xbf16>,
    return
  }
  func.func @transform_0(%arg0: i32, %arg1: i32) -> (i32, i32, i32) {
    %c0_i32 = arith.constant 0 : i32
    %c0_i32_0 = arith.constant 0 : i32
    %c0_i32_1 = arith.constant 0 : i32
    return %arg0, %c0_i32, %c0_i32_0 : i32, i32, i32
  }
  func.func @transform_1(%arg0: i32, %arg1: i32) -> (i32, i32, i32) {
    %c0_i32 = arith.constant 0 : i32
    %c0_i32_0 = arith.constant 0 : i32
    %c0_i32_1 = arith.constant 0 : i32
    return %c0_i32, %c0_i32_0, %arg1 : i32, i32, i32
  }
  func.func @transform_2(%arg0: i32, %arg1: i32) -> (i32, i32) {
    %c0_i32 = arith.constant 0 : i32
    %c0_i32_0 = arith.constant 0 : i32
    return %c0_i32, %arg1 : i32, i32
  }
  func.func @transform_3(%arg0: i32, %arg1: i32) -> (i32, i32, i32) {
    %c0_i32 = arith.constant 0 : i32
    %c0_i32_0 = arith.constant 0 : i32
    return %arg0, %c0_i32, %arg1 : i32, i32, i32
  }
}

module attributes {stable_mosaic.version = 11 : i64} {
  func.func @_gemm_kernel(%arg0: i32, %arg1: i32, %arg2: i32, %arg3: memref<128x128xbf16, #tpu.memory_space<vmem>>, %arg4: memref<128x128xbf16, #tpu.memory_space<vmem>>, %arg5: memref<128x128xbf16, #tpu.memory_space<vmem>>, %arg6: memref<128x128xf32, #tpu.memory_space<vmem>>) attributes {dimension_semantics = [#tpu.dimension_semantics<parallel>, #tpu.dimension_semantics<parallel>, #tpu.dimension_semantics<arbitrary>], iteration_bounds = array<i64: 1, 1, 1>, scalar_prefetch = 0 : i64, scratch_operands = 1 : i64, tpu.core_type = #tpu.core_type<tc>, window_params = [{transform_indices = @transform_0, window_bounds = array<i64: 128, 128>}, {transform_indices = @transform_1, window_bounds = array<i64: 128, 128>}, {transform_indices = @transform_2, window_bounds = array<i64: 128, 128>}]} {
    %c0_i32 = arith.constant 0 : i32
    %0 = arith.cmpi eq, %arg2, %c0_i32 : i32
    %1 = arith.extui %0 : i1 to i32
    %c0_i32_0 = arith.constant 0 : i32
    %2 = arith.cmpi ne, %1, %c0_i32_0 : i32
    scf.if %2 {
      %cst_10 = arith.constant 0.000000e+00 : f32
      %12 = vector.broadcast %cst_10 : f32 to vector<128x128xf32>
      %c0_11 = arith.constant 0 : index
      %c0_12 = arith.constant 0 : index
      %13 = vector.load %arg6[%c0_11, %c0_12] : memref<128x128xf32, #tpu.memory_space<vmem>>, vector<128x128xf32>
      tpu.vector_store %arg6[%c0_11, %c0_12], %12 {strides = array<i32>} : memref<128x128xf32, #tpu.memory_space<vmem>>, vector<128x128xf32>,
    } else {
    }
    %c0 = arith.constant 0 : index
    %c0_1 = arith.constant 0 : index
    %3 = vector.load %arg6[%c0, %c0_1] : memref<128x128xf32, #tpu.memory_space<vmem>>, vector<128x128xf32>
    %c0_2 = arith.constant 0 : index
    %c0_3 = arith.constant 0 : index
    %4 = vector.load %arg3[%c0_2, %c0_3] : memref<128x128xbf16, #tpu.memory_space<vmem>>, vector<128x128xbf16>
    %c0_4 = arith.constant 0 : index
    %c0_5 = arith.constant 0 : index
    %5 = vector.load %arg4[%c0_4, %c0_5] : memref<128x128xbf16, #tpu.memory_space<vmem>>, vector<128x128xbf16>
    %cst = arith.constant dense<0.000000e+00> : vector<128x128xf32>
    %6 = tpu.matmul %4, %5, %cst {dimension_numbers = #tpu.dot_dimension_numbers<[1], [0], [0], [1], [0, 0, 1, 1], [], []>} : vector<128x128xbf16>, vector<128x128xbf16>, vector<128x128xf32> -> vector<128x128xf32>
    %7 = arith.addf %3, %6 : vector<128x128xf32>
    %c0_6 = arith.constant 0 : index
    %c0_7 = arith.constant 0 : index
    %8 = vector.load %arg6[%c0_6, %c0_7] : memref<128x128xf32, #tpu.memory_space<vmem>>, vector<128x128xf32>
    tpu.vector_store %arg6[%c0_6, %c0_7], %7 {strides = array<i32>} : memref<128x128xf32, #tpu.memory_space<vmem>>, vector<128x128xf32>,
    %c0_i32_8 = arith.constant 0 : i32
    %9 = arith.cmpi eq, %arg2, %c0_i32_8 : i32
    %10 = arith.extui %9 : i1 to i32
    %c0_i32_9 = arith.constant 0 : i32
    %11 = arith.cmpi ne, %10, %c0_i32_9 : i32
    scf.if %11 {
      %c0_10 = arith.constant 0 : index
      %c0_11 = arith.constant 0 : index
      %12 = vector.load %arg6[%c0_10, %c0_11] : memref<128x128xf32, #tpu.memory_space<vmem>>, vector<128x128xf32>
      %13 = arith.truncf %12 : vector<128x128xf32> to vector<128x128xbf16>
      %c0_12 = arith.constant 0 : index
      %c0_13 = arith.constant 0 : index
      %14 = vector.load %arg5[%c0_12, %c0_13] : memref<128x128xbf16, #tpu.memory_space<vmem>>, vector<128x128xbf16>
      tpu.vector_store %arg5[%c0_12, %c0_13], %13 {strides = array<i32>} : memref<128x128xbf16, #tpu.memory_space<vmem>>, vector<128x128xbf16>,
    } else {
    }
    return
  }
  func.func @transform_0(%arg0: i32, %arg1: i32, %arg2: i32) -> (i32, i32) {
    %c0_i32 = arith.constant 0 : i32
    return %arg0, %arg2 : i32, i32
  }
  func.func @transform_1(%arg0: i32, %arg1: i32, %arg2: i32) -> (i32, i32) {
    %c0_i32 = arith.constant 0 : i32
    return %arg2, %arg1 : i32, i32
  }
  func.func @transform_2(%arg0: i32, %arg1: i32, %arg2: i32) -> (i32, i32) {
    %c0_i32 = arith.constant 0 : i32
    return %arg0, %arg1 : i32, i32
  }
}

module attributes {stable_mosaic.version = 11 : i64} {
  func.func @_blur_sep_kernel(%arg0: i32, %arg1: i32, %arg2: memref<1x20x20x4xbf16, #tpu.memory_space<vmem>>, %arg3: memref<1x17x17x4xbf16, #tpu.memory_space<vmem>>) attributes {dimension_semantics = [#tpu.dimension_semantics<parallel>, #tpu.dimension_semantics<parallel>], iteration_bounds = array<i64: 2, 1>, scalar_prefetch = 0 : i64, scratch_operands = 0 : i64, tpu.core_type = #tpu.core_type<tc>, window_params = [{transform_indices = @transform_0, window_bounds = array<i64: 1, 20, 20, 4>}, {transform_indices = @transform_1, window_bounds = array<i64: 1, 17, 17, 4>}]} {
    %c0 = arith.constant 0 : index
    %c0_0 = arith.constant 0 : index
    %c0_1 = arith.constant 0 : index
    %c0_2 = arith.constant 0 : index
    %0 = vector.load %arg2[%c0, %c0_0, %c0_1, %c0_2] : memref<1x20x20x4xbf16, #tpu.memory_space<vmem>>, vector<1x20x20x4xbf16>
    %1 = vector.shape_cast %0 : vector<1x20x20x4xbf16> to vector<20x20x4xbf16>
    %2 = arith.extf %1 : vector<20x20x4xbf16> to vector<20x20x4xf32>
    %3 = vector.extract_strided_slice %2 {offsets = [0, 0, 0], sizes = [17, 20, 4], strides = [1, 1, 1]} : vector<20x20x4xf32> to vector<17x20x4xf32>
    %cst = arith.constant 1.250000e-01 : f32
    %4 = vector.broadcast %cst : f32 to vector<17x20x4xf32>
    %5 = arith.mulf %3, %4 : vector<17x20x4xf32>
    %6 = vector.extract_strided_slice %2 {offsets = [1, 0, 0], sizes = [17, 20, 4], strides = [1, 1, 1]} : vector<20x20x4xf32> to vector<17x20x4xf32>
    %cst_3 = arith.constant 3.750000e-01 : f32
    %7 = vector.broadcast %cst_3 : f32 to vector<17x20x4xf32>
    %8 = arith.mulf %6, %7 : vector<17x20x4xf32>
    %9 = arith.addf %5, %8 : vector<17x20x4xf32>
    %10 = vector.extract_strided_slice %2 {offsets = [2, 0, 0], sizes = [17, 20, 4], strides = [1, 1, 1]} : vector<20x20x4xf32> to vector<17x20x4xf32>
    %cst_4 = arith.constant 3.750000e-01 : f32
    %11 = vector.broadcast %cst_4 : f32 to vector<17x20x4xf32>
    %12 = arith.mulf %10, %11 : vector<17x20x4xf32>
    %13 = arith.addf %9, %12 : vector<17x20x4xf32>
    %14 = vector.extract_strided_slice %2 {offsets = [3, 0, 0], sizes = [17, 20, 4], strides = [1, 1, 1]} : vector<20x20x4xf32> to vector<17x20x4xf32>
    %cst_5 = arith.constant 1.250000e-01 : f32
    %15 = vector.broadcast %cst_5 : f32 to vector<17x20x4xf32>
    %16 = arith.mulf %14, %15 : vector<17x20x4xf32>
    %17 = arith.addf %13, %16 : vector<17x20x4xf32>
    %18 = vector.extract_strided_slice %17 {offsets = [0, 0, 0], sizes = [17, 17, 4], strides = [1, 1, 1]} : vector<17x20x4xf32> to vector<17x17x4xf32>
    %cst_6 = arith.constant 1.250000e-01 : f32
    %19 = vector.broadcast %cst_6 : f32 to vector<17x17x4xf32>
    %20 = arith.mulf %18, %19 : vector<17x17x4xf32>
    %21 = vector.extract_strided_slice %17 {offsets = [0, 1, 0], sizes = [17, 17, 4], strides = [1, 1, 1]} : vector<17x20x4xf32> to vector<17x17x4xf32>
    %cst_7 = arith.constant 3.750000e-01 : f32
    %22 = vector.broadcast %cst_7 : f32 to vector<17x17x4xf32>
    %23 = arith.mulf %21, %22 : vector<17x17x4xf32>
    %24 = arith.addf %20, %23 : vector<17x17x4xf32>
    %25 = vector.extract_strided_slice %17 {offsets = [0, 2, 0], sizes = [17, 17, 4], strides = [1, 1, 1]} : vector<17x20x4xf32> to vector<17x17x4xf32>
    %cst_8 = arith.constant 3.750000e-01 : f32
    %26 = vector.broadcast %cst_8 : f32 to vector<17x17x4xf32>
    %27 = arith.mulf %25, %26 : vector<17x17x4xf32>
    %28 = arith.addf %24, %27 : vector<17x17x4xf32>
    %29 = vector.extract_strided_slice %17 {offsets = [0, 3, 0], sizes = [17, 17, 4], strides = [1, 1, 1]} : vector<17x20x4xf32> to vector<17x17x4xf32>
    %cst_9 = arith.constant 1.250000e-01 : f32
    %30 = vector.broadcast %cst_9 : f32 to vector<17x17x4xf32>
    %31 = arith.mulf %29, %30 : vector<17x17x4xf32>
    %32 = arith.addf %28, %31 : vector<17x17x4xf32>
    %33 = arith.truncf %32 : vector<17x17x4xf32> to vector<17x17x4xbf16>
    %c0_10 = arith.constant 0 : index
    %c0_11 = arith.constant 0 : index
    %c0_12 = arith.constant 0 : index
    %c0_13 = arith.constant 0 : index
    %34 = vector.load %arg3[%c0_10, %c0_11, %c0_12, %c0_13] : memref<1x17x17x4xbf16, #tpu.memory_space<vmem>>, vector<1x17x17x4xbf16>
    %35 = vector.shape_cast %34 : vector<1x17x17x4xbf16> to vector<17x17x4xbf16>
    %36 = vector.shape_cast %33 : vector<17x17x4xbf16> to vector<1x17x17x4xbf16>
    tpu.vector_store %arg3[%c0_10, %c0_11, %c0_12, %c0_13], %36 {strides = array<i32>} : memref<1x17x17x4xbf16, #tpu.memory_space<vmem>>, vector<1x17x17x4xbf16>,
    return
  }
  func.func @transform_0(%arg0: i32, %arg1: i32) -> (i32, i32, i32, i32) {
    %c0_i32 = arith.constant 0 : i32
    %c0_i32_0 = arith.constant 0 : i32
    %c0_i32_1 = arith.constant 0 : i32
    return %arg0, %c0_i32, %c0_i32_0, %arg1 : i32, i32, i32, i32
  }
  func.func @transform_1(%arg0: i32, %arg1: i32) -> (i32, i32, i32, i32) {
    %c0_i32 = arith.constant 0 : i32
    %c0_i32_0 = arith.constant 0 : i32
    %c0_i32_1 = arith.constant 0 : i32
    return %arg0, %c0_i32, %c0_i32_0, %arg1 : i32, i32, i32, i32
  }
}

module attributes {stable_mosaic.version = 11 : i64} {
  func.func @_gemm_kernel(%arg0: i32, %arg1: i32, %arg2: i32, %arg3: memref<128x128xbf16, #tpu.memory_space<vmem>>, %arg4: memref<128x128xbf16, #tpu.memory_space<vmem>>, %arg5: memref<1x128xf32, #tpu.memory_space<vmem>>, %arg6: memref<128x128xbf16, #tpu.memory_space<vmem>>, %arg7: memref<128x128xf32, #tpu.memory_space<vmem>>, %arg8: memref<128x128xf32, #tpu.memory_space<vmem>>) attributes {dimension_semantics = [#tpu.dimension_semantics<parallel>, #tpu.dimension_semantics<parallel>, #tpu.dimension_semantics<arbitrary>], iteration_bounds = array<i64: 1, 1, 1>, scalar_prefetch = 0 : i64, scratch_operands = 1 : i64, tpu.core_type = #tpu.core_type<tc>, window_params = [{transform_indices = @transform_0, window_bounds = array<i64: 128, 128>}, {transform_indices = @transform_1, window_bounds = array<i64: 128, 128>}, {transform_indices = @transform_2, window_bounds = array<i64: 1, 128>}, {transform_indices = @transform_3, window_bounds = array<i64: 128, 128>}, {transform_indices = @transform_4, window_bounds = array<i64: 128, 128>}]} {
    %c0_i32 = arith.constant 0 : i32
    %0 = arith.cmpi eq, %arg2, %c0_i32 : i32
    %1 = arith.extui %0 : i1 to i32
    %c0_i32_0 = arith.constant 0 : i32
    %2 = arith.cmpi ne, %1, %c0_i32_0 : i32
    scf.if %2 {
      %cst_10 = arith.constant 0.000000e+00 : f32
      %12 = vector.broadcast %cst_10 : f32 to vector<128x128xf32>
      %c0_11 = arith.constant 0 : index
      %c0_12 = arith.constant 0 : index
      %13 = vector.load %arg8[%c0_11, %c0_12] : memref<128x128xf32, #tpu.memory_space<vmem>>, vector<128x128xf32>
      tpu.vector_store %arg8[%c0_11, %c0_12], %12 {strides = array<i32>} : memref<128x128xf32, #tpu.memory_space<vmem>>, vector<128x128xf32>,
    } else {
    }
    %c0 = arith.constant 0 : index
    %c0_1 = arith.constant 0 : index
    %3 = vector.load %arg8[%c0, %c0_1] : memref<128x128xf32, #tpu.memory_space<vmem>>, vector<128x128xf32>
    %c0_2 = arith.constant 0 : index
    %c0_3 = arith.constant 0 : index
    %4 = vector.load %arg3[%c0_2, %c0_3] : memref<128x128xbf16, #tpu.memory_space<vmem>>, vector<128x128xbf16>
    %c0_4 = arith.constant 0 : index
    %c0_5 = arith.constant 0 : index
    %5 = vector.load %arg4[%c0_4, %c0_5] : memref<128x128xbf16, #tpu.memory_space<vmem>>, vector<128x128xbf16>
    %cst = arith.constant dense<0.000000e+00> : vector<128x128xf32>
    %6 = tpu.matmul %4, %5, %cst {dimension_numbers = #tpu.dot_dimension_numbers<[1], [0], [0], [1], [0, 0, 1, 1], [], []>} : vector<128x128xbf16>, vector<128x128xbf16>, vector<128x128xf32> -> vector<128x128xf32>
    %7 = arith.addf %3, %6 : vector<128x128xf32>
    %c0_6 = arith.constant 0 : index
    %c0_7 = arith.constant 0 : index
    %8 = vector.load %arg8[%c0_6, %c0_7] : memref<128x128xf32, #tpu.memory_space<vmem>>, vector<128x128xf32>
    tpu.vector_store %arg8[%c0_6, %c0_7], %7 {strides = array<i32>} : memref<128x128xf32, #tpu.memory_space<vmem>>, vector<128x128xf32>,
    %c0_i32_8 = arith.constant 0 : i32
    %9 = arith.cmpi eq, %arg2, %c0_i32_8 : i32
    %10 = arith.extui %9 : i1 to i32
    %c0_i32_9 = arith.constant 0 : i32
    %11 = arith.cmpi ne, %10, %c0_i32_9 : i32
    scf.if %11 {
      %c0_10 = arith.constant 0 : index
      %c0_11 = arith.constant 0 : index
      %12 = vector.load %arg8[%c0_10, %c0_11] : memref<128x128xf32, #tpu.memory_space<vmem>>, vector<128x128xf32>
      %c0_12 = arith.constant 0 : index
      %c0_13 = arith.constant 0 : index
      %13 = vector.load %arg5[%c0_12, %c0_13] : memref<1x128xf32, #tpu.memory_space<vmem>>, vector<1x128xf32>
      %14 = vector.broadcast %13 : vector<1x128xf32> to vector<128x128xf32>
      %15 = arith.addf %12, %14 : vector<128x128xf32>
      %cst_14 = arith.constant 0.000000e+00 : f32
      %16 = vector.broadcast %cst_14 : f32 to vector<128x128xf32>
      %17 = arith.cmpf oge, %15, %16 : vector<128x128xf32>
      %cst_15 = arith.constant 2.000000e-01 : f32
      %18 = vector.broadcast %cst_15 : f32 to vector<128x128xf32>
      %19 = arith.mulf %15, %18 : vector<128x128xf32>
      %20 = arith.select %17, %15, %19 : vector<128x128xi1>, vector<128x128xf32>
      %cst_16 = arith.constant 1.41421354 : f32
      %21 = vector.broadcast %cst_16 : f32 to vector<128x128xf32>
      %22 = arith.mulf %20, %21 : vector<128x128xf32>
      %c0_17 = arith.constant 0 : index
      %c0_18 = arith.constant 0 : index
      %23 = vector.load %arg6[%c0_17, %c0_18] : memref<128x128xbf16, #tpu.memory_space<vmem>>, vector<128x128xbf16>
      %24 = arith.extf %23 : vector<128x128xbf16> to vector<128x128xf32>
      %25 = arith.addf %22, %24 : vector<128x128xf32>
      %cst_19 = arith.constant 0.707106769 : f32
      %26 = vector.broadcast %cst_19 : f32 to vector<128x128xf32>
      %27 = arith.mulf %25, %26 : vector<128x128xf32>
      %c0_20 = arith.constant 0 : index
      %c0_21 = arith.constant 0 : index
      %28 = vector.load %arg7[%c0_20, %c0_21] : memref<128x128xf32, #tpu.memory_space<vmem>>, vector<128x128xf32>
      tpu.vector_store %arg7[%c0_20, %c0_21], %27 {strides = array<i32>} : memref<128x128xf32, #tpu.memory_space<vmem>>, vector<128x128xf32>,
    } else {
    }
    return
  }
  func.func @transform_0(%arg0: i32, %arg1: i32, %arg2: i32) -> (i32, i32) {
    %c0_i32 = arith.constant 0 : i32
    return %arg0, %arg2 : i32, i32
  }
  func.func @transform_1(%arg0: i32, %arg1: i32, %arg2: i32) -> (i32, i32) {
    %c0_i32 = arith.constant 0 : i32
    return %arg2, %arg1 : i32, i32
  }
  func.func @transform_2(%arg0: i32, %arg1: i32, %arg2: i32) -> (i32, i32) {
    %c0_i32 = arith.constant 0 : i32
    %c0_i32_0 = arith.constant 0 : i32
    return %c0_i32, %arg1 : i32, i32
  }
  func.func @transform_3(%arg0: i32, %arg1: i32, %arg2: i32) -> (i32, i32) {
    %c0_i32 = arith.constant 0 : i32
    return %arg0, %arg1 : i32, i32
  }
  func.func @transform_4(%arg0: i32, %arg1: i32, %arg2: i32) -> (i32, i32) {
    %c0_i32 = arith.constant 0 : i32
    return %arg0, %arg1 : i32, i32
  }
}

</mosaic_0001>

<bundles_post_ra>
// kernel: res_block_forward.6
= control target key start
LH: loop header
LB: loop body
LE: loop exit
PB: predicated region body
PF: predicated region fallthrough
CT: control target
= control target key end

     0   :  { %s1491_s6 = smov 0   ;;  %s1493_s7 = smov 0   ;;  %s2141_s0 = inlined_call_operand.vmem [shape: bf16[2,18,18,4], index: 0, kind: input, shape index: {}]   ;;  %s2142_s1 = inlined_call_operand.vmem [shape: bf16[2,15,15,4], index: 1, kind: output, shape index: {}]  }
   0x1   :  { %s1495_s8 = smov 0  }
   0x2 LB: > { %s23_s9 = sadd.s32 1, %s1475_s7  ;;  %p1322_p0 = scmp.ge.s32.totalorder %s1479_s8, 1  ;;  %s1479_s8 = sphi %s1495_s8, %s11_s8   ;;  %s1475_s7 = sphi %s1493_s7, %s2146_s7   ;;  %s1471_s6 = sphi %s1491_s6, %s2145_s6  }
   0x3   : > { %p25_p1 = scmp.ge.s32.totalorder %s23_s9, 2  ;;  %p106_p2 = scmp.lt.s32.totalorder %s1479_s8, 3 }
   0x5   : > { %s2148_s9 = smov (%p25_p1, %s23_s9), 0  ;;  %p107_p3 = pnand %p1322_p0, %p106_p2 }
   0x6   : > { %p132_p4 = scmp.lt.s32.totalorder (!%p107_p3), %s1471_s6, 1  ;;  %vm583_vm0 = vcmask (!%p107_p3), 1046528   ;;  %vm719_vm1 = vcmask (!%p107_p3), 1045504   ;;  %vm915_vm2 = vcmask (!%p107_p3), 1044480   ;;  %vm1171_vm3 = vcmask (!%p107_p3), 27648  }
   0x7   : > { %110 = sbr.rel (%p107_p3) target bundleno = 207 (0xcf), region = 24  ;;  %vm1174_vm4 = vsmask.f32 (!%p107_p3), 3328 }
   0x8   : > { %vm1596_vm5 = vmand (!%p107_p3), %vm1171_vm3, %vm1174_vm4 }
   0xe   : > { %s2150_s6 = smov (!%p132_p4, %s1471_s6), 1 }
   0xf   : > { %s1431_s10 = smul.u32 216, %s2150_s6 }
  0x10   : > { %s1432_s14 = smul.u32 120, %s2150_s6 }
  0x11   : > { %s1515_s13 = scalar_lea.vmem %s2141_s0, %s1431_s10 }
  0x12   : > { %v1388_v0 = vld [vmem:[%s1515_s13] sm:$0xff]   ;;  %v151_v1 = vld [vmem:[%s1515_s13 + $0xc] sm:$0xff]   ;;  %v1520_v2 = vld [vmem:[%s1515_s13 + $0x18] sm:$0xff]   ;;  %s1590_s17 = scalar_lea.vmem %s2142_s1, %s1432_s14 }
  0x13   : > { %v1389_v3 = vunpack.c.l.bf16 %v1388_v0  ;;  %v1390_v4 = vunpack.c.h.bf16 %v1388_v0  ;;  %v1393_v5 = vunpack.c.l.bf16 %v1520_v2  ;;  %v1394_v6 = vunpack.c.h.bf16 %v1520_v2  ;;  %v157_v7 = vld [vmem:[%s1515_s13 + $0x24] sm:$0xff]   ;;  %v153_v13 = vld [vmem:[%s1515_s13 + $0x14] sm:$0x1]  ;;  %v1528_v14 = vld [vmem:[%s1515_s13 + $0x20] sm:$0x1] }
  0x14   : > { %v150_v8 = vld [vmem:[%s1515_s13 + $0x8] sm:$0x1]  ;;  %v205_v9 = vunpack.c.l.bf16 %v151_v1  ;;  %v206_v10 = vunpack.c.h.bf16 %v151_v1  ;;  %v211_v11 = vunpack.c.l.bf16 %v157_v7  ;;  %v212_v12 = vunpack.c.h.bf16 %v157_v7  ;;  %v1531_v15 = vld [vmem:[%s1515_s13 + $0x2c] sm:$0x1]  ;;  %v1538_v20 = vld [vmem:[%s1515_s13 + $0x30] sm:$0xff]  }
  0x15   : > { %v256_v16 = vmul.f32 0.125, %v1389_v3  ;;  %v257_v17 = vmul.f32 0.125, %v1390_v4  ;;  %v304_v18 = vmul.f32 0.375, %v1393_v5  ;;  %v305_v19 = vmul.f32 0.375, %v1394_v6  ;;  %v1553_v41 = vld [vmem:[%s1515_s13 + $0x38] sm:$0x1] }
  0x16   : > { %v1540_v21 = vmul.f32 0.125, %v211_v11  ;;  %v1542_v22 = vmul.f32 0.125, %v212_v12  ;;  %v301_v23 = vmul.f32 0.375, %v205_v9  ;;  %v302_v24 = vmul.f32 0.375, %v206_v10 }
  0x17   : > { %v204_v25 = vunpack.c.l.bf16 %v150_v8  ;;  %v207_v26 = vunpack.c.l.bf16 %v153_v13  ;;  %v210_v27 = vunpack.c.l.bf16 %v1528_v14  ;;  %v213_v28 = vunpack.c.l.bf16 %v1531_v15  ;;  %v1180_v14 = vld [vmem:[%s1590_s17 + $0xc] sm:$0xf] }
  0x18   : > { %v346_v29 = vadd.f32 %v301_v23, %v256_v16  ;;  %v347_v30 = vadd.f32 %v302_v24, %v257_v17  ;;  %v1397_v31 = vunpack.c.l.bf16 %v1538_v20  ;;  %v1398_v32 = vunpack.c.h.bf16 %v1538_v20 }
  0x19   : > { %v258_v33 = vmul.f32 0.125, %v204_v25  ;;  %v1548_v34 = vmul.f32 0.125, %v213_v28  ;;  %v303_v35 = vmul.f32 0.375, %v207_v26  ;;  %v306_v36 = vmul.f32 0.375, %v210_v27 }
  0x1a   : > { %v394_v37 = vadd.f32 %v346_v29, %v304_v18  ;;  %v395_v38 = vadd.f32 %v347_v30, %v305_v19  ;;  %v259_v39 = vmul.f32 0.125, %v205_v9  ;;  %v260_v40 = vmul.f32 0.125, %v206_v10 }
  0x1b   : > { %v348_v42 = vadd.f32 %v303_v35, %v258_v33  ;;  %v1557_v43 = vmul.f32 0.125, %v1397_v31  ;;  %v1561_v44 = vmul.f32 0.125, %v1398_v32  ;;  %v1563_v45 = vmul.f32 0.375, %v211_v11 }
  0x1c   : > { %v448_v46 = vadd.f32 %v394_v37, %v1540_v21  ;;  %v449_v47 = vadd.f32 %v395_v38, %v1542_v22  ;;  %v1567_v48 = vmul.f32 0.375, %v212_v12  ;;  %v349_v49 = vadd.f32 %v304_v18, %v259_v39  ;;  %v163_v39 = vld [vmem:[%s1515_s13 + $0x3c] sm:$0xff]  }
  0x1d   : > { %v396_v50 = vadd.f32 %v348_v42, %v306_v36  ;;  %v350_v51 = vadd.f32 %v305_v19, %v260_v40  ;;  %v216_v52 = vunpack.c.l.bf16 %v1553_v41  ;;  %v261_v53 = vmul.f32 0.125, %v207_v26 }
  0x1e   : > { %v493_v54 = vmul.f32 0.125, %v448_v46  ;;  %v494_v55 = vmul.f32 0.125, %v449_v47  ;;  %v523_v56 = vmul.f32 0.375, %v448_v46  ;;  %v524_v57 = vmul.f32 0.375, %v449_v47 }
  0x1f   : > { %v450_v58 = vadd.f32 %v396_v50, %v1548_v34  ;;  %v397_v59 = vadd.f32 %v349_v49, %v1563_v45  ;;  %v398_v60 = vadd.f32 %v350_v51, %v1567_v48  ;;  %v1575_v61 = vmul.f32 0.125, %v216_v52 }
  0x20   : > { %v584_v62 = vrot.slane %v523_v56, 1  ;;  %v585_v63 = vrot.slane %v524_v57, 1  ;;  %v720_v0 = vrot.slane %v523_v56, 2  ;;  %v721_v1 = vrot.slane %v524_v57, 2 }
  0x21   : > { %v916_v3 = vrot.slane %v493_v54, 3  ;;  %v917_v4 = vrot.slane %v494_v55, 3  ;;  %v689_v7 = vmul.f32 0.375, %v450_v58  ;;  %v855_v8 = vmul.f32 0.125, %v450_v58 }
  0x22   : > { %v586_v9 = vsel %vm583_vm0, %v584_v62, %v585_v63  ;;  %v722_v10 = vsel %vm719_vm1, %v720_v0, %v721_v1  ;;  %v660_v11 = vadd.f32 %v585_v63, %v494_v55  ;;  %v451_v12 = vadd.f32 %v397_v59, %v1557_v43 }
  0x23   : > { %v659_v13 = vadd.f32 %v586_v9, %v493_v54  ;;  %v918_v15 = vsel %vm915_vm2, %v916_v3, %v917_v4  ;;  %v723_v16 = vrot.slane %v689_v7, 2  ;;  %v919_v17 = vrot.slane %v855_v8, 3  ;;  %v1176_v54 = vld [vmem:[%s1590_s17 + $0x4] sm:$0xf] }
  0x24   : > { %v452_v18 = vadd.f32 %v398_v60, %v1561_v44  ;;  %v495_v19 = vmul.f32 0.125, %v451_v12  ;;  %v525_v23 = vmul.f32 0.375, %v451_v12  ;;  %v1583_v24 = vmul.f32 0.375, %v213_v28 }
  0x25   : > { %v825_v25 = vadd.f32 %v722_v10, %v659_v13  ;;  %v724_v26 = vsel %vm719_vm1, %v721_v1, %v723_v16  ;;  %v920_v29 = vsel %vm915_vm2, %v917_v4, %v919_v17  ;;  %v351_v30 = vadd.f32 %v306_v36, %v261_v53  ;;  %v165_v10 = vld [vmem:[%s1515_s13 + $0x44] sm:$0x1] }
  0x26   : > { %v826_v33 = vadd.f32 %v724_v26, %v660_v11  ;;  %v496_v35 = vmul.f32 0.125, %v452_v18  ;;  %v526_v37 = vmul.f32 0.375, %v452_v18  ;;  %v587_v38 = vrot.slane %v525_v23, 1 }
  0x27   : > { %v1021_v40 = vadd.f32 %v918_v15, %v825_v25  ;;  %v725_v28 = vrot.slane %v525_v23, 2  ;;  %v921_v42 = vrot.slane %v495_v19, 3  ;;  %v399_v46 = vadd.f32 %v351_v30, %v1583_v24 }
  0x28   : > { %v1022_v47 = vadd.f32 %v920_v29, %v826_v33  ;;  %v588_v49 = vrot.slane %v526_v37, 1  ;;  %v726_v36 = vrot.slane %v526_v37, 2  ;;  %v922_v50 = vrot.slane %v496_v35, 3 }
  0x29   : > { %v1357_v51 = vpack.c.bf16 %v1021_v40, %v1021_v40  ;;  %v453_v55 = vadd.f32 %v399_v46, %v1575_v61  ;;  %v217_v56 = vunpack.c.l.bf16 %v163_v39  ;;  %v218_v57 = vunpack.c.h.bf16 %v163_v39 }
  0x2a   : > { %v1358_v58 = vpack.c.bf16 %v1022_v47, %v1022_v47  ;;  %v589_v59 = vsel %vm583_vm0, %v587_v38, %v588_v49  ;;  %v727_v60 = vsel %vm719_vm1, %v725_v28, %v726_v36  ;;  %v923_v62 = vsel %vm915_vm2, %v921_v42, %v922_v50 }
  0x2b   : > { %1172 = vst.msk [vmem:[%s1590_s17] sm:$0xf] %vm1171_vm3, %v1357_v51  ;;  %v661_v63 = vadd.f32 %v589_v59, %v495_v19  ;;  %v662_v0 = vadd.f32 %v588_v49, %v496_v35  ;;  %v690_v1 = vmul.f32 0.375, %v453_v55  ;;  %v856_v3 = vmul.f32 0.125, %v453_v55 }
  0x2c   : > { %v1177_v4 = vsel %vm1596_vm5, %v1358_v58, %v1176_v54  ;;  %v262_v7 = vmul.f32 0.125, %v1393_v5  ;;  %v263_v8 = vmul.f32 0.125, %v1394_v6  ;;  %v1613_v9 = vmul.f32 0.125, %v217_v56  ;;  %v1626_v6 = vld [vmem:[%s1515_s13 + $0x48] sm:$0xff]  }
  0x2d   : > { %1178 = vst [vmem:[%s1590_s17 + $0x4] sm:$0xf] %v1177_v4  ;;  %v827_v11 = vadd.f32 %v727_v60, %v661_v63  ;;  %v728_v12 = vrot.slane %v690_v1, 2  ;;  %v924_v13 = vrot.slane %v856_v3, 3  ;;  %v1617_v15 = vmul.f32 0.125, %v218_v57  ;;  %v1670_v1 = vld [vmem:[%s1515_s13 + $0x54] sm:$0xff]  }
  0x2e   : > { %v310_v16 = vmul.f32 0.375, %v1397_v31  ;;  %v311_v17 = vmul.f32 0.375, %v1398_v32  ;;  %v352_v5 = vadd.f32 %v1563_v45, %v262_v7  ;;  %v353_v2 = vadd.f32 %v1567_v48, %v263_v8 }
  0x2f   : > { %v1023_v18 = vadd.f32 %v923_v62, %v827_v11  ;;  %v729_v19 = vsel %vm719_vm1, %v726_v36, %v728_v12  ;;  %v925_v23 = vsel %vm915_vm2, %v922_v50, %v924_v13  ;;  %v219_v25 = vunpack.c.l.bf16 %v165_v10  ;;  %v1658_v50 = vld [vmem:[%s1515_s13 + $0x50] sm:$0x1] }
  0x30   : > { %v828_v26 = vadd.f32 %v729_v19, %v662_v0  ;;  %v400_v29 = vadd.f32 %v352_v5, %v310_v16  ;;  %v401_v31 = vadd.f32 %v353_v2, %v311_v17  ;;  %v264_v20 = vmul.f32 0.125, %v210_v27 }
  0x31   : > { %v1359_v32 = vpack.c.bf16 %v1023_v18, %v1023_v18  ;;  %v1632_v45 = vmul.f32 0.125, %v219_v25  ;;  %v312_v48 = vmul.f32 0.375, %v216_v52  ;;  %v1401_v30 = vunpack.c.l.bf16 %v1626_v6 }
  0x32   : > { %v1024_v33 = vadd.f32 %v925_v23, %v828_v26  ;;  %v454_v35 = vadd.f32 %v400_v29, %v1613_v9  ;;  %v455_v37 = vadd.f32 %v401_v31, %v1617_v15  ;;  %v354_v38 = vadd.f32 %v1583_v24, %v264_v20 }
  0x33   : > { %1179 = vst.msk [vmem:[%s1590_s17 + $0x8] sm:$0xf] %vm1171_vm3, %v1359_v32  ;;  %v1402_v27 = vunpack.c.h.bf16 %v1626_v6  ;;  %v1646_v39 = vmul.f32 0.125, %v1401_v30  ;;  %v1648_v41 = vmul.f32 0.375, %v217_v56  ;;  %v1650_v52 = vmul.f32 0.375, %v218_v57 }
  0x34   : > { %v1360_v40 = vpack.c.bf16 %v1024_v33, %v1024_v33  ;;  %v497_v28 = vmul.f32 0.125, %v454_v35  ;;  %v498_v42 = vmul.f32 0.125, %v455_v37  ;;  %v527_v46 = vmul.f32 0.375, %v454_v35 }
  0x35   : > { %v528_v47 = vmul.f32 0.375, %v455_v37  ;;  %v402_v24 = vadd.f32 %v354_v38, %v312_v48  ;;  %v1654_v49 = vmul.f32 0.125, %v1402_v27  ;;  %v355_v36 = vadd.f32 %v310_v16, %v1540_v21 }
  0x36   : > { %v1181_v51 = vsel %vm1596_vm5, %v1360_v40, %v1180_v14  ;;  %v590_v54 = vrot.slane %v527_v46, 1  ;;  %v730_v55 = vrot.slane %v527_v46, 2  ;;  %v926_v56 = vrot.slane %v497_v28, 3 }
  0x37   : > { %1182 = vst [vmem:[%s1590_s17 + $0xc] sm:$0xf] %v1181_v51  ;;  %v591_v57 = vrot.slane %v528_v47, 1  ;;  %v731_v58 = vrot.slane %v528_v47, 2  ;;  %v927_v59 = vrot.slane %v498_v42, 3  ;;  %v456_v60 = vadd.f32 %v402_v24, %v1632_v45 }
  0x38   : > { %v356_v62 = vadd.f32 %v311_v17, %v1542_v22  ;;  %v403_v63 = vadd.f32 %v355_v36, %v1648_v41  ;;  %v222_v21 = vunpack.c.l.bf16 %v1658_v50  ;;  %v1667_v0 = vmul.f32 0.375, %v219_v25  ;;  %v1184_v51 = vld [vmem:[%s1590_s17 + $0x14] sm:$0xf]  ;;  %v1188_v50 = vld [vmem:[%s1590_s17 + $0x1c] sm:$0xf] }
  0x39   : > { %v592_v3 = vsel %vm583_vm0, %v590_v54, %v591_v57  ;;  %v732_v4 = vsel %vm719_vm1, %v730_v55, %v731_v58  ;;  %v928_v7 = vsel %vm915_vm2, %v926_v56, %v927_v59  ;;  %v664_v8 = vadd.f32 %v591_v57, %v498_v42 }
  0x3a   : > { %v663_v10 = vadd.f32 %v592_v3, %v497_v28  ;;  %v691_v11 = vmul.f32 0.375, %v456_v60  ;;  %v857_v12 = vmul.f32 0.125, %v456_v60  ;;  %v404_v22 = vadd.f32 %v356_v62, %v1650_v52 }
  0x3b   : > { %v457_v13 = vadd.f32 %v403_v63, %v1646_v39  ;;  %v1679_v16 = vmul.f32 0.125, %v222_v21  ;;  %v357_v17 = vadd.f32 %v312_v48, %v1548_v34  ;;  %v223_v5 = vunpack.c.l.bf16 %v1670_v1  ;;  %v1704_v63 = vld [vmem:[%s1515_s13 + $0x5c] sm:$0x1] }
  0x3c   : > { %v829_v2 = vadd.f32 %v732_v4, %v663_v10  ;;  %v733_v18 = vrot.slane %v691_v11, 2  ;;  %v929_v19 = vrot.slane %v857_v12, 3  ;;  %v458_v23 = vadd.f32 %v404_v22, %v1654_v49 }
  0x3d   : > { %v499_v25 = vmul.f32 0.125, %v457_v13  ;;  %v529_v26 = vmul.f32 0.375, %v457_v13  ;;  %v405_v29 = vadd.f32 %v357_v17, %v1667_v0  ;;  %v224_v31 = vunpack.c.h.bf16 %v1670_v1  ;;  %v1717_v13 = vld [vmem:[%s1515_s13 + $0x60] sm:$0xff]  }
  0x3e   : > { %v1025_v20 = vadd.f32 %v928_v7, %v829_v2  ;;  %v734_v32 = vsel %vm719_vm1, %v731_v58, %v733_v18  ;;  %v930_v34 = vsel %vm915_vm2, %v927_v59, %v929_v19  ;;  %v500_v48 = vmul.f32 0.125, %v458_v23 }
  0x3f   : > { %v830_v33 = vadd.f32 %v734_v32, %v664_v8  ;;  %v530_v35 = vmul.f32 0.375, %v458_v23  ;;  %v593_v37 = vrot.slane %v529_v26, 1  ;;  %v735_v38 = vrot.slane %v529_v26, 2 }
  0x40   : > { %v1361_v14 = vpack.c.bf16 %v1025_v20, %v1025_v20  ;;  %v931_v40 = vrot.slane %v499_v25, 3  ;;  %v932_v28 = vrot.slane %v500_v48, 3  ;;  %v459_v42 = vadd.f32 %v405_v29, %v1679_v16 }
  0x41   : > { %v1026_v46 = vadd.f32 %v930_v34, %v830_v33  ;;  %v594_v47 = vrot.slane %v530_v35, 1  ;;  %v736_v24 = vrot.slane %v530_v35, 2  ;;  %v1691_v36 = vmul.f32 0.125, %v223_v5 }
  0x42   : > { %1183 = vst.msk [vmem:[%s1590_s17 + $0x10] sm:$0xf] %vm1171_vm3, %v1361_v14  ;;  %v933_v54 = vsel %vm915_vm2, %v931_v40, %v932_v28  ;;  %v692_v55 = vmul.f32 0.375, %v459_v42  ;;  %v858_v56 = vmul.f32 0.125, %v459_v42  ;;  %v1699_v57 = vmul.f32 0.125, %v224_v31 }
  0x43   : > { %v1362_v58 = vpack.c.bf16 %v1026_v46, %v1026_v46  ;;  %v595_v59 = vsel %vm583_vm0, %v593_v37, %v594_v47  ;;  %v737_v60 = vsel %vm719_vm1, %v735_v38, %v736_v24  ;;  %v666_v62 = vadd.f32 %v594_v47, %v500_v48 }
  0x44   : > { %v665_v3 = vadd.f32 %v595_v59, %v499_v25  ;;  %v738_v4 = vrot.slane %v692_v55, 2  ;;  %v934_v7 = vrot.slane %v858_v56, 3  ;;  %v316_v8 = vmul.f32 0.375, %v1401_v30 }
  0x45   : > { %v1185_v10 = vsel %vm1596_vm5, %v1362_v58, %v1184_v51  ;;  %v317_v11 = vmul.f32 0.375, %v1402_v27  ;;  %v358_v12 = vadd.f32 %v1648_v41, %v1557_v43  ;;  %v359_v22 = vadd.f32 %v1650_v52, %v1561_v44 }
  0x46   : > { %1186 = vst [vmem:[%s1590_s17 + $0x14] sm:$0xf] %v1185_v10  ;;  %v831_v17 = vadd.f32 %v737_v60, %v665_v3  ;;  %v739_v2 = vsel %vm719_vm1, %v736_v24, %v738_v4  ;;  %v935_v30 = vsel %vm915_vm2, %v932_v28, %v934_v7  ;;  %v225_v18 = vunpack.c.l.bf16 %v1704_v63  ;;  %v1754_v28 = vld [vmem:[%s1515_s13 + $0x68] sm:$0x1] }
  0x47   : > { %v832_v19 = vadd.f32 %v739_v2, %v666_v62  ;;  %v406_v6 = vadd.f32 %v358_v12, %v316_v8  ;;  %v407_v27 = vadd.f32 %v359_v22, %v317_v11  ;;  %v318_v43 = vmul.f32 0.375, %v222_v21  ;;  %v1767_v12 = vld [vmem:[%s1515_s13 + $0x6c] sm:$0xff]  }
  0x48   : > { %v1027_v41 = vadd.f32 %v933_v54, %v831_v17  ;;  %v1725_v23 = vmul.f32 0.125, %v225_v18  ;;  %v360_v44 = vadd.f32 %v1667_v0, %v1575_v61  ;;  %v1405_v52 = vunpack.c.l.bf16 %v1717_v13 }
  0x49   : > { %v1028_v25 = vadd.f32 %v935_v30, %v832_v19  ;;  %v460_v26 = vadd.f32 %v406_v6, %v1691_v36  ;;  %v461_v29 = vadd.f32 %v407_v27, %v1699_v57  ;;  %v1406_v20 = vunpack.c.h.bf16 %v1717_v13 }
  0x4a   : > { %v1363_v32 = vpack.c.bf16 %v1027_v41, %v1027_v41  ;;  %v408_v21 = vadd.f32 %v360_v44, %v318_v43  ;;  %v1736_v34 = vmul.f32 0.125, %v1405_v52  ;;  %v1740_v61 = vmul.f32 0.375, %v223_v5 }
  0x4b   : > { %v1364_v0 = vpack.c.bf16 %v1028_v25, %v1028_v25  ;;  %v501_v48 = vmul.f32 0.125, %v460_v26  ;;  %v502_v33 = vmul.f32 0.125, %v461_v29  ;;  %v531_v35 = vmul.f32 0.375, %v460_v26 }
  0x4c   : > { %1187 = vst.msk [vmem:[%s1590_s17 + $0x18] sm:$0xf] %vm1171_vm3, %v1363_v32  ;;  %v532_v37 = vmul.f32 0.375, %v461_v29  ;;  %v462_v38 = vadd.f32 %v408_v21, %v1725_v23  ;;  %v1747_v14 = vmul.f32 0.125, %v1406_v20  ;;  %v1751_v40 = vmul.f32 0.375, %v224_v31 }
  0x4d   : > { %v1189_v5 = vsel %vm1596_vm5, %v1364_v0, %v1188_v50  ;;  %v596_v42 = vrot.slane %v531_v35, 1  ;;  %v740_v46 = vrot.slane %v531_v35, 2  ;;  %v936_v47 = vrot.slane %v501_v48, 3  ;;  %v1192_v21 = vld [vmem:[%s1590_s17 + $0x24] sm:$0xf] }
  0x4e   : > { %1190 = vst [vmem:[%s1590_s17 + $0x1c] sm:$0xf] %v1189_v5  ;;  %v597_v24 = vrot.slane %v532_v37, 1  ;;  %v741_v51 = vrot.slane %v532_v37, 2  ;;  %v937_v54 = vrot.slane %v502_v33, 3  ;;  %v693_v55 = vmul.f32 0.375, %v462_v38 }
  0x4f   : > { %v859_v56 = vmul.f32 0.125, %v462_v38  ;;  %v361_v58 = vadd.f32 %v316_v8, %v1613_v9  ;;  %v362_v1 = vadd.f32 %v317_v11, %v1617_v15  ;;  %v228_v31 = vunpack.c.l.bf16 %v1754_v28 }
  0x50   : > { %v598_v59 = vsel %vm583_vm0, %v596_v42, %v597_v24  ;;  %v742_v60 = vsel %vm719_vm1, %v740_v46, %v741_v51  ;;  %v938_v62 = vsel %vm915_vm2, %v936_v47, %v937_v54  ;;  %v668_v63 = vadd.f32 %v597_v24, %v502_v33 }
  0x51   : > { %v667_v3 = vadd.f32 %v598_v59, %v501_v48  ;;  %v743_v4 = vrot.slane %v693_v55, 2  ;;  %v939_v7 = vrot.slane %v859_v56, 3  ;;  %v409_v10 = vadd.f32 %v361_v58, %v1740_v61  ;;  %v1795_v58 = vld [vmem:[%s1515_s13 + $0x74] sm:$0x1] }
  0x52   : > { %v410_v9 = vadd.f32 %v362_v1, %v1751_v40  ;;  %v1772_v15 = vmul.f32 0.125, %v228_v31  ;;  %v321_v8 = vmul.f32 0.375, %v225_v18  ;;  %v363_v11 = vadd.f32 %v318_v43, %v1632_v45 }
  0x53   : > { %v833_v22 = vadd.f32 %v742_v60, %v667_v3  ;;  %v744_v17 = vsel %vm719_vm1, %v741_v51, %v743_v4  ;;  %v940_v2 = vsel %vm915_vm2, %v937_v54, %v939_v7  ;;  %v463_v30 = vadd.f32 %v409_v10, %v1736_v34  ;;  %v1807_v10 = vld [vmem:[%s1515_s13 + $0x78] sm:$0xff]  }
  0x54   : > { %v834_v19 = vadd.f32 %v744_v17, %v668_v63  ;;  %v464_v6 = vadd.f32 %v410_v9, %v1747_v14  ;;  %v411_v27 = vadd.f32 %v363_v11, %v321_v8  ;;  %v229_v41 = vunpack.c.l.bf16 %v1767_v12 }
  0x55   : > { %v1029_v44 = vadd.f32 %v938_v62, %v833_v22  ;;  %v503_v25 = vmul.f32 0.125, %v463_v30  ;;  %v533_v18 = vmul.f32 0.375, %v463_v30  ;;  %v230_v45 = vunpack.c.h.bf16 %v1767_v12 }
  0x56   : > { %v1030_v43 = vadd.f32 %v940_v2, %v834_v19  ;;  %v504_v26 = vmul.f32 0.125, %v464_v6  ;;  %v534_v29 = vmul.f32 0.375, %v464_v6  ;;  %v465_v32 = vadd.f32 %v411_v27, %v1772_v15 }
  0x57   : > { %v1365_v50 = vpack.c.bf16 %v1029_v44, %v1029_v44  ;;  %v599_v0 = vrot.slane %v533_v18, 1  ;;  %v745_v48 = vrot.slane %v533_v18, 2  ;;  %v941_v33 = vrot.slane %v503_v25, 3  ;;  %v1196_v44 = vld [vmem:[%s1590_s17 + $0x2c] sm:$0xf] }
  0x58   : > { %v1366_v35 = vpack.c.bf16 %v1030_v43, %v1030_v43  ;;  %v600_v37 = vrot.slane %v534_v29, 1  ;;  %v746_v38 = vrot.slane %v534_v29, 2  ;;  %v942_v5 = vrot.slane %v504_v26, 3 }
  0x59   : > { %1191 = vst.msk [vmem:[%s1590_s17 + $0x20] sm:$0xf] %vm1171_vm3, %v1365_v50  ;;  %v694_v42 = vmul.f32 0.375, %v465_v32  ;;  %v860_v46 = vmul.f32 0.125, %v465_v32  ;;  %v1785_v47 = vmul.f32 0.125, %v229_v41  ;;  %v1787_v24 = vmul.f32 0.125, %v230_v45 }
  0x5a   : > { %v1193_v51 = vsel %vm1596_vm5, %v1366_v35, %v1192_v21  ;;  %v601_v54 = vsel %vm583_vm0, %v599_v0, %v600_v37  ;;  %v747_v55 = vsel %vm719_vm1, %v745_v48, %v746_v38  ;;  %v943_v56 = vsel %vm915_vm2, %v941_v33, %v942_v5  ;;  %v1838_v21 = vld [vmem:[%s1515_s13 + $0x80] sm:$0x1] }
  0x5b   : > { %1194 = vst [vmem:[%s1590_s17 + $0x24] sm:$0xf] %v1193_v51  ;;  %v669_v1 = vadd.f32 %v601_v54, %v503_v25  ;;  %v670_v59 = vadd.f32 %v600_v37, %v504_v26  ;;  %v748_v60 = vrot.slane %v694_v42, 2  ;;  %v944_v62 = vrot.slane %v860_v46, 3 }
  0x5c   : > { %v322_v63 = vmul.f32 0.375, %v1405_v52  ;;  %v323_v3 = vmul.f32 0.375, %v1406_v20  ;;  %v364_v4 = vadd.f32 %v1740_v61, %v1646_v39  ;;  %v365_v7 = vadd.f32 %v1751_v40, %v1654_v49 }
  0x5d   : > { %v835_v12 = vadd.f32 %v747_v55, %v669_v1  ;;  %v749_v9 = vsel %vm719_vm1, %v746_v38, %v748_v60  ;;  %v945_v11 = vsel %vm915_vm2, %v942_v5, %v944_v62  ;;  %v231_v22 = vunpack.c.l.bf16 %v1795_v58 }
  0x5e   : > { %v836_v52 = vadd.f32 %v749_v9, %v670_v59  ;;  %v412_v17 = vadd.f32 %v364_v4, %v322_v63  ;;  %v413_v13 = vadd.f32 %v365_v7, %v323_v3  ;;  %v324_v20 = vmul.f32 0.375, %v228_v31  ;;  %v1851_v4 = vld [vmem:[%s1515_s13 + $0x84] sm:$0xff]  }
  0x5f   : > { %v1031_v39 = vadd.f32 %v943_v56, %v835_v12  ;;  %v1814_v61 = vmul.f32 0.125, %v231_v22  ;;  %v366_v49 = vadd.f32 %v321_v8, %v1679_v16  ;;  %v1409_v40 = vunpack.c.l.bf16 %v1807_v10 }
  0x60   : > { %v1032_v2 = vadd.f32 %v945_v11, %v836_v52  ;;  %v466_v30 = vadd.f32 %v412_v17, %v1785_v47  ;;  %v467_v19 = vadd.f32 %v413_v13, %v1787_v24  ;;  %v1410_v6 = vunpack.c.h.bf16 %v1807_v10 }
  0x61   : > { %v1367_v27 = vpack.c.bf16 %v1031_v39, %v1031_v39  ;;  %v414_v28 = vadd.f32 %v366_v49, %v324_v20  ;;  %v1824_v31 = vmul.f32 0.125, %v1409_v40  ;;  %v1826_v25 = vmul.f32 0.375, %v229_v41 }
  0x62   : > { %v1368_v16 = vpack.c.bf16 %v1032_v2, %v1032_v2  ;;  %v505_v8 = vmul.f32 0.125, %v466_v30  ;;  %v506_v18 = vmul.f32 0.125, %v467_v19  ;;  %v535_v43 = vmul.f32 0.375, %v466_v30 }
  0x63   : > { %1195 = vst.msk [vmem:[%s1590_s17 + $0x28] sm:$0xf] %vm1171_vm3, %v1367_v27  ;;  %v536_v26 = vmul.f32 0.375, %v467_v19  ;;  %v468_v29 = vadd.f32 %v414_v28, %v1814_v61  ;;  %v1833_v32 = vmul.f32 0.125, %v1410_v6  ;;  %v1835_v50 = vmul.f32 0.375, %v230_v45 }
  0x64   : > { %v1197_v41 = vsel %vm1596_vm5, %v1368_v16, %v1196_v44  ;;  %v602_v0 = vrot.slane %v535_v43, 1  ;;  %v750_v48 = vrot.slane %v535_v43, 2  ;;  %v946_v33 = vrot.slane %v505_v8, 3  ;;  %v1200_v28 = vld [vmem:[%s1590_s17 + $0x34] sm:$0xf] }
  0x65   : > { %1198 = vst [vmem:[%s1590_s17 + $0x2c] sm:$0xf] %v1197_v41  ;;  %v603_v35 = vrot.slane %v536_v26, 1  ;;  %v751_v37 = vrot.slane %v536_v26, 2  ;;  %v947_v38 = vrot.slane %v506_v18, 3  ;;  %v695_v5 = vmul.f32 0.375, %v468_v29 }
  0x66   : > { %v861_v42 = vmul.f32 0.125, %v468_v29  ;;  %v367_v46 = vadd.f32 %v322_v63, %v1691_v36  ;;  %v368_v45 = vadd.f32 %v323_v3, %v1699_v57  ;;  %v234_v51 = vunpack.c.l.bf16 %v1838_v21 }
  0x67   : > { %v604_v54 = vsel %vm583_vm0, %v602_v0, %v603_v35  ;;  %v752_v55 = vsel %vm719_vm1, %v750_v48, %v751_v37  ;;  %v948_v56 = vsel %vm915_vm2, %v946_v33, %v947_v38  ;;  %v672_v58 = vadd.f32 %v603_v35, %v506_v18 }
  0x68   : > { %v671_v1 = vadd.f32 %v604_v54, %v505_v8  ;;  %v753_v59 = vrot.slane %v695_v5, 2  ;;  %v949_v60 = vrot.slane %v861_v42, 3  ;;  %v415_v62 = vadd.f32 %v367_v46, %v1826_v25  ;;  %v1879_v46 = vld [vmem:[%s1515_s13 + $0x8c] sm:$0x1] }
  0x69   : > { %v416_v36 = vadd.f32 %v368_v45, %v1835_v50  ;;  %v1856_v57 = vmul.f32 0.125, %v234_v51  ;;  %v327_v63 = vmul.f32 0.375, %v231_v22  ;;  %v369_v3 = vadd.f32 %v324_v20, %v1725_v23 }
  0x6a   : > { %v837_v7 = vadd.f32 %v752_v55, %v671_v1  ;;  %v754_v12 = vsel %vm719_vm1, %v751_v37, %v753_v59  ;;  %v950_v9 = vsel %vm915_vm2, %v947_v38, %v949_v60  ;;  %v469_v11 = vadd.f32 %v415_v62, %v1824_v31  ;;  %v1891_v62 = vld [vmem:[%s1515_s13 + $0x90] sm:$0xff]  }
  0x6b   : > { %v838_v52 = vadd.f32 %v754_v12, %v672_v58  ;;  %v470_v17 = vadd.f32 %v416_v36, %v1833_v32  ;;  %v417_v13 = vadd.f32 %v369_v3, %v327_v63  ;;  %v235_v39 = vunpack.c.l.bf16 %v1851_v4 }
  0x6c   : > { %v1033_v49 = vadd.f32 %v948_v56, %v837_v7  ;;  %v507_v2 = vmul.f32 0.125, %v469_v11  ;;  %v537_v22 = vmul.f32 0.375, %v469_v11  ;;  %v236_v23 = vunpack.c.h.bf16 %v1851_v4 }
  0x6d   : > { %v1034_v20 = vadd.f32 %v950_v9, %v838_v52  ;;  %v508_v30 = vmul.f32 0.125, %v470_v17  ;;  %v538_v19 = vmul.f32 0.375, %v470_v17  ;;  %v471_v27 = vadd.f32 %v417_v13, %v1856_v57 }
  0x6e   : > { %v1369_v44 = vpack.c.bf16 %v1033_v49, %v1033_v49  ;;  %v605_v16 = vrot.slane %v537_v22, 1  ;;  %v755_v8 = vrot.slane %v537_v22, 2  ;;  %v951_v18 = vrot.slane %v507_v2, 3  ;;  %v1204_v49 = vld [vmem:[%s1590_s17 + $0x3c] sm:$0xf] }
  0x6f   : > { %v1370_v43 = vpack.c.bf16 %v1034_v20, %v1034_v20  ;;  %v606_v26 = vrot.slane %v538_v19, 1  ;;  %v756_v29 = vrot.slane %v538_v19, 2  ;;  %v952_v41 = vrot.slane %v508_v30, 3 }
  0x70   : > { %1199 = vst.msk [vmem:[%s1590_s17 + $0x30] sm:$0xf] %vm1171_vm3, %v1369_v44  ;;  %v696_v0 = vmul.f32 0.375, %v471_v27  ;;  %v862_v48 = vmul.f32 0.125, %v471_v27  ;;  %v1869_v33 = vmul.f32 0.125, %v235_v39  ;;  %v1871_v35 = vmul.f32 0.125, %v236_v23 }
  0x71   : > { %v1201_v37 = vsel %vm1596_vm5, %v1370_v43, %v1200_v28  ;;  %v607_v38 = vsel %vm583_vm0, %v605_v16, %v606_v26  ;;  %v757_v5 = vsel %vm719_vm1, %v755_v8, %v756_v29  ;;  %v953_v42 = vsel %vm915_vm2, %v951_v18, %v952_v41  ;;  %v1922_v28 = vld [vmem:[%s1515_s13 + $0x98] sm:$0x1] }
  0x72   : > { %1202 = vst [vmem:[%s1590_s17 + $0x34] sm:$0xf] %v1201_v37  ;;  %v673_v45 = vadd.f32 %v607_v38, %v507_v2  ;;  %v674_v54 = vadd.f32 %v606_v26, %v508_v30  ;;  %v758_v55 = vrot.slane %v696_v0, 2  ;;  %v954_v56 = vrot.slane %v862_v48, 3 }
  0x73   : > { %v328_v58 = vmul.f32 0.375, %v1409_v40  ;;  %v329_v1 = vmul.f32 0.375, %v1410_v6  ;;  %v370_v59 = vadd.f32 %v1826_v25, %v1736_v34  ;;  %v371_v60 = vadd.f32 %v1835_v50, %v1747_v14 }
  0x74   : > { %v839_v4 = vadd.f32 %v757_v5, %v673_v45  ;;  %v759_v36 = vsel %vm719_vm1, %v756_v29, %v758_v55  ;;  %v955_v3 = vsel %vm915_vm2, %v952_v41, %v954_v56  ;;  %v237_v7 = vunpack.c.l.bf16 %v1879_v46 }
  0x75   : > { %v840_v40 = vadd.f32 %v759_v36, %v674_v54  ;;  %v418_v12 = vadd.f32 %v370_v59, %v328_v58  ;;  %v419_v10 = vadd.f32 %v371_v60, %v329_v1  ;;  %v330_v6 = vmul.f32 0.375, %v234_v51  ;;  %v1935_v59 = vld [vmem:[%s1515_s13 + $0x9c] sm:$0xff]  }
  0x76   : > { %v1035_v34 = vadd.f32 %v953_v42, %v839_v4  ;;  %v1898_v25 = vmul.f32 0.125, %v237_v7  ;;  %v372_v14 = vadd.f32 %v327_v63, %v1772_v15  ;;  %v1413_v50 = vunpack.c.l.bf16 %v1891_v62 }
  0x77   : > { %v1036_v9 = vadd.f32 %v955_v3, %v840_v40  ;;  %v472_v11 = vadd.f32 %v418_v12, %v1869_v33  ;;  %v473_v52 = vadd.f32 %v419_v10, %v1871_v35  ;;  %v1414_v17 = vunpack.c.h.bf16 %v1891_v62 }
  0x78   : > { %v1371_v13 = vpack.c.bf16 %v1035_v34, %v1035_v34  ;;  %v420_v21 = vadd.f32 %v372_v14, %v330_v6  ;;  %v1908_v51 = vmul.f32 0.125, %v1413_v50  ;;  %v1910_v2 = vmul.f32 0.375, %v235_v39 }
  0x79   : > { %v1372_v15 = vpack.c.bf16 %v1036_v9, %v1036_v9  ;;  %v509_v63 = vmul.f32 0.125, %v472_v11  ;;  %v510_v22 = vmul.f32 0.125, %v473_v52  ;;  %v539_v20 = vmul.f32 0.375, %v472_v11 }
  0x7a   : > { %1203 = vst.msk [vmem:[%s1590_s17 + $0x38] sm:$0xf] %vm1171_vm3, %v1371_v13  ;;  %v540_v30 = vmul.f32 0.375, %v473_v52  ;;  %v474_v19 = vadd.f32 %v420_v21, %v1898_v25  ;;  %v1917_v27 = vmul.f32 0.125, %v1414_v17  ;;  %v1919_v44 = vmul.f32 0.375, %v236_v23 }
  0x7b   : > { %v1205_v39 = vsel %vm1596_vm5, %v1372_v15, %v1204_v49  ;;  %v608_v16 = vrot.slane %v539_v20, 1  ;;  %v760_v8 = vrot.slane %v539_v20, 2  ;;  %v956_v18 = vrot.slane %v509_v63, 3  ;;  %v1208_v21 = vld [vmem:[%s1590_s17 + $0x44] sm:$0xf] }
  0x7c   : > { %1206 = vst [vmem:[%s1590_s17 + $0x3c] sm:$0xf] %v1205_v39  ;;  %v609_v43 = vrot.slane %v540_v30, 1  ;;  %v761_v26 = vrot.slane %v540_v30, 2  ;;  %v957_v29 = vrot.slane %v510_v22, 3  ;;  %v697_v41 = vmul.f32 0.375, %v474_v19 }
  0x7d   : > { %v863_v0 = vmul.f32 0.125, %v474_v19  ;;  %v373_v48 = vadd.f32 %v328_v58, %v1785_v47  ;;  %v374_v23 = vadd.f32 %v329_v1, %v1787_v24  ;;  %v240_v37 = vunpack.c.l.bf16 %v1922_v28 }
  0x7e   : > { %v610_v38 = vsel %vm583_vm0, %v608_v16, %v609_v43  ;;  %v762_v5 = vsel %vm719_vm1, %v760_v8, %v761_v26  ;;  %v958_v42 = vsel %vm915_vm2, %v956_v18, %v957_v29  ;;  %v676_v46 = vadd.f32 %v609_v43, %v510_v22 }
  0x7f   : > { %v675_v45 = vadd.f32 %v610_v38, %v509_v63  ;;  %v763_v54 = vrot.slane %v697_v41, 2  ;;  %v959_v55 = vrot.slane %v863_v0, 3  ;;  %v421_v56 = vadd.f32 %v373_v48, %v1910_v2  ;;  %v1963_v48 = vld [vmem:[%s1515_s13 + $0xa4] sm:$0x1] }
  0x80   : > { %v422_v47 = vadd.f32 %v374_v23, %v1919_v44  ;;  %v1940_v24 = vmul.f32 0.125, %v240_v37  ;;  %v333_v58 = vmul.f32 0.375, %v237_v7  ;;  %v375_v1 = vadd.f32 %v330_v6, %v1814_v61 }
  0x81   : > { %v841_v60 = vadd.f32 %v762_v5, %v675_v45  ;;  %v764_v4 = vsel %vm719_vm1, %v761_v26, %v763_v54  ;;  %v960_v36 = vsel %vm915_vm2, %v957_v29, %v959_v55  ;;  %v475_v3 = vadd.f32 %v421_v56, %v1908_v51  ;;  %v1975_v56 = vld [vmem:[%s1515_s13 + $0xa8] sm:$0xff]  }
  0x82   : > { %v842_v40 = vadd.f32 %v764_v4, %v676_v46  ;;  %v476_v12 = vadd.f32 %v422_v47, %v1917_v27  ;;  %v423_v10 = vadd.f32 %v375_v1, %v333_v58  ;;  %v241_v34 = vunpack.c.l.bf16 %v1935_v59 }
  0x83   : > { %v1037_v14 = vadd.f32 %v958_v42, %v841_v60  ;;  %v511_v9 = vmul.f32 0.125, %v475_v3  ;;  %v541_v7 = vmul.f32 0.375, %v475_v3  ;;  %v242_v61 = vunpack.c.h.bf16 %v1935_v59 }
  0x84   : > { %v1038_v6 = vadd.f32 %v960_v36, %v842_v40  ;;  %v512_v11 = vmul.f32 0.125, %v476_v12  ;;  %v542_v52 = vmul.f32 0.375, %v476_v12  ;;  %v477_v13 = vadd.f32 %v423_v10, %v1940_v24 }
  0x85   : > { %v1373_v49 = vpack.c.bf16 %v1037_v14, %v1037_v14  ;;  %v611_v15 = vrot.slane %v541_v7, 1  ;;  %v765_v63 = vrot.slane %v541_v7, 2  ;;  %v961_v22 = vrot.slane %v511_v9, 3  ;;  %v1212_v14 = vld [vmem:[%s1590_s17 + $0x4c] sm:$0xf] }
  0x86   : > { %v1374_v20 = vpack.c.bf16 %v1038_v6, %v1038_v6  ;;  %v612_v30 = vrot.slane %v542_v52, 1  ;;  %v766_v19 = vrot.slane %v542_v52, 2  ;;  %v962_v39 = vrot.slane %v512_v11, 3 }
  0x87   : > { %1207 = vst.msk [vmem:[%s1590_s17 + $0x40] sm:$0xf] %vm1171_vm3, %v1373_v49  ;;  %v698_v16 = vmul.f32 0.375, %v477_v13  ;;  %v864_v8 = vmul.f32 0.125, %v477_v13  ;;  %v1953_v18 = vmul.f32 0.125, %v241_v34  ;;  %v1955_v43 = vmul.f32 0.125, %v242_v61 }
  0x88   : > { %v1209_v26 = vsel %vm1596_vm5, %v1374_v20, %v1208_v21  ;;  %v613_v29 = vsel %vm583_vm0, %v611_v15, %v612_v30  ;;  %v767_v41 = vsel %vm719_vm1, %v765_v63, %v766_v19  ;;  %v963_v0 = vsel %vm915_vm2, %v961_v22, %v962_v39  ;;  %v2006_v21 = vld [vmem:[%s1515_s13 + $0xb0] sm:$0x1] }
  0x89   : > { %1210 = vst [vmem:[%s1590_s17 + $0x44] sm:$0xf] %v1209_v26  ;;  %v677_v23 = vadd.f32 %v613_v29, %v511_v9  ;;  %v678_v38 = vadd.f32 %v612_v30, %v512_v11  ;;  %v768_v5 = vrot.slane %v698_v16, 2  ;;  %v964_v42 = vrot.slane %v864_v8, 3 }
  0x8a   : > { %v334_v46 = vmul.f32 0.375, %v1413_v50  ;;  %v335_v45 = vmul.f32 0.375, %v1414_v17  ;;  %v376_v54 = vadd.f32 %v1910_v2, %v1824_v31  ;;  %v377_v55 = vadd.f32 %v1919_v44, %v1833_v32 }
  0x8b   : > { %v843_v59 = vadd.f32 %v767_v41, %v677_v23  ;;  %v769_v47 = vsel %vm719_vm1, %v766_v19, %v768_v5  ;;  %v965_v1 = vsel %vm915_vm2, %v962_v39, %v964_v42  ;;  %v243_v60 = vunpack.c.l.bf16 %v1963_v48 }
  0x8c   : > { %v844_v50 = vadd.f32 %v769_v47, %v678_v38  ;;  %v424_v4 = vadd.f32 %v376_v54, %v334_v46  ;;  %v425_v62 = vadd.f32 %v377_v55, %v335_v45  ;;  %v336_v17 = vmul.f32 0.375, %v240_v37  ;;  %v2019_v54 = vld [vmem:[%s1515_s13 + $0xb4] sm:$0xff]  }
  0x8d   : > { %v1039_v31 = vadd.f32 %v963_v0, %v843_v59  ;;  %v1982_v2 = vmul.f32 0.125, %v243_v60  ;;  %v378_v32 = vadd.f32 %v333_v58, %v1856_v57  ;;  %v1417_v44 = vunpack.c.l.bf16 %v1975_v56 }
  0x8e   : > { %v1040_v36 = vadd.f32 %v965_v1, %v844_v50  ;;  %v478_v3 = vadd.f32 %v424_v4, %v1953_v18  ;;  %v479_v40 = vadd.f32 %v425_v62, %v1955_v43  ;;  %v1418_v12 = vunpack.c.h.bf16 %v1975_v56 }
  0x8f   : > { %v1375_v10 = vpack.c.bf16 %v1039_v31, %v1039_v31  ;;  %v426_v28 = vadd.f32 %v378_v32, %v336_v17  ;;  %v1992_v37 = vmul.f32 0.125, %v1417_v44  ;;  %v1994_v9 = vmul.f32 0.375, %v241_v34 }
  0x90   : > { %v1376_v57 = vpack.c.bf16 %v1040_v36, %v1040_v36  ;;  %v513_v58 = vmul.f32 0.125, %v478_v3  ;;  %v514_v7 = vmul.f32 0.125, %v479_v40  ;;  %v543_v6 = vmul.f32 0.375, %v478_v3 }
  0x91   : > { %1211 = vst.msk [vmem:[%s1590_s17 + $0x48] sm:$0xf] %vm1171_vm3, %v1375_v10  ;;  %v544_v11 = vmul.f32 0.375, %v479_v40  ;;  %v480_v52 = vadd.f32 %v426_v28, %v1982_v2  ;;  %v2001_v13 = vmul.f32 0.125, %v1418_v12  ;;  %v2003_v49 = vmul.f32 0.375, %v242_v61 }
  0x92   : > { %v1213_v34 = vsel %vm1596_vm5, %v1376_v57, %v1212_v14  ;;  %v614_v15 = vrot.slane %v543_v6, 1  ;;  %v770_v63 = vrot.slane %v543_v6, 2  ;;  %v966_v22 = vrot.slane %v513_v58, 3  ;;  %v1216_v28 = vld [vmem:[%s1590_s17 + $0x54] sm:$0xf] }
  0x93   : > { %1214 = vst [vmem:[%s1590_s17 + $0x4c] sm:$0xf] %v1213_v34  ;;  %v615_v20 = vrot.slane %v544_v11, 1  ;;  %v771_v30 = vrot.slane %v544_v11, 2  ;;  %v967_v19 = vrot.slane %v514_v7, 3  ;;  %v699_v39 = vmul.f32 0.375, %v480_v52 }
  0x94   : > { %v865_v16 = vmul.f32 0.125, %v480_v52  ;;  %v379_v8 = vadd.f32 %v334_v46, %v1869_v33  ;;  %v380_v61 = vadd.f32 %v335_v45, %v1871_v35  ;;  %v246_v26 = vunpack.c.l.bf16 %v2006_v21 }
  0x95   : > { %v616_v29 = vsel %vm583_vm0, %v614_v15, %v615_v20  ;;  %v772_v41 = vsel %vm719_vm1, %v770_v63, %v771_v30  ;;  %v968_v0 = vsel %vm915_vm2, %v966_v22, %v967_v19  ;;  %v680_v48 = vadd.f32 %v615_v20, %v514_v7 }
  0x96   : > { %v679_v23 = vadd.f32 %v616_v29, %v513_v58  ;;  %v773_v38 = vrot.slane %v699_v39, 2  ;;  %v969_v5 = vrot.slane %v865_v16, 3  ;;  %v427_v42 = vadd.f32 %v379_v8, %v1994_v9  ;;  %v2047_v8 = vld [vmem:[%s1515_s13 + $0xbc] sm:$0x1] }
  0x97   : > { %v428_v33 = vadd.f32 %v380_v61, %v2003_v49  ;;  %v2024_v35 = vmul.f32 0.125, %v246_v26  ;;  %v339_v46 = vmul.f32 0.375, %v243_v60  ;;  %v381_v45 = vadd.f32 %v336_v17, %v1898_v25 }
  0x98   : > { %v845_v55 = vadd.f32 %v772_v41, %v679_v23  ;;  %v774_v59 = vsel %vm719_vm1, %v771_v30, %v773_v38  ;;  %v970_v47 = vsel %vm915_vm2, %v967_v19, %v969_v5  ;;  %v481_v1 = vadd.f32 %v427_v42, %v1992_v37  ;;  %v2055_v23 = vld [vmem:[%s1515_s13 + $0xc0] sm:$0xff]  }
  0x99   : > { %v846_v50 = vadd.f32 %v774_v59, %v680_v48  ;;  %v482_v4 = vadd.f32 %v428_v33, %v2001_v13  ;;  %v429_v62 = vadd.f32 %v381_v45, %v339_v46  ;;  %v247_v31 = vunpack.c.l.bf16 %v2019_v54 }
  0x9a   : > { %v1041_v32 = vadd.f32 %v968_v0, %v845_v55  ;;  %v515_v36 = vmul.f32 0.125, %v481_v1  ;;  %v545_v60 = vmul.f32 0.375, %v481_v1  ;;  %v248_v25 = vunpack.c.h.bf16 %v2019_v54 }
  0x9b   : > { %v1042_v17 = vadd.f32 %v970_v47, %v846_v50  ;;  %v516_v3 = vmul.f32 0.125, %v482_v4  ;;  %v546_v40 = vmul.f32 0.375, %v482_v4  ;;  %v483_v10 = vadd.f32 %v429_v62, %v2024_v35 }
  0x9c   : > { %v1377_v14 = vpack.c.bf16 %v1041_v32, %v1041_v32  ;;  %v617_v57 = vrot.slane %v545_v60, 1  ;;  %v775_v58 = vrot.slane %v545_v60, 2  ;;  %v971_v7 = vrot.slane %v515_v36, 3  ;;  %v1220_v32 = vld [vmem:[%s1590_s17 + $0x5c] sm:$0xf] }
  0x9d   : > { %v1378_v6 = vpack.c.bf16 %v1042_v17, %v1042_v17  ;;  %v618_v11 = vrot.slane %v546_v40, 1  ;;  %v776_v52 = vrot.slane %v546_v40, 2  ;;  %v972_v34 = vrot.slane %v516_v3, 3 }
  0x9e   : > { %1215 = vst.msk [vmem:[%s1590_s17 + $0x50] sm:$0xf] %vm1171_vm3, %v1377_v14  ;;  %v700_v15 = vmul.f32 0.375, %v483_v10  ;;  %v866_v63 = vmul.f32 0.125, %v483_v10  ;;  %v340_v22 = vmul.f32 0.375, %v1417_v44  ;;  %v341_v20 = vmul.f32 0.375, %v1418_v12 }
  0x9f   : > { %v1217_v30 = vsel %vm1596_vm5, %v1378_v6, %v1216_v28  ;;  %v619_v19 = vsel %vm583_vm0, %v617_v57, %v618_v11  ;;  %v777_v39 = vsel %vm719_vm1, %v775_v58, %v776_v52  ;;  %v973_v16 = vsel %vm915_vm2, %v971_v7, %v972_v34 }
  0xa0   : > { %1218 = vst [vmem:[%s1590_s17 + $0x54] sm:$0xf] %v1217_v30  ;;  %v681_v61 = vadd.f32 %v619_v19, %v515_v36  ;;  %v682_v29 = vadd.f32 %v618_v11, %v516_v3  ;;  %v778_v41 = vrot.slane %v700_v15, 2  ;;  %v974_v44 = vrot.slane %v866_v63, 3 }
  0xa1   : > { %v382_v56 = vadd.f32 %v1994_v9, %v1908_v51  ;;  %v383_v12 = vadd.f32 %v2003_v49, %v1917_v27  ;;  %v439_v0 = vmul.f32 0.125, %v247_v31  ;;  %v440_v48 = vmul.f32 0.125, %v248_v25 }
  0xa2   : > { %v847_v38 = vadd.f32 %v777_v39, %v681_v61  ;;  %v779_v5 = vsel %vm719_vm1, %v776_v52, %v778_v41  ;;  %v975_v42 = vsel %vm915_vm2, %v972_v34, %v974_v44  ;;  %v249_v54 = vunpack.c.l.bf16 %v2047_v8 }
  0xa3   : > { %v848_v33 = vadd.f32 %v779_v5, %v682_v29  ;;  %v430_v45 = vadd.f32 %v382_v56, %v340_v22  ;;  %v431_v55 = vadd.f32 %v383_v12, %v341_v20  ;;  %v342_v51 = vmul.f32 0.375, %v246_v26 }
  0xa4   : > { %v1043_v9 = vadd.f32 %v973_v16, %v847_v38  ;;  %v384_v27 = vadd.f32 %v339_v46, %v1940_v24  ;;  %v441_v49 = vmul.f32 0.125, %v249_v54  ;;  %v1421_v59 = vunpack.c.l.bf16 %v2055_v23 }
  0xa5   : > { %v1044_v47 = vadd.f32 %v975_v42, %v848_v33  ;;  %v484_v1 = vadd.f32 %v439_v0, %v430_v45  ;;  %v485_v50 = vadd.f32 %v440_v48, %v431_v55  ;;  %v1422_v4 = vunpack.c.h.bf16 %v2055_v23 }
  0xa6   : > { %v1379_v62 = vpack.c.bf16 %v1043_v9, %v1043_v9  ;;  %v432_v36 = vadd.f32 %v384_v27, %v342_v51  ;;  %v2066_v60 = vmul.f32 0.375, %v247_v31  ;;  %v2068_v21 = vmul.f32 0.375, %v248_v25 }
  0xa7   : > { %v1380_v26 = vpack.c.bf16 %v1044_v47, %v1044_v47  ;;  %v517_v17 = vmul.f32 0.125, %v484_v1  ;;  %v518_v24 = vmul.f32 0.125, %v485_v50  ;;  %v547_v46 = vmul.f32 0.375, %v484_v1 }
  0xa8   : > { %1219 = vst.msk [vmem:[%s1590_s17 + $0x58] sm:$0xf] %vm1171_vm3, %v1379_v62  ;;  %v548_v3 = vmul.f32 0.375, %v485_v50  ;;  %v486_v40 = vadd.f32 %v441_v49, %v432_v36  ;;  %v385_v10 = vadd.f32 %v340_v22, %v1953_v18  ;;  %v386_v14 = vadd.f32 %v341_v20, %v1955_v43  ;;  %v2082_v43 = vld [vmem:[%s1515_s13 + $0xc8] sm:$0x1]  ;;  %v199_v49 = vld [vmem:[%s1515_s13 + $0xcc] sm:$0xff]  }
  0xa9   : > { %v1221_v28 = vsel %vm1596_vm5, %v1380_v26, %v1220_v32  ;;  %v620_v31 = vrot.slane %v547_v46, 1  ;;  %v780_v57 = vrot.slane %v547_v46, 2  ;;  %v976_v25 = vrot.slane %v517_v17, 3  ;;  %v1224_v50 = vld [vmem:[%s1590_s17 + $0x64] sm:$0xf] }
  0xaa   : > { %1222 = vst [vmem:[%s1590_s17 + $0x5c] sm:$0xf] %v1221_v28  ;;  %v621_v58 = vrot.slane %v548_v3, 1  ;;  %v781_v7 = vrot.slane %v548_v3, 2  ;;  %v977_v6 = vrot.slane %v518_v24, 3  ;;  %v701_v11 = vmul.f32 0.375, %v486_v40 }
  0xab   : > { %v867_v52 = vmul.f32 0.125, %v486_v40  ;;  %v433_v34 = vadd.f32 %v385_v10, %v2066_v60  ;;  %v434_v15 = vadd.f32 %v386_v14, %v2068_v21  ;;  %v442_v18 = vmul.f32 0.125, %v1421_v59 }
  0xac   : > { %v622_v63 = vsel %vm583_vm0, %v620_v31, %v621_v58  ;;  %v782_v22 = vsel %vm719_vm1, %v780_v57, %v781_v7  ;;  %v978_v20 = vsel %vm915_vm2, %v976_v25, %v977_v6  ;;  %v684_v30 = vadd.f32 %v621_v58, %v518_v24  ;;  %v201_v58 = vld [vmem:[%s1515_s13 + $0xd4] sm:$0x1] }
  0xad   : > { %v683_v19 = vadd.f32 %v622_v63, %v517_v17  ;;  %v783_v39 = vrot.slane %v701_v11, 2  ;;  %v979_v16 = vrot.slane %v867_v52, 3  ;;  %v443_v8 = vmul.f32 0.125, %v1422_v4 }
  0xae   : > { %v487_v61 = vadd.f32 %v442_v18, %v433_v34  ;;  %v252_v29 = vunpack.c.l.bf16 %v2082_v43  ;;  %v345_v41 = vmul.f32 0.375, %v249_v54  ;;  %v387_v44 = vadd.f32 %v342_v51, %v1982_v2 }
  0xaf   : > { %v849_v56 = vadd.f32 %v782_v22, %v683_v19  ;;  %v784_v12 = vsel %vm719_vm1, %v781_v7, %v783_v39  ;;  %v980_v0 = vsel %vm915_vm2, %v977_v6, %v979_v16  ;;  %v488_v48 = vadd.f32 %v443_v8, %v434_v15 }
  0xb0   : > { %v850_v38 = vadd.f32 %v784_v12, %v684_v30  ;;  %v519_v5 = vmul.f32 0.125, %v487_v61  ;;  %v549_v42 = vmul.f32 0.375, %v487_v61  ;;  %v435_v33 = vadd.f32 %v387_v44, %v345_v41  ;;  %v1228_v12 = vld [vmem:[%s1590_s17 + $0x6c] sm:$0xf] }
  0xb1   : > { %v1045_v45 = vadd.f32 %v978_v20, %v849_v56  ;;  %v520_v55 = vmul.f32 0.125, %v488_v48  ;;  %v550_v9 = vmul.f32 0.375, %v488_v48  ;;  %v444_v27 = vmul.f32 0.125, %v252_v29 }
  0xb2   : > { %v1046_v54 = vadd.f32 %v980_v0, %v850_v38  ;;  %v623_v47 = vrot.slane %v549_v42, 1  ;;  %v785_v2 = vrot.slane %v549_v42, 2  ;;  %v981_v51 = vrot.slane %v519_v5, 3 }
  0xb3   : > { %v1381_v1 = vpack.c.bf16 %v1045_v45, %v1045_v45  ;;  %v624_v62 = vrot.slane %v550_v9, 1  ;;  %v786_v32 = vrot.slane %v550_v9, 2  ;;  %v982_v36 = vrot.slane %v520_v55, 3 }
  0xb4   : > { %v1382_v26 = vpack.c.bf16 %v1046_v54, %v1046_v54  ;;  %v489_v17 = vadd.f32 %v444_v27, %v435_v33  ;;  %v253_v24 = vunpack.c.l.bf16 %v199_v49  ;;  %v254_v46 = vunpack.c.h.bf16 %v199_v49 }
  0xb5   : > { %1223 = vst.msk [vmem:[%s1590_s17 + $0x60] sm:$0xf] %vm1171_vm3, %v1381_v1  ;;  %v625_v3 = vsel %vm583_vm0, %v623_v47, %v624_v62  ;;  %v787_v40 = vsel %vm719_vm1, %v785_v2, %v786_v32  ;;  %v983_v10 = vsel %vm915_vm2, %v981_v51, %v982_v36  ;;  %v686_v14 = vadd.f32 %v624_v62, %v520_v55 }
  0xb6   : > { %v1225_v28 = vsel %vm1596_vm5, %v1382_v26, %v1224_v50  ;;  %v685_v31 = vadd.f32 %v625_v3, %v519_v5  ;;  %v702_v57 = vmul.f32 0.375, %v489_v17  ;;  %v868_v25 = vmul.f32 0.125, %v489_v17  ;;  %v1232_v3 = vld [vmem:[%s1590_s17 + $0x74] sm:$0xf] }
  0xb7   : > { %1226 = vst [vmem:[%s1590_s17 + $0x64] sm:$0xf] %v1225_v28  ;;  %v388_v7 = vadd.f32 %v2066_v60, %v1992_v37  ;;  %v389_v6 = vadd.f32 %v2068_v21, %v2001_v13  ;;  %v391_v11 = vmul.f32 0.375, %v1421_v59  ;;  %v392_v52 = vmul.f32 0.375, %v1422_v4 }
  0xb8   : > { %v851_v34 = vadd.f32 %v787_v40, %v685_v31  ;;  %v788_v15 = vrot.slane %v702_v57, 2  ;;  %v984_v18 = vrot.slane %v868_v25, 3  ;;  %v445_v43 = vmul.f32 0.125, %v253_v24 }
  0xb9   : > { %v436_v63 = vadd.f32 %v391_v11, %v388_v7  ;;  %v437_v22 = vadd.f32 %v392_v52, %v389_v6  ;;  %v446_v20 = vmul.f32 0.125, %v254_v46  ;;  %v255_v30 = vunpack.c.l.bf16 %v201_v58 }
  0xba   : > { %v1047_v37 = vadd.f32 %v983_v10, %v851_v34  ;;  %v789_v60 = vsel %vm719_vm1, %v786_v32, %v788_v15  ;;  %v985_v13 = vsel %vm915_vm2, %v982_v36, %v984_v18  ;;  %v390_v59 = vadd.f32 %v345_v41, %v2024_v35 }
  0xbb   : > { %v852_v21 = vadd.f32 %v789_v60, %v686_v14  ;;  %v490_v23 = vadd.f32 %v445_v43, %v436_v63  ;;  %v491_v4 = vadd.f32 %v446_v20, %v437_v22  ;;  %v393_v19 = vmul.f32 0.375, %v252_v29 }
  0xbc   : > { %v1383_v39 = vpack.c.bf16 %v1047_v37, %v1047_v37  ;;  %v447_v16 = vmul.f32 0.125, %v255_v30 }
  0xbd   : > { %v1048_v8 = vadd.f32 %v985_v13, %v852_v21  ;;  %v521_v61 = vmul.f32 0.125, %v490_v23  ;;  %v522_v44 = vmul.f32 0.125, %v491_v4  ;;  %v551_v56 = vmul.f32 0.375, %v490_v23 }
  0xbe   : > { %1227 = vst.msk [vmem:[%s1590_s17 + $0x68] sm:$0xf] %vm1171_vm3, %v1383_v39  ;;  %v552_v0 = vmul.f32 0.375, %v491_v4  ;;  %v438_v48 = vadd.f32 %v393_v19, %v390_v59 }
  0xbf   : > { %v1384_v38 = vpack.c.bf16 %v1048_v8, %v1048_v8  ;;  %v626_v5 = vrot.slane %v551_v56, 1  ;;  %v790_v42 = vrot.slane %v551_v56, 2  ;;  %v986_v35 = vrot.slane %v521_v61, 3 }
  0xc0   : > { %v627_v41 = vrot.slane %v552_v0, 1  ;;  %v791_v33 = vrot.slane %v552_v0, 2  ;;  %v987_v45 = vrot.slane %v522_v44, 3  ;;  %v492_v29 = vadd.f32 %v447_v16, %v438_v48 }
  0xc1   : > { %v1229_v55 = vsel %vm1596_vm5, %v1384_v38, %v1228_v12 }
  0xc2   : > { %1230 = vst [vmem:[%s1590_s17 + $0x6c] sm:$0xf] %v1229_v55  ;;  %v628_v9 = vsel %vm583_vm0, %v626_v5, %v627_v41  ;;  %v792_v27 = vsel %vm719_vm1, %v790_v42, %v791_v33  ;;  %v703_v54 = vmul.f32 0.375, %v492_v29  ;;  %v869_v47 = vmul.f32 0.125, %v492_v29 }
  0xc3   : > { %v687_v49 = vadd.f32 %v628_v9, %v521_v61  ;;  %v988_v2 = vsel %vm915_vm2, %v986_v35, %v987_v45  ;;  %v688_v51 = vadd.f32 %v627_v41, %v522_v44 }
  0xc4   : > { %v793_v50 = vrot.slane %v703_v54, 2  ;;  %v989_v62 = vrot.slane %v869_v47, 3 }
  0xc5   : > { %v853_v1 = vadd.f32 %v792_v27, %v687_v49 }
  0xc6   : > { %v794_v36 = vsel %vm719_vm1, %v791_v33, %v793_v50  ;;  %v990_v26 = vsel %vm915_vm2, %v987_v45, %v989_v62 }
  0xc7   : > { %v1049_v32 = vadd.f32 %v988_v2, %v853_v1  ;;  %v854_v17 = vadd.f32 %v794_v36, %v688_v51 }
  0xc9   : > { %v1385_v24 = vpack.c.bf16 %v1049_v32, %v1049_v32  ;;  %v1050_v46 = vadd.f32 %v990_v26, %v854_v17 }
  0xcb   : > { %1231 = vst.msk [vmem:[%s1590_s17 + $0x70] sm:$0xf] %vm1171_vm3, %v1385_v24  ;;  %v1386_v40 = vpack.c.bf16 %v1050_v46, %v1050_v46 }
  0xcd   : > { %v1233_v10 = vsel %vm1596_vm5, %v1386_v40, %v1232_v3 }
  0xce   : > { %1234 = vst [vmem:[%s1590_s17 + $0x74] sm:$0xf] %v1233_v10 }
  0xcf PF: > { %s11_s8 = sadd.s32 1, %s1479_s8   ;;  %s2145_s6 = smov %s1475_s7 }
  0xd0   : > { %p8_p5 = scmp.ge.s32.totalorder %s11_s8, 4   ;;  %s2146_s7 = smov %s2148_s9 }
  0xd2   :  { %10 = sbr.rel (!%p8_p5) target bundleno = 2 (0x2), region = 54 }

// kernel: res_block_forward.7
= control target key start
LH: loop header
LB: loop body
LE: loop exit
PB: predicated region body
PF: predicated region fallthrough
CT: control target
= control target key end

     0   :  { %s670_s1 = inlined_call_operand.vmem [shape: bf16[128,128], index: 1, kind: input, shape index: {}]   ;;  %s671_s0 = inlined_call_operand.vmem [shape: bf16[128,128], index: 0, kind: input, shape index: {}]   ;;  %s672_s2 = inlined_call_operand.vmem [shape: bf16[128,128], index: 2, kind: output, shape index: {}]  }
   0x1   :  { %v567_v0 = vld [vmem:[%s670_s1] sm:$0xff]   ;;  %v568_v1 = vld [vmem:[%s670_s1 + $0x8] sm:$0xff]   ;;  %v569_v2 = vld [vmem:[%s670_s1 + $0x10] sm:$0xff]  }
   0x2   :  { %519 = vmatprep.subr.bf16.mxu0 %v567_v0  ;;  %551 = vmatprep.subr.bf16.mxu1 %v567_v0  ;;  %v570_v3 = vld [vmem:[%s670_s1 + $0x18] sm:$0xff]   ;;  %v575_v4 = vld [vmem:[%s671_s0] sm:$0xff]   ;;  %v572_v7 = vld [vmem:[%s670_s1 + $0x28] sm:$0xff]  }
   0x3   :  { %520 = vmatpush3.bf16.msra.mxu0 %v567_v0  ;;  %559 = vmatpush3.bf16.msra.mxu1 %v567_v0  ;;  %v576_v5 = vld [vmem:[%s671_s0 + $0x20] sm:$0xff]   ;;  %v573_v8 = vld [vmem:[%s670_s1 + $0x30] sm:$0xff]   ;;  %v574_v9 = vld [vmem:[%s670_s1 + $0x38] sm:$0xff]  }
   0x4   :  { %521 = vmatprep.subr.bf16.mxu0 %v568_v1  ;;  %552 = vmatprep.subr.bf16.mxu1 %v568_v1  ;;  %v571_v6 = vld [vmem:[%s670_s1 + $0x20] sm:$0xff]   ;;  %v577_v10 = vld [vmem:[%s671_s0 + $0x8] sm:$0xff]   ;;  %v579_v12 = vld [vmem:[%s671_s0 + $0x10] sm:$0xff]  }
   0x5   :  { %535 = vmatprep.mubr.bf16.mxu0 %v575_v4  ;;  %543 = vmatprep.mubr.bf16.mxu1 %v576_v5  ;;  %v578_v11 = vld [vmem:[%s671_s0 + $0x28] sm:$0xff]   ;;  %v580_v13 = vld [vmem:[%s671_s0 + $0x30] sm:$0xff]   ;;  %v581_v14 = vld [vmem:[%s671_s0 + $0x18] sm:$0xff]  }
   0x6   :  { %v582_v15 = vld [vmem:[%s671_s0 + $0x38] sm:$0xff]  }
   0x7   :  { %522 = vmatpush3.bf16.msra.mxu0 %v568_v1  ;;  %560 = vmatpush3.bf16.msra.mxu1 %v568_v1 }
   0x8   :  { %523 = vmatprep.subr.bf16.mxu0 %v569_v2  ;;  %553 = vmatprep.subr.bf16.mxu1 %v569_v2 }
   0xb   :  { %524 = vmatpush3.bf16.msra.mxu0 %v569_v2  ;;  %561 = vmatpush3.bf16.msra.mxu1 %v569_v2 }
   0xc   :  { %525 = vmatprep.subr.bf16.mxu0 %v570_v3  ;;  %554 = vmatprep.subr.bf16.mxu1 %v570_v3 }
   0xf   :  { %526 = vmatpush3.bf16.msra.mxu0 %v570_v3  ;;  %562 = vmatpush3.bf16.msra.mxu1 %v570_v3 }
  0x10   :  { %527 = vmatprep.subr.bf16.mxu0 %v571_v6  ;;  %555 = vmatprep.subr.bf16.mxu1 %v571_v6 }
  0x13   :  { %528 = vmatpush3.bf16.msra.mxu0 %v571_v6  ;;  %563 = vmatpush3.bf16.msra.mxu1 %v571_v6 }
  0x14   :  { %529 = vmatprep.subr.bf16.mxu0 %v572_v7  ;;  %556 = vmatprep.subr.bf16.mxu1 %v572_v7 }
  0x17   :  { %530 = vmatpush3.bf16.msra.mxu0 %v572_v7  ;;  %564 = vmatpush3.bf16.msra.mxu1 %v572_v7 }
  0x18   :  { %531 = vmatprep.subr.bf16.mxu0 %v573_v8  ;;  %557 = vmatprep.subr.bf16.mxu1 %v573_v8 }
  0x1b   :  { %532 = vmatpush3.bf16.msra.mxu0 %v573_v8  ;;  %565 = vmatpush3.bf16.msra.mxu1 %v573_v8 }
  0x1c   :  { %533 = vmatprep.subr.bf16.mxu0 %v574_v9  ;;  %558 = vmatprep.subr.bf16.mxu1 %v574_v9 }
  0x1f   :  { %534 = vmatpush3.bf16.msra.mxu0 %v574_v9  ;;  %566 = vmatpush3.bf16.msra.mxu1 %v574_v9 }
  0x22   :  { %536 = vmatmul.mubr.bf16.vlgmr.msra.gmra.mrb[0].mxu0 %v577_v10  ;;  %544 = vmatmul.mubr.bf16.vlgmr.msra.gmra.mrb[0].mxu1 %v578_v11 }
  0x23   :  { %539 = vmatprep.mubr.bf16.mxu0 %v579_v12  ;;  %547 = vmatprep.mubr.bf16.mxu1 %v580_v13 }
  0x2a   :  { %540 = vmatmul.mubr.bf16.gmra.mrb[4].mxu0 %v581_v14  ;;  %548 = vmatmul.mubr.bf16.gmra.mrb[4].mxu1 %v582_v15 }
  0xf5   :  { %v537_v16 = vpop.f32.mrb[0].mxu0  ;;  %v545_v17 = vpop.f32.mrb[0].mxu1 }
  0xf6   :  { %v210_v18 = vpop.f32.mrb[1].mxu0  ;;  %v242_v19 = vpop.f32.mrb[1].mxu1 }
  0xf7   :  { %v538_v20 = vpop.f32.mrb[2].mxu0  ;;  %v546_v21 = vpop.f32.mrb[2].mxu1 }
  0xf8   :  { %v464_v22 = vpack.c.bf16 %v538_v20, %v537_v16  ;;  %v484_v23 = vpack.c.bf16 %v546_v21, %v545_v17  ;;  %v213_v24 = vpop.f32.mrb[3].mxu0  ;;  %v245_v25 = vpop.f32.mrb[3].mxu1 }
  0xf9   :  { %v459_v26 = vpack.c.bf16 %v213_v24, %v210_v18  ;;  %v479_v27 = vpack.c.bf16 %v245_v25, %v242_v19 }
  0xfa   :  { %496 = vst [vmem:[%s672_s2 + $0x8] sm:$0xff] %v464_v22   ;;  %500 = vst [vmem:[%s672_s2 + $0x28] sm:$0xff] %v484_v23  }
  0xfb   :  { %460 = vst [vmem:[%s672_s2] sm:$0xff] %v459_v26   ;;  %499 = vst [vmem:[%s672_s2 + $0x20] sm:$0xff] %v479_v27  }
  0xfd   :  { %v541_v28 = vpop.f32.mrb[4].mxu0  ;;  %v549_v29 = vpop.f32.mrb[4].mxu1 }
  0xfe   :  { %v226_v30 = vpop.f32.mrb[5].mxu0  ;;  %v258_v31 = vpop.f32.mrb[5].mxu1 }
  0xff   :  { %v542_v32 = vpop.f32.mrb[6].mxu0  ;;  %v550_v33 = vpop.f32.mrb[6].mxu1 }
 0x100   :  { %v474_v34 = vpack.c.bf16 %v542_v32, %v541_v28  ;;  %v494_v35 = vpack.c.bf16 %v550_v33, %v549_v29  ;;  %v229_v36 = vpop.f32.mrb[7].mxu0  ;;  %v261_v37 = vpop.f32.mrb[7].mxu1 }
 0x101   :  { %v469_v38 = vpack.c.bf16 %v229_v36, %v226_v30  ;;  %v489_v39 = vpack.c.bf16 %v261_v37, %v258_v31 }
 0x102   :  { %498 = vst [vmem:[%s672_s2 + $0x18] sm:$0xff] %v474_v34   ;;  %502 = vst [vmem:[%s672_s2 + $0x38] sm:$0xff] %v494_v35  }
 0x103   :  { %497 = vst [vmem:[%s672_s2 + $0x10] sm:$0xff] %v469_v38   ;;  %501 = vst [vmem:[%s672_s2 + $0x30] sm:$0xff] %v489_v39  }

// kernel: res_block_forward.5
= control target key start
LH: loop header
LB: loop body
LE: loop exit
PB: predicated region body
PF: predicated region fallthrough
CT: control target
= control target key end

     0   :  { %s4837_s12 = smov 0   ;;  %s4839_s13 = smov 0   ;;  %s5872_s0 = inlined_call_operand.vmem [shape: bf16[2,326,4], index: 0, kind: input, shape index: {}]   ;;  %s5873_s1 = inlined_call_operand.vmem [shape: bf16[9,4,128], index: 1, kind: input, shape index: {}]   ;;  %s5874_s2 = inlined_call_operand.vmem [shape: f32[1,128], index: 2, kind: input, shape index: {}]   ;;  %s5875_s3 = inlined_call_operand.vmem [shape: bf16[2,288,128], index: 3, kind: output, shape index: {}]  }
   0x1   :  { %s4841_s14 = smov 0  }
   0x2 LB: > { %s25_s15 = sadd.s32 1, %s4811_s13  ;;  %p3553_p0 = scmp.ge.s32.totalorder %s4815_s14, 1  ;;  %s4815_s14 = sphi %s4841_s14, %s13_s14   ;;  %s4811_s13 = sphi %s4839_s13, %s5944_s13   ;;  %s4807_s12 = sphi %s4837_s12, %s5943_s12  }
   0x3   : > { %p27_p1 = scmp.ge.s32.totalorder %s25_s15, 2  ;;  %p168_p2 = scmp.lt.s32.totalorder %s4815_s14, 3 }
   0x5   : > { %s5946_s15 = smov (%p27_p1, %s25_s15), 0  ;;  %p169_p3 = pnand %p3553_p0, %p168_p2 }
   0x7   : > { %172 = sbr.rel (%p169_p3) target bundleno = 578 (0x242), region = 32 }
   0xe   : > { %vm564_vm0 = vcmask 1041408   ;;  %v4858_v0 = vld [vmem:[%s5873_s1 + $0x8] sm:$0x3]  ;;  %v3556_v1 = vld [vmem:[%s5873_s1 + $0x2] sm:$0x3]  ;;  %p202_p4 = scmp.lt.s32.totalorder %s4807_s12, 1 }
   0xf   : > { %4738 = vmatprep.subr.msk.bf16.mxu0 %vm564_vm0, %v4858_v0  ;;  %4734 = vmatprep.subr.msk.bf16.mxu1 %vm564_vm0, %v3556_v1  ;;  %v4868_v2 = vsel %vm564_vm0, %v4858_v0, 0  ;;  %v566_v3 = vsel %vm564_vm0, %v3556_v1, 0  ;;  %v3671_v4 = vld [vmem:[%s5873_s1 + $0xa] sm:$0x3]  ;;  %v264_v5 = vld [vmem:[%s5873_s1] sm:$0x3] }
  0x10   : > { %5907 = vst [vmem:[#allocation2_spill] sm:$0xff] %v4868_v2  ;;  %4255 = vmatpush3.bf16.msra.mxu0 %v4868_v2  ;;  %4103 = vmatpush3.bf16.msra.mxu1 %v566_v3  ;;  %s5948_s12 = smov (!%p202_p4, %s4807_s12), 1  ;;  %vm360_vm1 = vsmask.f32 7424  ;;  %vm1507_vm2 = vsmask.f32 6400 }
  0x11   : > { %4740 = vmatprep.subr.msk.bf16.mxu0 %vm564_vm0, %v3671_v4  ;;  %s4744_s24 = smul.u32 164, %s5948_s12  ;;  %4735 = vmatprep.subr.msk.bf16.mxu1 %vm564_vm0, %v264_v5  ;;  %vm509_vm3 = vcmask 31744   ;;  %v1958_v8 = vsel %vm564_vm0, %v3671_v4, 0  ;;  %v782_v10 = vsel %vm564_vm0, %v264_v5, 0  ;;  %v4933_v36 = vld [vmem:[%s5873_s1 + $0x4] sm:$0x3] }
  0x12   : > { %v4964_v51 = vld [vmem:[%s5873_s1 + $0xc] sm:$0x3]  ;;  %vm1865_vm4 = vcmask 1045504   ;;  %vm2409_vm5 = vsmask.f32 5376  ;;  %vm963_vm6 = vcmask 1046528  }
  0x13   : > { %s4886_s27 = scalar_lea.vmem %s5872_s0, %s4744_s24  ;;  %vm2767_vm7 = vcmask 1044480   ;;  %s4745_s17 = smul.u32 144, %s5948_s12 }
  0x14   : > { %v4889_v6 = vld [vmem:[%s4886_s27] sm:$0xff]   ;;  %v4892_v7 = vld [vmem:[%s4886_s27 + $0x8] sm:$0xff]   ;;  %v4896_v9 = vld [vmem:[%s4886_s27 + $0x10] sm:$0xff]  }
  0x15   : > { %v362_v11 = vshrl.u32 %v4889_v6, 16  ;;  %v364_v12 = vshll.u32 %v4889_v6, 16  ;;  %v369_v13 = vshll.u32 %v4892_v7, 16  ;;  %v373_v14 = vshrl.u32 %v4892_v7, 16  ;;  %v4910_v17 = vld [vmem:[%s4886_s27 + $0x18] sm:$0xff]   ;;  %v4913_v18 = vld [vmem:[%s4886_s27 + $0x20] sm:$0xff]   ;;  %s5799_s20 = scalar_lea.vmem %s5875_s3, %s4745_s17 }
  0x16   : > { %v4904_v15 = vshll.u32 %v4896_v9, 16  ;;  %v4907_v16 = vshrl.u32 %v4896_v9, 16  ;;  %v4919_v26 = vshll.u32 %v4910_v17, 16  ;;  %v4922_v30 = vshrl.u32 %v4910_v17, 16  ;;  %v4925_v31 = vld [vmem:[%s4886_s27 + $0x28] sm:$0xff]   ;;  %v4942_v41 = vld [vmem:[%s4886_s27 + $0x30] sm:$0xff]  }
  0x17   : > { %v366_v19 = vrot.slane %v364_v12, 1  ;;  %v371_v20 = vrot.slane %v369_v13, 1  ;;  %v1508_v21 = vrot.slane %v373_v14, 1  ;;  %v1509_v22 = vrot.slane %v369_v13, 2  ;;  %v4959_v50 = vld [vmem:[%s4886_s27 + $0x38] sm:$0xff]   ;;  %v4987_v63 = vld [vmem:[%s4886_s27 + $0x40] sm:$0xff]  }
  0x18   : > { %v1511_v23 = vrot.slane %v4907_v16, 1  ;;  %v1512_v24 = vrot.slane %v4904_v15, 2  ;;  %v379_v25 = vrot.slane %v4904_v15, 1  ;;  %v1516_v33 = vrot.slane %v4919_v26, 2 }
  0x19   : > { %v367_v27 = vor.u32 %v366_v19, %v362_v11  ;;  %v375_v28 = vor.u32 %v373_v14, %v371_v20  ;;  %v1510_v29 = vor.u32 %v1509_v22, %v1508_v21  ;;  %v387_v35 = vrot.slane %v4919_v26, 1 }
  0x1a   : > { %v1513_v32 = vor.u32 %v1512_v24, %v1511_v23  ;;  %v383_v34 = vor.u32 %v4907_v16, %v379_v25  ;;  %v1515_v39 = vrot.slane %v4922_v30, 1  ;;  %v4939_v40 = vshll.u32 %v4913_v18, 16  ;;  %v5014_v23 = vld [vmem:[%s4886_s27 + $0x48] sm:$0xff]  }
  0x1b   : > { %v372_v37 = vsel %vm360_vm1, %v367_v27, %v371_v20  ;;  %v380_v38 = vsel %vm360_vm1, %v375_v28, %v379_v25  ;;  %v4948_v44 = vshrl.u32 %v4913_v18, 16  ;;  %v391_v45 = vor.u32 %v4922_v30, %v387_v35  ;;  %v5021_v28 = vld [vmem:[%s4886_s27 + $0x50] sm:$0xff]  }
  0x1c   : > { %4104 = vmatprep.mubr.msk.bf16.mxu1 %vm509_vm3, %v372_v37  ;;  %v1514_v42 = vsel %vm1507_vm2, %v1510_v29, %v1513_v32  ;;  %v388_v43 = vsel %vm360_vm1, %v383_v34, %v387_v35  ;;  %v1517_v46 = vor.u32 %v1516_v33, %v1515_v39  ;;  %v1520_v47 = vrot.slane %v4939_v40, 2 }
  0x1d   : > { %4256 = vmatprep.mubr.msk.bf16.mxu0 %vm509_vm3, %v1514_v42  ;;  %4105 = vmatmul.mubr.msk.bf16.vlgmr.msra.gmra.mrb[0].mxu1 %vm509_vm3, %v380_v38  ;;  %v395_v48 = vrot.slane %v4939_v40, 1  ;;  %v4956_v49 = vshll.u32 %v4925_v31, 16  ;;  %v1519_v52 = vrot.slane %v4948_v44, 1  ;;  %v4969_v53 = vshrl.u32 %v4925_v31, 16 }
  0x1e   : > { %4108 = vmatprep.mubr.msk.bf16.mxu1 %vm509_vm3, %v388_v43  ;;  %4141 = vmatpush3.bf16.msra.mxu1 %v782_v10  ;;  %v4972_v54 = vshll.u32 %v4942_v41, 16  ;;  %v4975_v55 = vshrl.u32 %v4942_v41, 16  ;;  %v1518_v56 = vsel %vm1507_vm2, %v1513_v32, %v1517_v46  ;;  %v4991_v3 = vshll.u32 %v4959_v50, 16 }
  0x1f   : > { %v1524_v57 = vrot.slane %v4956_v49, 2  ;;  %v399_v58 = vor.u32 %v4948_v44, %v395_v48  ;;  %4736 = vmatprep.subr.msk.bf16.mxu1 %vm564_vm0, %v4933_v36  ;;  %4257 = vmatmul.mubr.msk.bf16.vlgmr.msra.gmra.mrb[0].mxu0 %vm509_vm3, %v1518_v56  ;;  %v1521_v59 = vor.u32 %v1520_v47, %v1519_v52  ;;  %v1523_v60 = vrot.slane %v4969_v53, 1  ;;  %v5048_v56 = vld [vmem:[%s4886_s27 + $0x58] sm:$0xff]  }
  0x20   : > { %v403_v61 = vrot.slane %v4956_v49, 1  ;;  %v1527_v62 = vrot.slane %v4975_v55, 1  ;;  %4293 = vmatpush3.bf16.msra.mxu0 %v1958_v8  ;;  %v1528_v1 = vrot.slane %v4972_v54, 2  ;;  %v4994_v4 = vshrl.u32 %v4959_v50, 16 }
  0x21   : > { %v1522_v5 = vsel %vm1507_vm2, %v1517_v46, %v1521_v59  ;;  %v396_v10 = vsel %vm360_vm1, %v391_v45, %v395_v48  ;;  %v1525_v11 = vor.u32 %v1524_v57, %v1523_v60  ;;  %4741 = vmatprep.subr.msk.bf16.mxu0 %vm564_vm0, %v4964_v51  ;;  %v411_v13 = vrot.slane %v4972_v54, 1 }
  0x22   : > { %4260 = vmatprep.mubr.msk.bf16.mxu0 %vm509_vm3, %v1522_v5  ;;  %v404_v8 = vsel %vm360_vm1, %v399_v58, %v403_v61  ;;  %v1529_v12 = vor.u32 %v1528_v1, %v1527_v62  ;;  %v5004_v14 = vshll.u32 %v4987_v63, 16  ;;  %v1531_v20 = vrot.slane %v4994_v4, 1 }
  0x23   : > { %v1526_v19 = vsel %vm1507_vm2, %v1521_v59, %v1525_v11  ;;  %v1532_v21 = vrot.slane %v4991_v3, 2  ;;  %v5011_v22 = vshrl.u32 %v4987_v63, 16  ;;  %v407_v25 = vor.u32 %v4969_v53, %v403_v61 }
  0x24   : > { %v1530_v24 = vsel %vm1507_vm2, %v1525_v11, %v1529_v12  ;;  %v1536_v27 = vrot.slane %v5004_v14, 2  ;;  %v415_v29 = vor.u32 %v4975_v55, %v411_v13  ;;  %v419_v32 = vrot.slane %v4991_v3, 1 }
  0x25   : > { %4109 = vmatmul.mubr.msk.bf16.gmra.mrb[4].mxu1 %vm509_vm3, %v396_v10  ;;  %v1535_v33 = vrot.slane %v5011_v22, 1  ;;  %v1533_v34 = vor.u32 %v1532_v21, %v1531_v20  ;;  %v5029_v35 = vshll.u32 %v5014_v23, 16  ;;  %v5032_v37 = vshrl.u32 %v5014_v23, 16 }
  0x26   : > { %4112 = vmatprep.mubr.msk.bf16.mxu1 %vm509_vm3, %v404_v8  ;;  %v412_v38 = vsel %vm360_vm1, %v407_v25, %v411_v13  ;;  %v5036_v42 = vshll.u32 %v5021_v28, 16  ;;  %v5039_v43 = vshrl.u32 %v5021_v28, 16  ;;  %v420_v45 = vsel %vm360_vm1, %v415_v29, %v419_v32  ;;  %v5068_v13 = vld [vmem:[%s4886_s27 + $0x88] sm:$0xff]   ;;  %v5076_v25 = vld [vmem:[%s4886_s27 + $0x60] sm:$0xff]  }
  0x27   : > { %4261 = vmatmul.mubr.msk.bf16.gmra.mrb[4].mxu0 %vm509_vm3, %v1526_v19  ;;  %v1537_v39 = vor.u32 %v1536_v27, %v1535_v33  ;;  %v1534_v46 = vsel %vm1507_vm2, %v1529_v12, %v1533_v34  ;;  %v427_v47 = vrot.slane %v5004_v14, 1  ;;  %v1539_v48 = vrot.slane %v5032_v37, 1  ;;  %v259_v27 = vld [vmem:[%s4886_s27 + $0x90] sm:$0xf] }
  0x28   : > { %4264 = vmatprep.mubr.msk.bf16.mxu0 %vm509_vm3, %v1530_v24  ;;  %v1540_v52 = vrot.slane %v5029_v35, 2  ;;  %v423_v58 = vor.u32 %v4994_v4, %v419_v32  ;;  %v1543_v59 = vrot.slane %v5039_v43, 1  ;;  %v1544_v60 = vrot.slane %v5036_v42, 2 }
  0x29   : > { %v1538_v57 = vsel %vm1507_vm2, %v1533_v34, %v1537_v39  ;;  %v431_v61 = vor.u32 %v5011_v22, %v427_v47  ;;  %v435_v62 = vrot.slane %v5029_v35, 1  ;;  %v5060_v5 = vshll.u32 %v5048_v56, 16 }
  0x2a   : > { %v1541_v1 = vor.u32 %v1540_v52, %v1539_v48  ;;  %v5063_v10 = vshrl.u32 %v5048_v56, 16  ;;  %v428_v11 = vsel %vm360_vm1, %v423_v58, %v427_v47  ;;  %v1545_v8 = vor.u32 %v1544_v60, %v1543_v59 }
  0x2b   : > { %5908 = vst [vmem:[#allocation3_spill] sm:$0xff] %v5060_v5  ;;  %v436_v12 = vsel %vm360_vm1, %v431_v61, %v435_v62  ;;  %v443_v20 = vrot.slane %v5036_v42, 1  ;;  %v1548_v24 = vrot.slane %v5060_v5, 2  ;;  %v439_v32 = vor.u32 %v5032_v37, %v435_v62 }
  0x2c   : > { %5909 = vst [vmem:[#allocation4_spill] sm:$0xff] %v5063_v10  ;;  %v1542_v19 = vsel %vm1507_vm2, %v1537_v39, %v1541_v1  ;;  %v1547_v21 = vrot.slane %v5063_v10, 1  ;;  %v1546_v29 = vsel %vm1507_vm2, %v1541_v1, %v1545_v8  ;;  %v451_v34 = vrot.slane %v5060_v5, 1 }
  0x2d   : > { %4113 = vmatmul.mubr.msk.bf16.gmra.mrb[8].mxu1 %vm509_vm3, %v412_v38  ;;  %v447_v33 = vor.u32 %v5039_v43, %v443_v20  ;;  %v5085_v38 = vld [vmem:[%s4886_s27 + $0x68] sm:$0xff]   ;;  %v5088_v39 = vshll.u32 %v5068_v13, 16  ;;  %v5100_v48 = vshll.u32 %v5076_v25, 16  ;;  %v1866_v58 = vrot.slane %v4892_v7, 2 }
  0x2e   : > { %4116 = vmatprep.mubr.msk.bf16.mxu1 %vm509_vm3, %v420_v45  ;;  %v5091_v45 = vcombine.low %v259_v27, %v259_v27  ;;  %v5097_v47 = vor.u32 %v1548_v24, %v1547_v21  ;;  %v1867_v59 = vrot.slane %v4896_v9, 2  ;;  %v5109_v62 = vshrl.u32 %v5076_v25, 16  ;;  %v5122_v21 = vld [vmem:[%s4886_s27 + $0x70] sm:$0xff]  }
  0x2f   : > { %4265 = vmatmul.mubr.msk.bf16.gmra.mrb[8].mxu0 %vm509_vm3, %v1534_v46  ;;  %v5094_v46 = vshrl.u32 %v5068_v13, 16  ;;  %5913 = vst [vmem:[#allocation8_spill] sm:$0xff] %v5100_v48  ;;  %v5876_v52 = vrot.slane %v5088_v39, 1  ;;  %v452_v61 = vsel %vm360_vm1, %v447_v33, %v451_v34  ;;  %v5112_v1 = vshll.u32 %v5085_v38, 16 }
  0x30   : > { %4268 = vmatprep.mubr.msk.bf16.mxu0 %vm509_vm3, %v1538_v57  ;;  %5910 = vst [vmem:[#allocation5_spill] sm:$0xff] %v5091_v45  ;;  %5912 = vst [vmem:[#allocation7_spill] sm:$0xff] %v5097_v47  ;;  %v444_v57 = vsel %vm360_vm1, %v439_v32, %v443_v20  ;;  %v505_v60 = vshll.u32 %v5091_v45, 16  ;;  %v459_v20 = vrot.slane %v5100_v48, 1  ;;  %v1868_v24 = vsel %vm1865_vm4, %v1866_v58, %v1867_v59 }
  0x31   : > { %5911 = vst [vmem:[#allocation6_spill] sm:$0xff] %v5094_v46  ;;  %5914 = vst [vmem:[#allocation9_spill] sm:$0xff] %v5109_v62  ;;  %v5139_v58 = vshll.u32 %v5122_v21, 16  ;;  %v5924_v5 = vrot.slane %v5088_v39, 1  ;;  %v2418_v45 = vrot.slane %v4939_v40, 3  ;;  %v1881_v40 = vrot.slane %v5014_v23, 2 }
  0x32   : > { %5915 = vst [vmem:[#allocation10_spill] sm:$0xff] %v5112_v1  ;;  %v463_v33 = vor.u32 %v5109_v62, %v459_v20 }
  0x33   : > { %5916 = vst [vmem:[#allocation11_spill] sm:$0xff] %v5139_v58 }
  0x35   : > { %4117 = vmatmul.mubr.msk.bf16.gmra.mrb[12].mxu1 %vm509_vm3, %v428_v11  ;;  %v503_v11 = vor.u32 %v5094_v46, %v5876_v52  ;;  %v5148_v52 = vshrl.u32 %v5122_v21, 16 }
  0x36   : > { %4120 = vmatprep.mubr.msk.bf16.mxu1 %vm509_vm3, %v436_v12  ;;  %v507_v12 = vrot.slane %v505_v60, 1  ;;  %v1869_v60 = vrot.slane %v4910_v17, 2 }
  0x37   : > { %4269 = vmatmul.mubr.msk.bf16.gmra.mrb[12].mxu0 %vm509_vm3, %v1542_v19  ;;  %v1550_v19 = vsel %vm1507_vm2, %v1545_v8, %v5097_v47  ;;  %v5133_v8 = vld [vmem:[%s4886_s27 + $0x78] sm:$0xff]   ;;  %5918 = vst [vmem:[#allocation13_spill] sm:$0xff] %v5148_v52  ;;  %v5160_v47 = vld [vmem:[%s4886_s27 + $0x80] sm:$0xff]  }
  0x38   : > { %4272 = vmatprep.mubr.msk.bf16.mxu0 %vm509_vm3, %v1546_v29  ;;  %v455_v29 = vor.u32 %v5063_v10, %v451_v34  ;;  %v5128_v32 = vsel %vm360_vm1, %v503_v11, %v507_v12  ;;  %v5144_v11 = vshrl.u32 %v5085_v38, 16  ;;  %v2417_v10 = vrot.slane %v4948_v44, 2 }
  0x39   : > { %v2421_v44 = vrot.slane %v4969_v53, 2 }
  0x3a   : > { %v460_v34 = vsel %vm360_vm1, %v455_v29, %v459_v20  ;;  %5917 = vst [vmem:[#allocation12_spill] sm:$0xff] %v5144_v11  ;;  %v5156_v20 = vsel %vm1865_vm4, %v1867_v59, %v1869_v60  ;;  %v475_v29 = vrot.slane %v5139_v58, 1  ;;  %v5176_v58 = vld [vmem:[%s5873_s1 + $0xe] sm:$0x3] }
  0x3d   : > { %4121 = vmatmul.mubr.msk.bf16.gmra.mrb[16].mxu1 %vm509_vm3, %v444_v57  ;;  %v467_v57 = vrot.slane %v5112_v1, 1  ;;  %v479_v1 = vor.u32 %v5148_v52, %v475_v29  ;;  %v5196_v52 = vshrl.u32 %v5133_v8, 16 }
  0x3e   : > { %4124 = vmatprep.mubr.msk.bf16.mxu1 %vm509_vm3, %v452_v61  ;;  %v1871_v61 = vrot.slane %v4913_v18, 2 }
  0x3f   : > { %4273 = vmatmul.mubr.msk.bf16.gmra.mrb[16].mxu0 %vm509_vm3, %v1550_v19  ;;  %v468_v12 = vsel %vm360_vm1, %v463_v33, %v467_v57  ;;  %v5151_v19 = vshll.u32 %v5133_v8, 16  ;;  %v2192_v33 = vsel %vm564_vm0, %v4964_v51, 0  ;;  %v471_v2 = vor.u32 %v5144_v11, %v467_v57  ;;  %v5181_v51 = vld [vmem:[%s4886_s27 + $0x98] sm:$0xf]  ;;  %5922 = vst [vmem:[#allocation17_spill] sm:$0xff] %v5196_v52 }
  0x40   : > { %4294 = vmatprep.mubr.msk.bf16.mxu0 %vm509_vm3, %v1868_v24  ;;  %v260_v24 = vld [vmem:[%s4886_s27 + $0x94] sm:$0xf]  ;;  %v5166_v46 = vsel %vm1865_vm4, %v1869_v60, %v1871_v61  ;;  %v262_v60 = vld [vmem:[%s4886_s27 + $0x9c] sm:$0xf]  ;;  %v1873_v57 = vrot.slane %v4925_v31, 2  ;;  %v5202_v11 = vshrl.u32 %v5160_v47, 16 }
  0x41   : > { %5919 = vst [vmem:[#allocation14_spill] sm:$0xff] %v5151_v19  ;;  %v5171_v59 = vcombine.low %v259_v27, %v260_v24  ;;  %v5188_v27 = vshll.u32 %v5160_v47, 16  ;;  %v476_v24 = vsel %vm360_vm1, %v471_v2, %v475_v29 }
  0x42   : > { %5923 = vst [vmem:[#allocation18_spill] sm:$0xff] %v5202_v11  ;;  %v5210_v2 = vsel %vm1865_vm4, %v1871_v61, %v1873_v57  ;;  %v2410_v61 = vrot.slane %v4907_v16, 2 }
  0x43   : > { %5920 = vst [vmem:[#allocation15_spill] sm:$0xff] %v5171_v59  ;;  %5921 = vst [vmem:[#allocation16_spill] sm:$0xff] %v5188_v27  ;;  %v5205_v48 = vrot.slane %v5171_v59, 2  ;;  %v491_v29 = vrot.slane %v5188_v27, 1  ;;  %v2411_v27 = vrot.slane %v4904_v15, 3 }
  0x45   : > { %4125 = vmatmul.mubr.msk.bf16.gmra.mrb[20].mxu1 %vm509_vm3, %v460_v34  ;;  %v483_v34 = vrot.slane %v5151_v19, 1  ;;  %v1875_v19 = vrot.slane %v4942_v41, 2 }
  0x46   : > { %4128 = vmatprep.mubr.msk.bf16.mxu1 %vm509_vm3, %v468_v12  ;;  %v5191_v12 = vcombine.low %v5181_v51, %v262_v60 }
  0x47   : > { %4295 = vmatmul.mubr.msk.bf16.vlgmr.msra.gmra.mrb[0].mxu0 %vm509_vm3, %v5156_v20  ;;  %v5221_v59 = vsel %vm1865_vm4, %v1873_v57, %v1875_v19  ;;  %v487_v62 = vor.u32 %v5196_v52, %v483_v34  ;;  %v2414_v57 = vrot.slane %v4919_v26, 3  ;;  %v2412_v52 = vor.u32 %v2411_v27, %v2410_v61 }
  0x48   : > { %4331 = vmatpush3.bf16.msra.mxu0 %v2192_v33  ;;  %4298 = vmatprep.mubr.msk.bf16.mxu0 %vm509_vm3, %v5166_v46  ;;  %v484_v33 = vsel %vm360_vm1, %v479_v1, %v483_v34  ;;  %v5899_v60 = vrot.slane %v5191_v12, 2  ;;  %v1887_v61 = vrot.slane %v5076_v25, 2 }
  0x49   : > { %4742 = vmatprep.subr.msk.bf16.mxu0 %vm564_vm0, %v5176_v58  ;;  %v492_v34 = vsel %vm360_vm1, %v487_v62, %v491_v29  ;;  %v2419_v62 = vor.u32 %v2418_v45, %v2417_v10  ;;  %v2422_v10 = vrot.slane %v4956_v49, 3  ;;  %v1883_v45 = vrot.slane %v5021_v28, 2 }
  0x4a   : > { %v5217_v1 = vsel %vm1865_vm4, %v5205_v48, %v5899_v60  ;;  %v1877_v60 = vrot.slane %v4959_v50, 2 }
  0x4b   : > { %v5276_v49 = vsel %vm1865_vm4, %v1881_v40, %v1883_v45 }
  0x4d   : > { %4129 = vmatmul.mubr.msk.bf16.gmra.mrb[24].mxu1 %vm509_vm3, %v476_v24  ;;  %v495_v24 = vor.u32 %v5202_v11, %v491_v29  ;;  %v1879_v11 = vrot.slane %v4987_v63, 2 }
  0x4e   : > { %4132 = vmatprep.mubr.msk.bf16.mxu1 %vm509_vm3, %v484_v33  ;;  %v2413_v33 = vrot.slane %v4922_v30, 2  ;;  %v5243_v30 = vsel %vm1865_vm4, %v1875_v19, %v1877_v60  ;;  %v2425_v19 = vrot.slane %v4975_v55, 2  ;;  %v2429_v55 = vrot.slane %v4994_v4, 2  ;;  %v5296_v4 = vld [vmem:[%s5873_s1 + $0x6] sm:$0x3] }
  0x4f   : > { %4299 = vmatmul.mubr.msk.bf16.gmra.mrb[4].mxu0 %vm509_vm3, %v5210_v2  ;;  %v500_v16 = vsel %vm360_vm1, %v495_v24, %v5924_v5  ;;  %v5250_v27 = vsel %vm1865_vm4, %v1877_v60, %v1879_v11  ;;  %v2426_v60 = vrot.slane %v4972_v54, 3  ;;  %v5268_v29 = vsel %vm1865_vm4, %v1879_v11, %v1881_v40 }
  0x50   : > { %4302 = vmatprep.mubr.msk.bf16.mxu0 %vm509_vm3, %v5221_v59  ;;  %v2415_v15 = vor.u32 %v2414_v57, %v2413_v33  ;;  %v1885_v11 = vrot.slane %v5048_v56, 2  ;;  %v1056_v57 = vsel %vm564_vm0, %v4933_v36, 0  ;;  %v2438_v40 = vrot.slane %v5029_v35, 3 }
  0x51   : > { %v2427_v53 = vor.u32 %v2426_v60, %v2425_v19  ;;  %v2442_v19 = vrot.slane %v5036_v42, 3 }
  0x52   : > { %v5246_v26 = vsel %vm2409_vm5, %v2412_v52, %v2415_v15  ;;  %v5253_v5 = vsel %vm2409_vm5, %v2415_v15, %v2419_v62  ;;  %v2423_v52 = vor.u32 %v2422_v10, %v2421_v44  ;;  %v5304_v15 = vsel %vm1865_vm4, %v1883_v45, %v1885_v11 }
  0x53   : > { %v5309_v36 = vsel %vm1865_vm4, %v1885_v11, %v1887_v61  ;;  %v1889_v44 = vrot.slane %v5085_v38, 2  ;;  %v1891_v10 = vrot.slane %v5122_v21, 2 }
  0x54   : > { %v5271_v24 = vsel %vm2409_vm5, %v2419_v62, %v2423_v52  ;;  %v5281_v54 = vsel %vm2409_vm5, %v2423_v52, %v2427_v53  ;;  %v2441_v52 = vrot.slane %v5039_v43, 2  ;;  %v1893_v43 = vrot.slane %v5133_v8, 2 }
  0x55   : > { %4133 = vmatmul.mubr.msk.bf16.gmra.mrb[28].mxu1 %vm509_vm3, %v492_v34  ;;  %v2433_v34 = vrot.slane %v5011_v22, 2  ;;  %v2437_v22 = vrot.slane %v5032_v37, 2  ;;  %v5332_v35 = vsel %vm1865_vm4, %v1887_v61, %v1889_v44  ;;  %v1897_v61 = vrot.slane %v5068_v13, 2 }
  0x56   : > { %4136 = vmatprep.mubr.msk.bf16.mxu1 %vm509_vm3, %v500_v16  ;;  %v2434_v16 = vrot.slane %v5004_v14, 3  ;;  %v5334_v37 = vor.u32 %v2442_v19, %v2441_v52  ;;  %v5501_v52 = vld [vmem:[%s4886_s27 + $0xa0] ss:$0 sps:$4 sm:$0x77]   ;;  %v983_v19 = vrot.slane %v5021_v28, 1 }
  0x57   : > { %4303 = vmatmul.mubr.msk.bf16.gmra.mrb[8].mxu0 %vm509_vm3, %v5243_v30  ;;  %v2439_v45 = vor.u32 %v2438_v40, %v2437_v22  ;;  %v979_v40 = vrot.slane %v4987_v63, 1 }
  0x58   : > { %4306 = vmatprep.mubr.msk.bf16.mxu0 %vm509_vm3, %v5250_v27  ;;  %v2435_v62 = vor.u32 %v2434_v16, %v2433_v34  ;;  %v5379_v34 = vsel %vm1865_vm4, %v1897_v61, %v5205_v48 }
  0x59   : > { %v5343_v42 = vsel %vm2409_vm5, %v2439_v45, %v5334_v37 }
  0x5a   : > { %v5327_v60 = vsel %vm2409_vm5, %v2435_v62, %v2439_v45 }
  0x5d   : > { %4137 = vmatmul.mubr.msk.bf16.gmra.mrb[32].mxu1 %vm509_vm3, %v5128_v32  ;;  %v2430_v32 = vrot.slane %v4991_v3, 3 }
  0x5e   : > { %4142 = vmatprep.mubr.msk.bf16.mxu1 %vm509_vm3, %v4889_v6 }
  0x5f   : > { %4307 = vmatmul.mubr.msk.bf16.gmra.mrb[12].mxu0 %vm509_vm3, %v5268_v29  ;;  %v2431_v33 = vor.u32 %v2430_v32, %v2429_v55  ;;  %v1895_v55 = vrot.slane %v5160_v47, 2  ;;  %v5354_v32 = vsel %vm1865_vm4, %v1891_v10, %v1893_v43 }
  0x60   : > { %4310 = vmatprep.mubr.msk.bf16.mxu0 %vm509_vm3, %v5276_v49 }
  0x61   : > { %v5299_v3 = vsel %vm2409_vm5, %v2427_v53, %v2431_v33  ;;  %v5314_v14 = vsel %vm2409_vm5, %v2431_v33, %v2435_v62  ;;  %v5339_v53 = vsel %vm1865_vm4, %v1889_v44, %v1891_v10  ;;  %v5359_v11 = vsel %vm1865_vm4, %v1893_v43, %v1895_v55 }
  0x62   : > { %v5369_v33 = vsel %vm1865_vm4, %v1895_v55, %v1897_v61  ;;  %v2550_v62 = vsel %vm564_vm0, %v5176_v58, 0  ;;  %v965_v58 = vrot.slane %v4892_v7, 1  ;;  %v981_v44 = vrot.slane %v5014_v23, 1 }
  0x63   : > { %v989_v61 = vrot.slane %v5085_v38, 1 }
  0x64   : > { %v5496_v45 = vsel %vm963_vm6, %v979_v40, %v981_v44  ;;  %v5513_v43 = vsel %vm963_vm6, %v981_v44, %v983_v19 }
  0x65   : > { %4143 = vmatmul.mubr.msk.bf16.vlgmr.msra.gmra.mrb[0].mxu1 %vm509_vm3, %v4892_v7 }
  0x66   : > { %4146 = vmatprep.mubr.msk.bf16.mxu1 %vm509_vm3, %v4896_v9  ;;  %4179 = vmatpush3.bf16.msra.mxu1 %v1056_v57  ;;  %v5373_v57 = vcombine.low %v5181_v51, %v5181_v51 }
  0x67   : > { %4737 = vmatprep.subr.msk.bf16.mxu1 %vm564_vm0, %v5296_v4  ;;  %4311 = vmatmul.mubr.msk.bf16.gmra.mrb[16].mxu0 %vm509_vm3, %v5304_v15 }
  0x68   : > { %4314 = vmatprep.mubr.msk.bf16.mxu0 %vm509_vm3, %v5309_v36  ;;  %v1901_v16 = vrot.slane %v5373_v57, 2 }
  0x6a   : > { %v1902_v51 = vsel %vm1865_vm4, %v5205_v48, %v1901_v16  ;;  %v5404_v48 = vld [vmem:[%s5873_s1 + $0x10] sm:$0x3] }
  0x6b   : > { %v2860_v16 = vsel %vm564_vm0, %v5404_v48, 0 }
  0x6d   : > { %4147 = vmatmul.mubr.msk.bf16.gmra.mrb[4].mxu1 %vm509_vm3, %v4910_v17 }
  0x6e   : > { %4150 = vmatprep.mubr.msk.bf16.mxu1 %vm509_vm3, %v4913_v18 }
  0x6f   : > { %4315 = vmatmul.mubr.msk.bf16.gmra.mrb[20].mxu0 %vm509_vm3, %v5332_v35 }
  0x70   : > { %4318 = vmatprep.mubr.msk.bf16.mxu0 %vm509_vm3, %v5339_v53 }
  0x75   : > { %4151 = vmatmul.mubr.msk.bf16.gmra.mrb[8].mxu1 %vm509_vm3, %v4925_v31 }
  0x76   : > { %4154 = vmatprep.mubr.msk.bf16.mxu1 %vm509_vm3, %v4942_v41 }
  0x77   : > { %4319 = vmatmul.mubr.msk.bf16.gmra.mrb[24].mxu0 %vm509_vm3, %v5354_v32 }
  0x78   : > { %4322 = vmatprep.mubr.msk.bf16.mxu0 %vm509_vm3, %v5359_v11 }
  0x7d   : > { %4155 = vmatmul.mubr.msk.bf16.gmra.mrb[12].mxu1 %vm509_vm3, %v4959_v50 }
  0x7e   : > { %4158 = vmatprep.mubr.msk.bf16.mxu1 %vm509_vm3, %v4987_v63 }
  0x7f   : > { %4323 = vmatmul.mubr.msk.bf16.gmra.mrb[28].mxu0 %vm509_vm3, %v5369_v33 }
  0x80   : > { %4326 = vmatprep.mubr.msk.bf16.mxu0 %vm509_vm3, %v5379_v34 }
  0x85   : > { %4159 = vmatmul.mubr.msk.bf16.gmra.mrb[16].mxu1 %vm509_vm3, %v5014_v23 }
  0x86   : > { %4162 = vmatprep.mubr.msk.bf16.mxu1 %vm509_vm3, %v5021_v28 }
  0x87   : > { %4327 = vmatmul.mubr.msk.bf16.gmra.mrb[32].mxu0 %vm509_vm3, %v1902_v51  ;;  %v991_v51 = vrot.slane %v5122_v21, 1 }
  0x88   : > { %4332 = vmatprep.mubr.msk.bf16.mxu0 %vm509_vm3, %v5156_v20 }
  0x8d   : > { %4163 = vmatmul.mubr.msk.bf16.gmra.mrb[20].mxu1 %vm509_vm3, %v5048_v56 }
  0x8e   : > { %4166 = vmatprep.mubr.msk.bf16.mxu1 %vm509_vm3, %v5076_v25 }
  0x8f   : > { %4333 = vmatmul.mubr.msk.bf16.vlgmr.msra.gmra.mrb[0].mxu0 %vm509_vm3, %v5166_v46  ;;  %v964_v46 = vrot.slane %v4889_v6, 1  ;;  %v969_v6 = vrot.slane %v4910_v17, 1 }
  0x90   : > { %4369 = vmatpush3.bf16.msra.mxu0 %v2550_v62  ;;  %4336 = vmatprep.mubr.msk.bf16.mxu0 %vm509_vm3, %v5210_v2  ;;  %v993_v62 = vrot.slane %v5133_v8, 1 }
  0x91   : > { %4743 = vmatprep.subr.msk.bf16.mxu0 %vm564_vm0, %v5404_v48  ;;  %v966_v20 = vsel %vm963_vm6, %v964_v46, %v965_v58  ;;  %v995_v48 = vrot.slane %v5160_v47, 1 }
  0x92   : > { %v5552_v46 = vsel %vm963_vm6, %v991_v51, %v993_v62 }
  0x95   : > { %4167 = vmatmul.mubr.msk.bf16.gmra.mrb[24].mxu1 %vm509_vm3, %v5085_v38 }
  0x96   : > { %4170 = vmatprep.mubr.msk.bf16.mxu1 %vm509_vm3, %v5122_v21 }
  0x97   : > { %4337 = vmatmul.mubr.msk.bf16.gmra.mrb[4].mxu0 %vm509_vm3, %v5221_v59  ;;  %v967_v59 = vrot.slane %v4896_v9, 1 }
  0x98   : > { %4340 = vmatprep.mubr.msk.bf16.mxu0 %vm509_vm3, %v5243_v30  ;;  %v1290_v30 = vsel %vm564_vm0, %v5296_v4, 0 }
  0x99   : > { %v5441_v7 = vsel %vm963_vm6, %v965_v58, %v967_v59  ;;  %v5444_v2 = vsel %vm963_vm6, %v967_v59, %v969_v6 }
  0x9d   : > { %4171 = vmatmul.mubr.msk.bf16.gmra.mrb[28].mxu1 %vm509_vm3, %v5133_v8 }
  0x9e   : > { %4174 = vmatprep.mubr.msk.bf16.mxu1 %vm509_vm3, %v5160_v47 }
  0x9f   : > { %4341 = vmatmul.mubr.msk.bf16.gmra.mrb[8].mxu0 %vm509_vm3, %v5250_v27  ;;  %v971_v27 = vrot.slane %v4913_v18, 1 }
  0xa0   : > { %4344 = vmatprep.mubr.msk.bf16.mxu0 %vm509_vm3, %v5268_v29  ;;  %v973_v29 = vrot.slane %v4925_v31, 1 }
  0xa2   : > { %v5464_v4 = vsel %vm963_vm6, %v971_v27, %v973_v29 }
  0xa5   : > { %4175 = vmatmul.mubr.msk.bf16.gmra.mrb[32].mxu1 %vm509_vm3, %v5068_v13 }
  0xa6   : > { %4180 = vmatprep.mubr.msk.bf16.mxu1 %vm509_vm3, %v966_v20  ;;  %v5926_v20 = vld [vmem:[#allocation5_spill] sm:$0xff] }
  0xa7   : > { %4345 = vmatmul.mubr.msk.bf16.gmra.mrb[12].mxu0 %vm509_vm3, %v5276_v49  ;;  %v5461_v49 = vsel %vm963_vm6, %v969_v6, %v971_v27  ;;  %v999_v59 = vrot.slane %v5926_v20, 1  ;;  %v5927_v6 = vld [vmem:[#allocation4_spill] sm:$0xff]  ;;  %v5937_v20 = vld [vmem:[#allocation14_spill] sm:$0xff] }
  0xa8   : > { %4348 = vmatprep.mubr.msk.bf16.mxu0 %vm509_vm3, %v5304_v15  ;;  %v977_v15 = vrot.slane %v4959_v50, 1 }
  0xaa   : > { %v5493_v10 = vsel %vm963_vm6, %v977_v15, %v979_v40  ;;  %v5930_v40 = vld [vmem:[#allocation8_spill] sm:$0xff] }
  0xab   : > { %v2450_v44 = vrot.slane %v5930_v40, 3 }
  0xad   : > { %4181 = vmatmul.mubr.msk.bf16.vlgmr.msra.gmra.mrb[0].mxu1 %vm509_vm3, %v5441_v7 }
  0xae   : > { %4184 = vmatprep.mubr.msk.bf16.mxu1 %vm509_vm3, %v5444_v2  ;;  %4217 = vmatpush3.bf16.msra.mxu1 %v1290_v30  ;;  %v5928_v30 = vld [vmem:[#allocation3_spill] sm:$0xff] }
  0xaf   : > { %4739 = vmatprep.subr.msk.bf16.mxu1 %vm564_vm0, %v4858_v0  ;;  %4349 = vmatmul.mubr.msk.bf16.gmra.mrb[16].mxu0 %vm509_vm3, %v5309_v36  ;;  %v975_v0 = vrot.slane %v4942_v41, 1  ;;  %v2446_v27 = vrot.slane %v5928_v30, 3 }
  0xb0   : > { %4352 = vmatprep.mubr.msk.bf16.mxu0 %vm509_vm3, %v5332_v35  ;;  %v985_v35 = vrot.slane %v5048_v56, 1 }
  0xb1   : > { %v5477_v36 = vsel %vm963_vm6, %v973_v29, %v975_v0  ;;  %v5480_v22 = vsel %vm963_vm6, %v975_v0, %v977_v15  ;;  %v5929_v0 = vld [vmem:[#allocation9_spill] sm:$0xff] }
  0xb2   : > { %v5516_v55 = vsel %vm963_vm6, %v983_v19, %v985_v35  ;;  %v2449_v15 = vrot.slane %v5929_v0, 2 }
  0xb5   : > { %4185 = vmatmul.mubr.msk.bf16.gmra.mrb[4].mxu1 %vm509_vm3, %v5461_v49 }
  0xb6   : > { %4188 = vmatprep.mubr.msk.bf16.mxu1 %vm509_vm3, %v5464_v4 }
  0xb7   : > { %4353 = vmatmul.mubr.msk.bf16.gmra.mrb[20].mxu0 %vm509_vm3, %v5339_v53  ;;  %v2183_v53 = vrot.slane %v5501_v52, 2 }
  0xb8   : > { %4356 = vmatprep.mubr.msk.bf16.mxu0 %vm509_vm3, %v5354_v32  ;;  %v5925_v32 = vrot.slane %v5191_v12, 2 }
  0xbd   : > { %4189 = vmatmul.mubr.msk.bf16.gmra.mrb[8].mxu1 %vm509_vm3, %v5477_v36 }
  0xbe   : > { %4192 = vmatprep.mubr.msk.bf16.mxu1 %vm509_vm3, %v5480_v22 }
  0xbf   : > { %4357 = vmatmul.mubr.msk.bf16.gmra.mrb[24].mxu0 %vm509_vm3, %v5359_v11  ;;  %v2184_v11 = vsel %vm1865_vm4, %v5925_v32, %v2183_v53  ;;  %v5932_v53 = vld [vmem:[#allocation10_spill] sm:$0xff]  ;;  %v2451_v32 = vor.u32 %v2450_v44, %v2449_v15 }
  0xc0   : > { %4360 = vmatprep.mubr.msk.bf16.mxu0 %vm509_vm3, %v5369_v33  ;;  %v5940_v15 = vld [vmem:[#allocation6_spill] sm:$0xff] }
  0xc1   : > { %v2469_v44 = vrot.slane %v5940_v15, 2 }
  0xc5   : > { %4193 = vmatmul.mubr.msk.bf16.gmra.mrb[12].mxu1 %vm509_vm3, %v5493_v10 }
  0xc6   : > { %4196 = vmatprep.mubr.msk.bf16.mxu1 %vm509_vm3, %v5496_v45 }
  0xc7   : > { %4361 = vmatmul.mubr.msk.bf16.gmra.mrb[28].mxu0 %vm509_vm3, %v5379_v34 }
  0xc8   : > { %4364 = vmatprep.mubr.msk.bf16.mxu0 %vm509_vm3, %v5217_v1  ;;  %v987_v1 = vrot.slane %v5076_v25, 1 }
  0xca   : > { %v5531_v33 = vsel %vm963_vm6, %v985_v35, %v987_v1  ;;  %v5534_v34 = vsel %vm963_vm6, %v987_v1, %v989_v61 }
  0xcd   : > { %4197 = vmatmul.mubr.msk.bf16.gmra.mrb[16].mxu1 %vm509_vm3, %v5513_v43 }
  0xce   : > { %4200 = vmatprep.mubr.msk.bf16.mxu1 %vm509_vm3, %v5516_v55 }
  0xcf   : > { %4365 = vmatmul.mubr.msk.bf16.gmra.mrb[32].mxu0 %vm509_vm3, %v2184_v11 }
  0xd0   : > { %4370 = vmatprep.mubr.msk.bf16.mxu0 %vm509_vm3, %v5246_v26  ;;  %v5549_v26 = vsel %vm963_vm6, %v989_v61, %v991_v51 }
  0xd5   : > { %4201 = vmatmul.mubr.msk.bf16.gmra.mrb[20].mxu1 %vm509_vm3, %v5531_v33 }
  0xd6   : > { %4204 = vmatprep.mubr.msk.bf16.mxu1 %vm509_vm3, %v5534_v34 }
  0xd7   : > { %4371 = vmatmul.mubr.msk.bf16.vlgmr.msra.gmra.mrb[0].mxu0 %vm509_vm3, %v5253_v5  ;;  %v5560_v5 = vrot.slane %v5068_v13, 1 }
  0xd8   : > { %4407 = vmatpush3.bf16.msra.mxu0 %v2860_v16  ;;  %4374 = vmatprep.mubr.msk.bf16.mxu0 %vm509_vm3, %v5271_v24  ;;  %v5567_v24 = vsel %vm963_vm6, %v993_v62, %v995_v48  ;;  %v5934_v16 = vld [vmem:[#allocation11_spill] sm:$0xff]  ;;  %v5935_v62 = vld [vmem:[#allocation2_spill] sm:$0xff] }
  0xd9   : > { %v5571_v58 = vsel %vm963_vm6, %v995_v48, %v5560_v5 }
  0xdd   : > { %4205 = vmatmul.mubr.msk.bf16.gmra.mrb[24].mxu1 %vm509_vm3, %v5549_v26 }
  0xde   : > { %4208 = vmatprep.mubr.msk.bf16.mxu1 %vm509_vm3, %v5552_v46 }
  0xdf   : > { %4375 = vmatmul.mubr.msk.bf16.gmra.mrb[4].mxu0 %vm509_vm3, %v5281_v54  ;;  %v2445_v54 = vrot.slane %v5927_v6, 2 }
  0xe0   : > { %4378 = vmatprep.mubr.msk.bf16.mxu0 %vm509_vm3, %v5299_v3  ;;  %v1000_v3 = vsel %vm963_vm6, %v5560_v5, %v999_v59  ;;  %v2462_v59 = vrot.slane %v5937_v20, 3 }
  0xe1   : > { %v2447_v29 = vor.u32 %v2446_v27, %v2445_v54  ;;  %v5939_v27 = vld [vmem:[#allocation16_spill] sm:$0xff] }
  0xe3   : > { %v2448_v19 = vsel %vm2409_vm5, %v5334_v37, %v2447_v29  ;;  %v2452_v1 = vsel %vm2409_vm5, %v2447_v29, %v2451_v32  ;;  %v2458_v37 = vrot.slane %v5934_v16, 3 }
  0xe5   : > { %4209 = vmatmul.mubr.msk.bf16.gmra.mrb[28].mxu1 %vm509_vm3, %v5567_v24 }
  0xe6   : > { %4212 = vmatprep.mubr.msk.bf16.mxu1 %vm509_vm3, %v5571_v58 }
  0xe7   : > { %4379 = vmatmul.mubr.msk.bf16.gmra.mrb[8].mxu0 %vm509_vm3, %v5314_v14  ;;  %v5931_v14 = vld [vmem:[#allocation12_spill] sm:$0xff] }
  0xe8   : > { %4382 = vmatprep.mubr.msk.bf16.mxu0 %vm509_vm3, %v5327_v60  ;;  %v2453_v35 = vrot.slane %v5931_v14, 2  ;;  %v2454_v60 = vrot.slane %v5932_v53, 3 }
  0xea   : > { %v2455_v11 = vor.u32 %v2454_v60, %v2453_v35  ;;  %v5941_v35 = vld [vmem:[#allocation15_spill] sm:$0xff] }
  0xeb   : > { %v1576_v60 = vshrl.u32 %v5941_v35, 16 }
  0xec   : > { %v2456_v51 = vsel %vm2409_vm5, %v2451_v32, %v2455_v11  ;;  %v1579_v32 = vshll.u32 %v5941_v35, 16 }
  0xed   : > { %4213 = vmatmul.mubr.msk.bf16.gmra.mrb[32].mxu1 %vm509_vm3, %v1000_v3  ;;  %v2466_v3 = vrot.slane %v5939_v27, 3 }
  0xee   : > { %4218 = vmatprep.mubr.msk.bf16.mxu1 %vm509_vm3, %v5441_v7  ;;  %v5933_v7 = vld [vmem:[#allocation13_spill] sm:$0xff] }
  0xef   : > { %4383 = vmatmul.mubr.msk.bf16.gmra.mrb[12].mxu0 %vm509_vm3, %v5343_v42  ;;  %v2457_v61 = vrot.slane %v5933_v7, 2  ;;  %v5936_v42 = vld [vmem:[#allocation17_spill] sm:$0xff] }
  0xf0   : > { %4386 = vmatprep.mubr.msk.bf16.mxu0 %vm509_vm3, %v2448_v19  ;;  %v2461_v48 = vrot.slane %v5936_v42, 2  ;;  %v2470_v19 = vrot.slane %v5088_v39, 3 }
  0xf2   : > { %v2463_v6 = vor.u32 %v2462_v59, %v2461_v48 }
  0xf5   : > { %4219 = vmatmul.mubr.msk.bf16.vlgmr.msra.gmra.mrb[0].mxu1 %vm509_vm3, %v5444_v2  ;;  %v2459_v2 = vor.u32 %v2458_v37, %v2457_v61  ;;  %v2473_v37 = vrot.slane %v1576_v60, 2 }
  0xf6   : > { %4222 = vmatprep.mubr.msk.bf16.mxu1 %vm509_vm3, %v5461_v49  ;;  %4445 = vmatpush3.bf16.msra.mxu1 %v5935_v62  ;;  %v5938_v49 = vld [vmem:[#allocation18_spill] sm:$0xff] }
  0xf7   : > { %4387 = vmatmul.mubr.msk.bf16.gmra.mrb[16].mxu0 %vm509_vm3, %v2452_v1  ;;  %v2460_v54 = vsel %vm2409_vm5, %v2455_v11, %v2459_v2  ;;  %v2465_v30 = vrot.slane %v5938_v49, 2  ;;  %v2464_v29 = vsel %vm2409_vm5, %v2459_v2, %v2463_v6  ;;  %v2471_v11 = vor.u32 %v2470_v19, %v2469_v44 }
  0xf8   : > { %4390 = vmatprep.mubr.msk.bf16.mxu0 %vm509_vm3, %v2456_v51  ;;  %v2478_v1 = vshrl.u32 %v5191_v12, 16  ;;  %v2474_v51 = vrot.slane %v1579_v32, 3  ;;  %v2487_v2 = vshrl.u32 %v5501_v52, 16  ;;  %v2768_v19 = vrot.slane %v4896_v9, 3 }
  0xf9   : > { %v2773_v9 = vrot.slane %v4925_v31, 3 }
  0xfa   : > { %v2480_v48 = vrot.slane %v2478_v1, 2  ;;  %v1551_v1 = vrot.slane %v5929_v0, 1  ;;  %v2785_v0 = vrot.slane %v5048_v56, 3 }
  0xfd   : > { %4223 = vmatmul.mubr.msk.bf16.gmra.mrb[4].mxu1 %vm509_vm3, %v5464_v4  ;;  %v2467_v4 = vor.u32 %v2466_v3, %v2465_v30 }
  0xfe   : > { %4226 = vmatprep.mubr.msk.bf16.mxu1 %vm509_vm3, %v5477_v36  ;;  %v2481_v36 = vshll.u32 %v5191_v12, 16 }
  0xff   : > { %4391 = vmatmul.mubr.msk.bf16.gmra.mrb[20].mxu0 %vm509_vm3, %v2460_v54  ;;  %v2468_v61 = vsel %vm2409_vm5, %v2463_v6, %v2467_v4  ;;  %v2472_v62 = vsel %vm2409_vm5, %v2467_v4, %v2471_v11  ;;  %v2490_v6 = vshll.u32 %v5501_v52, 16  ;;  %v2769_v4 = vrot.slane %v4910_v17, 3 }
 0x100   : > { %4394 = vmatprep.mubr.msk.bf16.mxu0 %vm509_vm3, %v2464_v29  ;;  %v2483_v59 = vrot.slane %v2481_v36, 3  ;;  %v1552_v36 = vrot.slane %v5930_v40, 2  ;;  %v1556_v40 = vrot.slane %v5932_v53, 2 }
 0x101   : > { %v2492_v3 = vrot.slane %v2490_v6, 3  ;;  %v1564_v6 = vrot.slane %v5937_v20, 2 }
 0x102   : > { %v2484_v54 = vor.u32 %v2483_v59, %v2480_v48  ;;  %v1559_v48 = vrot.slane %v5933_v7, 1  ;;  %v1560_v59 = vrot.slane %v5934_v16, 2  ;;  %v2789_v7 = vrot.slane %v5085_v38, 3 }
 0x103   : > { %v1563_v16 = vrot.slane %v5936_v42, 1  ;;  %v2791_v42 = vrot.slane %v5122_v21, 3 }
 0x105   : > { %4227 = vmatmul.mubr.msk.bf16.gmra.mrb[8].mxu1 %vm509_vm3, %v5480_v22  ;;  %v2475_v22 = vor.u32 %v2474_v51, %v2473_v37  ;;  %v1553_v37 = vor.u32 %v1552_v36, %v1551_v1  ;;  %v5942_v51 = vld [vmem:[#allocation7_spill] sm:$0xff]  ;;  %v2792_v21 = vsel %vm2767_vm7, %v2789_v7, %v2791_v42 }
 0x106   : > { %4230 = vmatprep.mubr.msk.bf16.mxu1 %vm509_vm3, %v5493_v10  ;;  %v2489_v10 = vrot.slane %v2487_v2, 2  ;;  %v1561_v2 = vor.u32 %v1560_v59, %v1559_v48 }
 0x107   : > { %4395 = vmatmul.mubr.msk.bf16.gmra.mrb[24].mxu0 %vm509_vm3, %v2468_v61  ;;  %v2476_v30 = vsel %vm2409_vm5, %v2471_v11, %v2475_v22  ;;  %v2485_v29 = vsel %vm2409_vm5, %v2475_v22, %v2484_v54  ;;  %v2771_v11 = vrot.slane %v4913_v18, 3  ;;  %v2777_v18 = vrot.slane %v4959_v50, 3 }
 0x108   : > { %4398 = vmatprep.mubr.msk.bf16.mxu0 %vm509_vm3, %v2472_v62  ;;  %v2493_v44 = vor.u32 %v2492_v3, %v2489_v10  ;;  %v2781_v50 = vrot.slane %v5014_v23, 3  ;;  %v2783_v23 = vrot.slane %v5021_v28, 3  ;;  %v1554_v62 = vsel %vm1507_vm2, %v5942_v51, %v1553_v37 }
 0x109   : > { %v2772_v17 = vsel %vm2767_vm7, %v2769_v4, %v2771_v11  ;;  %v1568_v10 = vrot.slane %v5939_v27, 2  ;;  %v1571_v27 = vrot.slane %v5940_v15, 1  ;;  %v1585_v15 = vshrl.u32 %v5373_v57, 16 }
 0x10a   : > { %v2784_v22 = vsel %vm2767_vm7, %v2781_v50, %v2783_v23  ;;  %v2786_v28 = vsel %vm2767_vm7, %v2783_v23, %v2785_v0 }
 0x10d   : > { %4231 = vmatmul.mubr.msk.bf16.gmra.mrb[12].mxu1 %vm509_vm3, %v5496_v45  ;;  %v2494_v45 = vsel %vm2409_vm5, %v2484_v54, %v2493_v44  ;;  %v1572_v44 = vrot.slane %v5088_v39, 2  ;;  %v1588_v39 = vshll.u32 %v5373_v57, 16 }
 0x10e   : > { %4234 = vmatprep.mubr.msk.bf16.mxu1 %vm509_vm3, %v5513_v43  ;;  %v2770_v43 = vsel %vm2767_vm7, %v2768_v19, %v2769_v4  ;;  %v1578_v4 = vrot.slane %v1576_v60, 1  ;;  %v2795_v60 = vrot.slane %v5160_v47, 3  ;;  %v2799_v47 = vrot.slane %v5941_v35, 3 }
 0x10f   : > { %4399 = vmatmul.mubr.msk.bf16.gmra.mrb[28].mxu0 %vm509_vm3, %v2476_v30  ;;  %v1567_v30 = vrot.slane %v5938_v49, 1  ;;  %v2793_v49 = vrot.slane %v5133_v8, 3 }
 0x110   : > { %4402 = vmatprep.mubr.msk.bf16.mxu0 %vm509_vm3, %v2485_v29  ;;  %v1565_v29 = vor.u32 %v1564_v6, %v1563_v16 }
 0x111   : > { %v1569_v38 = vor.u32 %v1568_v10, %v1567_v30  ;;  %v2794_v8 = vsel %vm2767_vm7, %v2791_v42, %v2793_v49 }
 0x112   : > { %v1566_v20 = vsel %vm1507_vm2, %v1561_v2, %v1565_v29 }
 0x113   : > { %v1570_v19 = vsel %vm1507_vm2, %v1565_v29, %v1569_v38 }
 0x115   : > { %4235 = vmatmul.mubr.msk.bf16.gmra.mrb[16].mxu1 %vm509_vm3, %v5516_v55  ;;  %v2774_v55 = vsel %vm2767_vm7, %v2771_v11, %v2773_v9 }
 0x116   : > { %4238 = vmatprep.mubr.msk.bf16.mxu1 %vm509_vm3, %v5531_v33  ;;  %v2775_v33 = vrot.slane %v4942_v41, 3  ;;  %v2779_v41 = vrot.slane %v4987_v63, 3  ;;  %v1281_v63 = vrot.slane %v5373_v57, 1 }
 0x117   : > { %4403 = vmatmul.mubr.msk.bf16.gmra.mrb[32].mxu0 %vm509_vm3, %v2494_v45  ;;  %v1581_v45 = vrot.slane %v1579_v32, 2 }
 0x118   : > { %4408 = vmatprep.mubr.msk.bf16.mxu0 %vm509_vm3, %v2770_v43  ;;  %v2776_v31 = vsel %vm2767_vm7, %v2773_v9, %v2775_v33  ;;  %v2782_v61 = vsel %vm2767_vm7, %v2779_v41, %v2781_v50  ;;  %v1573_v43 = vor.u32 %v1572_v44, %v1571_v27  ;;  %v2797_v9 = vrot.slane %v5068_v13, 3 }
 0x119   : > { %v1582_v11 = vor.u32 %v1581_v45, %v1578_v4  ;;  %v2803_v50 = vrot.slane %v5501_v52, 3 }
 0x11a   : > { %v1574_v32 = vsel %vm1507_vm2, %v1569_v38, %v1573_v43  ;;  %v2798_v57 = vsel %vm2767_vm7, %v2795_v60, %v2797_v9 }
 0x11d   : > { %4239 = vmatmul.mubr.msk.bf16.gmra.mrb[20].mxu1 %vm509_vm3, %v5534_v34  ;;  %v2778_v34 = vsel %vm2767_vm7, %v2775_v33, %v2777_v18  ;;  %v1583_v33 = vsel %vm1507_vm2, %v1573_v43, %v1582_v11 }
 0x11e   : > { %4242 = vmatprep.mubr.msk.bf16.mxu1 %vm509_vm3, %v5549_v26  ;;  %v1279_v26 = vrot.slane %v5941_v35, 1 }
 0x11f   : > { %4409 = vmatmul.mubr.msk.bf16.vlgmr.msra.gmra.mrb[0].mxu0 %vm509_vm3, %v2772_v17  ;;  %v1587_v17 = vrot.slane %v1585_v15, 1 }
 0x120   : > { %4412 = vmatprep.mubr.msk.bf16.mxu0 %vm509_vm3, %v2774_v55  ;;  %v1590_v55 = vrot.slane %v1588_v39, 2 }
 0x125   : > { %4243 = vmatmul.mubr.msk.bf16.gmra.mrb[24].mxu1 %vm509_vm3, %v5552_v46  ;;  %v1280_v46 = vsel %vm963_vm6, %v5560_v5, %v1279_v26  ;;  %v1282_v5 = vsel %vm963_vm6, %v1279_v26, %v1281_v63  ;;  %v2800_v26 = vsel %vm2767_vm7, %v2797_v9, %v2799_v47 }
 0x126   : > { %4246 = vmatprep.mubr.msk.bf16.mxu1 %vm509_vm3, %v5567_v24  ;;  %v2780_v24 = vsel %vm2767_vm7, %v2777_v18, %v2779_v41  ;;  %v2796_v18 = vsel %vm2767_vm7, %v2793_v49, %v2795_v60 }
 0x127   : > { %4413 = vmatmul.mubr.msk.bf16.gmra.mrb[4].mxu0 %vm509_vm3, %v2776_v31  ;;  %v1591_v31 = vor.u32 %v1590_v55, %v1587_v17 }
 0x128   : > { %4416 = vmatprep.mubr.msk.bf16.mxu0 %vm509_vm3, %v2778_v34  ;;  %v2801_v34 = vrot.slane %v5191_v12, 3 }
 0x129   : > { %v1592_v13 = vsel %vm1507_vm2, %v1582_v11, %v1591_v31 }
 0x12a   : > { %v2802_v41 = vsel %vm2767_vm7, %v2799_v47, %v2801_v34 }
 0x12d   : > { %4247 = vmatmul.mubr.msk.bf16.gmra.mrb[28].mxu1 %vm509_vm3, %v5571_v58  ;;  %v1555_v58 = vrot.slane %v5931_v14, 1  ;;  %v2787_v14 = vrot.slane %v5076_v25, 3 }
 0x12e   : > { %4250 = vmatprep.mubr.msk.bf16.mxu1 %vm509_vm3, %v1280_v46  ;;  %v2804_v46 = vsel %vm2767_vm7, %v2801_v34, %v2803_v50 }
 0x12f   : > { %4417 = vmatmul.mubr.msk.bf16.gmra.mrb[8].mxu0 %vm509_vm3, %v2780_v24  ;;  %v1557_v56 = vor.u32 %v1556_v40, %v1555_v58  ;;  %v2788_v3 = vsel %vm2767_vm7, %v2785_v0, %v2787_v14  ;;  %v2790_v25 = vsel %vm2767_vm7, %v2787_v14, %v2789_v7 }
 0x130   : > { %4420 = vmatprep.mubr.msk.bf16.mxu0 %vm509_vm3, %v2782_v61 }
 0x131   : > { %v1558_v53 = vsel %vm1507_vm2, %v1553_v37, %v1557_v56  ;;  %v1562_v54 = vsel %vm1507_vm2, %v1557_v56, %v1561_v2  ;;  %v5789_v2 = vld [vmem:[%s5874_s2] ss:$0 sm:$0xff] }
 0x135   : > { %4251 = vmatmul.mubr.msk.bf16.gmra.mrb[32].mxu1 %vm509_vm3, %v1282_v5 }
 0x136   : > { %4276 = vmatprep.mubr.msk.bf16.mxu1 %vm509_vm3, %v1554_v62 }
 0x137   : > { %4421 = vmatmul.mubr.msk.bf16.gmra.mrb[12].mxu0 %vm509_vm3, %v2784_v22 }
 0x138   : > { %4424 = vmatprep.mubr.msk.bf16.mxu0 %vm509_vm3, %v2786_v28 }
 0x13d   : > { %4277 = vmatmul.mubr.msk.bf16.vlgmr.msra.gmra.mrb[20].mxu1 %vm509_vm3, %v1558_v53 }
 0x13e   : > { %4280 = vmatprep.mubr.msk.bf16.mxu1 %vm509_vm3, %v1562_v54 }
 0x13f   : > { %4425 = vmatmul.mubr.msk.bf16.gmra.mrb[16].mxu0 %vm509_vm3, %v2788_v3 }
 0x140   : > { %4428 = vmatprep.mubr.msk.bf16.mxu0 %vm509_vm3, %v2790_v25 }
 0x145   : > { %4281 = vmatmul.mubr.msk.bf16.gmra.mrb[24].mxu1 %vm509_vm3, %v1566_v20 }
 0x146   : > { %4284 = vmatprep.mubr.msk.bf16.mxu1 %vm509_vm3, %v1570_v19 }
 0x147   : > { %4429 = vmatmul.mubr.msk.bf16.gmra.mrb[20].mxu0 %vm509_vm3, %v2792_v21 }
 0x148   : > { %4432 = vmatprep.mubr.msk.bf16.mxu0 %vm509_vm3, %v2794_v8 }
 0x14d   : > { %4285 = vmatmul.mubr.msk.bf16.gmra.mrb[28].mxu1 %vm509_vm3, %v1574_v32 }
 0x14e   : > { %4288 = vmatprep.mubr.msk.bf16.mxu1 %vm509_vm3, %v1583_v33 }
 0x14f   : > { %4433 = vmatmul.mubr.msk.bf16.gmra.mrb[24].mxu0 %vm509_vm3, %v2796_v18 }
 0x150   : > { %4436 = vmatprep.mubr.msk.bf16.mxu0 %vm509_vm3, %v2798_v57 }
 0x155   : > { %4289 = vmatmul.mubr.msk.bf16.gmra.mrb[32].mxu1 %vm509_vm3, %v1592_v13 }
 0x157   : > { %4437 = vmatmul.mubr.msk.bf16.gmra.mrb[28].mxu0 %vm509_vm3, %v2800_v26 }
 0x158   : > { %4440 = vmatprep.mubr.msk.bf16.mxu0 %vm509_vm3, %v2802_v41 }
 0x15f   : > { %4441 = vmatmul.mubr.msk.bf16.gmra.mrb[32].mxu0 %vm509_vm3, %v2804_v46 }
 0x1c8   : > { %v4220_v35 = vpop.f32.mrb[0].mxu1 }
 0x1c9   : > { %v1326_v1 = vpop.f32.mrb[1].mxu1 }
 0x1ca   : > { %v4221_v36 = vpop.f32.mrb[2].mxu1 }
 0x1cb   : > { %v1329_v12 = vpop.f32.mrb[3].mxu1 }
 0x1d0   : > { %v4224_v24 = vpop.f32.mrb[4].mxu1 }
 0x1d1   : > { %v1342_v61 = vpop.f32.mrb[5].mxu1 }
 0x1d2   : > { %v4225_v63 = vpop.f32.mrb[6].mxu1 }
 0x1d3   : > { %v1345_v37 = vpop.f32.mrb[7].mxu1 }
 0x1d8   : > { %v5762_v23 = vpop.f32.mrb[8].mxu1 }
 0x1d9   : > { %v5764_v5 = vpop.f32.mrb[9].mxu1 }
 0x1da   : > { %v5766_v0 = vpop.f32.mrb[10].mxu1 }
 0x1db   : > { %v5768_v58 = vpop.f32.mrb[11].mxu1 }
 0x1e0   : > { %v5770_v52 = vpop.f32.mrb[12].mxu1 }
 0x1e1   : > { %v5772_v40 = vpop.f32.mrb[13].mxu1 }
 0x1e2   : > { %v5774_v51 = vpop.f32.mrb[14].mxu1 }
 0x1e3   : > { %v5776_v62 = vpop.f32.mrb[15].mxu1 }
 0x1e8   : > { %v5778_v48 = vpop.f32.mrb[16].mxu1 }
 0x1e9   : > { %v5780_v59 = vpop.f32.mrb[17].mxu1 }
 0x1ea   : > { %v5782_v22 = vpop.f32.mrb[18].mxu1 }
 0x1eb   : > { %v5784_v28 = vpop.f32.mrb[19].mxu1 }
 0x1f2   : > { %v4410_v56 = vpop.f32.mrb[0].mxu0 }
 0x1f3   : > { %v4446_v14 = vadd.f32 %v4410_v56, %v4220_v35  ;;  %v2896_v53 = vpop.f32.mrb[1].mxu0 }
 0x1f4   : > { %v4447_v7 = vadd.f32 %v2896_v53, %v1326_v1  ;;  %v4411_v16 = vpop.f32.mrb[2].mxu0 }
 0x1f5   : > { %v3084_v6 = vadd.f32 %v4446_v14, %v5789_v2  ;;  %v4448_v54 = vadd.f32 %v4411_v16, %v4221_v36  ;;  %v2899_v30 = vpop.f32.mrb[3].mxu0 }
 0x1f6   : > { %v3082_v10 = vadd.f32 %v4447_v7, %v5789_v2  ;;  %v4449_v3 = vadd.f32 %v2899_v30, %v1329_v12 }
 0x1f7   : > { %vm3120_vm8 = vcmp.ge.f32.partialorder %v3084_v6, 0.0  ;;  %v3156_v25 = vmul.f32 0.2, %v3084_v6  ;;  %v3085_v29 = vadd.f32 %v4448_v54, %v5789_v2 }
 0x1f8   : > { %vm3118_vm9 = vcmp.ge.f32.partialorder %v3082_v10, 0.0  ;;  %v3154_v38 = vmul.f32 0.2, %v3082_v10  ;;  %v3083_v42 = vadd.f32 %v4449_v3, %v5789_v2 }
 0x1f9   : > { %v3192_v20 = vsel %vm3120_vm8, %v3084_v6, %v3156_v25  ;;  %vm3121_vm10 = vcmp.ge.f32.partialorder %v3085_v29, 0.0  ;;  %v3157_v49 = vmul.f32 0.2, %v3085_v29 }
 0x1fa   : > { %v3190_v27 = vsel %vm3118_vm9, %v3082_v10, %v3154_v38  ;;  %vm3119_vm11 = vcmp.ge.f32.partialorder %v3083_v42, 0.0  ;;  %v3155_v44 = vmul.f32 0.2, %v3083_v42  ;;  %v4414_v19 = vpop.f32.mrb[4].mxu0  ;;  %v3228_v8 = vmul.f32 1.4142135, %v3192_v20 }
 0x1fb   : > { %v3193_v4 = vsel %vm3121_vm10, %v3085_v29, %v3157_v49  ;;  %v4450_v45 = vadd.f32 %v4414_v19, %v4224_v24  ;;  %v2912_v21 = vpop.f32.mrb[5].mxu0  ;;  %v3226_v60 = vmul.f32 1.4142135, %v3190_v27 }
 0x1fc   : > { %v3229_v43 = vmul.f32 1.4142135, %v3193_v4  ;;  %v3191_v15 = vsel %vm3119_vm11, %v3083_v42, %v3155_v44  ;;  %v4451_v39 = vadd.f32 %v2912_v21, %v1342_v61  ;;  %v4415_v11 = vpop.f32.mrb[6].mxu0 }
 0x1fd   : > { %v3227_v32 = vmul.f32 1.4142135, %v3191_v15  ;;  %v3088_v9 = vadd.f32 %v4450_v45, %v5789_v2  ;;  %v4452_v17 = vadd.f32 %v4415_v11, %v4225_v63  ;;  %v2915_v55 = vpop.f32.mrb[7].mxu0 }
 0x1fe   : > { %v3832_v33 = vpack.c.bf16 %v3229_v43, %v3228_v8  ;;  %v3086_v18 = vadd.f32 %v4451_v39, %v5789_v2  ;;  %v4453_v57 = vadd.f32 %v2915_v55, %v1345_v37 }
 0x1ff   : > { %v3827_v31 = vpack.c.bf16 %v3227_v32, %v3226_v60  ;;  %vm3124_vm12 = vcmp.ge.f32.partialorder %v3088_v9, 0.0  ;;  %v3160_v47 = vmul.f32 0.2, %v3088_v9  ;;  %v3089_v13 = vadd.f32 %v4452_v17, %v5789_v2 }
 0x200   : > { %3914 = vst [vmem:[%s5799_s20 + $0x8] sm:$0xff] %v3832_v33   ;;  %vm3122_vm13 = vcmp.ge.f32.partialorder %v3086_v18, 0.0  ;;  %v3158_v34 = vmul.f32 0.2, %v3086_v18  ;;  %v3087_v26 = vadd.f32 %v4453_v57, %v5789_v2 }
 0x201   : > { %3828 = vst [vmem:[%s5799_s20] sm:$0xff] %v3827_v31   ;;  %v3196_v41 = vsel %vm3124_vm12, %v3088_v9, %v3160_v47  ;;  %vm3125_vm14 = vcmp.ge.f32.partialorder %v3089_v13, 0.0  ;;  %v3161_v50 = vmul.f32 0.2, %v3089_v13 }
 0x202   : > { %v3194_v46 = vsel %vm3122_vm13, %v3086_v18, %v3158_v34  ;;  %vm3123_vm15 = vcmp.ge.f32.partialorder %v3087_v26, 0.0  ;;  %v3159_v35 = vmul.f32 0.2, %v3087_v26  ;;  %v4418_v1 = vpop.f32.mrb[8].mxu0  ;;  %v3232_v61 = vmul.f32 1.4142135, %v3196_v41 }
 0x203   : > { %v3197_v36 = vsel %vm3125_vm14, %v3089_v13, %v3161_v50  ;;  %v4454_v12 = vadd.f32 %v4418_v1, %v5762_v23  ;;  %v2928_v24 = vpop.f32.mrb[9].mxu0  ;;  %v3230_v53 = vmul.f32 1.4142135, %v3194_v46 }
 0x204   : > { %v3233_v63 = vmul.f32 1.4142135, %v3197_v36  ;;  %v3195_v37 = vsel %vm3123_vm15, %v3087_v26, %v3159_v35  ;;  %v4455_v56 = vadd.f32 %v2928_v24, %v5764_v5  ;;  %v4419_v14 = vpop.f32.mrb[10].mxu0 }
 0x205   : > { %v3231_v7 = vmul.f32 1.4142135, %v3195_v37  ;;  %v3092_v16 = vadd.f32 %v4454_v12, %v5789_v2  ;;  %v4456_v6 = vadd.f32 %v4419_v14, %v5766_v0  ;;  %v2931_v54 = vpop.f32.mrb[11].mxu0 }
 0x206   : > { %v3842_v30 = vpack.c.bf16 %v3233_v63, %v3232_v61  ;;  %v3090_v10 = vadd.f32 %v4455_v56, %v5789_v2  ;;  %v4457_v23 = vadd.f32 %v2931_v54, %v5768_v58 }
 0x207   : > { %v3837_v3 = vpack.c.bf16 %v3231_v7, %v3230_v53  ;;  %vm3128_vm0 = vcmp.ge.f32.partialorder %v3092_v16, 0.0  ;;  %v3164_v25 = vmul.f32 0.2, %v3092_v16  ;;  %v3093_v29 = vadd.f32 %v4456_v6, %v5789_v2 }
 0x208   : > { %3916 = vst [vmem:[%s5799_s20 + $0x18] sm:$0xff] %v3842_v30   ;;  %vm3126_vm1 = vcmp.ge.f32.partialorder %v3090_v10, 0.0  ;;  %v3162_v5 = vmul.f32 0.2, %v3090_v10  ;;  %v3091_v38 = vadd.f32 %v4457_v23, %v5789_v2 }
 0x209   : > { %3915 = vst [vmem:[%s5799_s20 + $0x10] sm:$0xff] %v3837_v3   ;;  %v3200_v42 = vsel %vm3128_vm0, %v3092_v16, %v3164_v25  ;;  %vm3129_vm2 = vcmp.ge.f32.partialorder %v3093_v29, 0.0  ;;  %v3165_v0 = vmul.f32 0.2, %v3093_v29 }
 0x20a   : > { %v3198_v20 = vsel %vm3126_vm1, %v3090_v10, %v3162_v5  ;;  %vm3127_vm3 = vcmp.ge.f32.partialorder %v3091_v38, 0.0  ;;  %v3163_v49 = vmul.f32 0.2, %v3091_v38  ;;  %v4422_v27 = vpop.f32.mrb[12].mxu0  ;;  %v3236_v4 = vmul.f32 1.4142135, %v3200_v42 }
 0x20b   : > { %v3201_v44 = vsel %vm3129_vm2, %v3093_v29, %v3165_v0  ;;  %v4458_v58 = vadd.f32 %v4422_v27, %v5770_v52  ;;  %v2944_v19 = vpop.f32.mrb[13].mxu0  ;;  %v3234_v15 = vmul.f32 1.4142135, %v3198_v20 }
 0x20c   : > { %v3237_v45 = vmul.f32 1.4142135, %v3201_v44  ;;  %v3199_v21 = vsel %vm3127_vm3, %v3091_v38, %v3163_v49  ;;  %v4459_v8 = vadd.f32 %v2944_v19, %v5772_v40  ;;  %v4423_v43 = vpop.f32.mrb[14].mxu0 }
 0x20d   : > { %v3235_v39 = vmul.f32 1.4142135, %v3199_v21  ;;  %v3096_v11 = vadd.f32 %v4458_v58, %v5789_v2  ;;  %v4460_v60 = vadd.f32 %v4423_v43, %v5774_v51  ;;  %v2947_v32 = vpop.f32.mrb[15].mxu0 }
 0x20e   : > { %v3852_v9 = vpack.c.bf16 %v3237_v45, %v3236_v4  ;;  %v3094_v17 = vadd.f32 %v4459_v8, %v5789_v2  ;;  %v4461_v52 = vadd.f32 %v2947_v32, %v5776_v62 }
 0x20f   : > { %v3847_v55 = vpack.c.bf16 %v3235_v39, %v3234_v15  ;;  %vm3132_vm4 = vcmp.ge.f32.partialorder %v3096_v11, 0.0  ;;  %v3168_v33 = vmul.f32 0.2, %v3096_v11  ;;  %v3097_v18 = vadd.f32 %v4460_v60, %v5789_v2 }
 0x210   : > { %v4278_v40 = vpop.f32.mrb[20].mxu1  ;;  %3918 = vst [vmem:[%s5799_s20 + $0x28] sm:$0xff] %v3852_v9   ;;  %vm3130_vm5 = vcmp.ge.f32.partialorder %v3094_v17, 0.0  ;;  %v3166_v57 = vmul.f32 0.2, %v3094_v17  ;;  %v3095_v31 = vadd.f32 %v4461_v52, %v5789_v2 }
 0x211   : > { %v1764_v47 = vpop.f32.mrb[21].mxu1  ;;  %3917 = vst [vmem:[%s5799_s20 + $0x20] sm:$0xff] %v3847_v55   ;;  %v3204_v51 = vsel %vm3132_vm4, %v3096_v11, %v3168_v33  ;;  %vm3133_vm6 = vcmp.ge.f32.partialorder %v3097_v18, 0.0  ;;  %v3169_v13 = vmul.f32 0.2, %v3097_v18 }
 0x212   : > { %v4279_v34 = vpop.f32.mrb[22].mxu1  ;;  %v3202_v26 = vsel %vm3130_vm5, %v3094_v17, %v3166_v57  ;;  %vm3131_vm7 = vcmp.ge.f32.partialorder %v3095_v31, 0.0  ;;  %v3167_v62 = vmul.f32 0.2, %v3095_v31  ;;  %v4426_v41 = vpop.f32.mrb[16].mxu0 }
 0x213   : > { %v3205_v50 = vsel %vm3133_vm6, %v3097_v18, %v3169_v13  ;;  %v4462_v46 = vadd.f32 %v4426_v41, %v5778_v48  ;;  %v2960_v35 = vpop.f32.mrb[17].mxu0  ;;  %v1767_v1 = vpop.f32.mrb[23].mxu1  ;;  %v3240_v36 = vmul.f32 1.4142135, %v3204_v51  ;;  %v3238_v37 = vmul.f32 1.4142135, %v3202_v26 }
 0x214   : > { %v3241_v12 = vmul.f32 1.4142135, %v3205_v50  ;;  %v3203_v24 = vsel %vm3131_vm7, %v3095_v31, %v3167_v62  ;;  %v4463_v61 = vadd.f32 %v2960_v35, %v5780_v59  ;;  %v4427_v63 = vpop.f32.mrb[18].mxu0 }
 0x215   : > { %v3239_v56 = vmul.f32 1.4142135, %v3203_v24  ;;  %v3100_v14 = vadd.f32 %v4462_v46, %v5789_v2  ;;  %v4464_v53 = vadd.f32 %v4427_v63, %v5782_v22  ;;  %v2963_v7 = vpop.f32.mrb[19].mxu0 }
 0x216   : > { %v3862_v16 = vpack.c.bf16 %v3241_v12, %v3240_v36  ;;  %v3098_v48 = vadd.f32 %v4463_v61, %v5789_v2  ;;  %v4465_v6 = vadd.f32 %v2963_v7, %v5784_v28 }
 0x217   : > { %v3857_v54 = vpack.c.bf16 %v3239_v56, %v3238_v37  ;;  %vm3136_vm8 = vcmp.ge.f32.partialorder %v3100_v14, 0.0  ;;  %v3172_v30 = vmul.f32 0.2, %v3100_v14  ;;  %v3101_v10 = vadd.f32 %v4464_v53, %v5789_v2 }
 0x218   : > { %v4282_v59 = vpop.f32.mrb[24].mxu1  ;;  %3920 = vst [vmem:[%s5799_s20 + $0x38] sm:$0xff] %v3862_v16   ;;  %vm3134_vm9 = vcmp.ge.f32.partialorder %v3098_v48, 0.0  ;;  %v3170_v23 = vmul.f32 0.2, %v3098_v48  ;;  %v3099_v3 = vadd.f32 %v4465_v6, %v5789_v2 }
 0x219   : > { %v1780_v25 = vpop.f32.mrb[25].mxu1  ;;  %3919 = vst [vmem:[%s5799_s20 + $0x30] sm:$0xff] %v3857_v54   ;;  %v3208_v22 = vsel %vm3136_vm8, %v3100_v14, %v3172_v30  ;;  %vm3137_vm10 = vcmp.ge.f32.partialorder %v3101_v10, 0.0  ;;  %v3173_v29 = vmul.f32 0.2, %v3101_v10 }
 0x21a   : > { %v4283_v5 = vpop.f32.mrb[26].mxu1  ;;  %v3206_v38 = vsel %vm3134_vm9, %v3098_v48, %v3170_v23  ;;  %vm3135_vm11 = vcmp.ge.f32.partialorder %v3099_v3, 0.0  ;;  %v3171_v28 = vmul.f32 0.2, %v3099_v3  ;;  %v4430_v42 = vpop.f32.mrb[20].mxu0 }
 0x21b   : > { %v3209_v0 = vsel %vm3137_vm10, %v3101_v10, %v3173_v29  ;;  %v4466_v20 = vadd.f32 %v4430_v42, %v4278_v40  ;;  %v2976_v49 = vpop.f32.mrb[21].mxu0  ;;  %v1783_v27 = vpop.f32.mrb[27].mxu1  ;;  %v3244_v44 = vmul.f32 1.4142135, %v3208_v22  ;;  %v3242_v21 = vmul.f32 1.4142135, %v3206_v38 }
 0x21c   : > { %v3245_v58 = vmul.f32 1.4142135, %v3209_v0  ;;  %v3207_v19 = vsel %vm3135_vm11, %v3099_v3, %v3171_v28  ;;  %v4467_v4 = vadd.f32 %v2976_v49, %v1764_v47  ;;  %v4431_v45 = vpop.f32.mrb[22].mxu0 }
 0x21d   : > { %v3243_v8 = vmul.f32 1.4142135, %v3207_v19  ;;  %v3104_v43 = vadd.f32 %v4466_v20, %v5789_v2  ;;  %v4468_v15 = vadd.f32 %v4431_v45, %v4279_v34  ;;  %v2979_v39 = vpop.f32.mrb[23].mxu0 }
 0x21e   : > { %v3872_v11 = vpack.c.bf16 %v3245_v58, %v3244_v44  ;;  %v3102_v60 = vadd.f32 %v4467_v4, %v5789_v2  ;;  %v4469_v32 = vadd.f32 %v2979_v39, %v1767_v1 }
 0x21f   : > { %v3867_v9 = vpack.c.bf16 %v3243_v8, %v3242_v21  ;;  %vm3140_vm12 = vcmp.ge.f32.partialorder %v3104_v43, 0.0  ;;  %v3176_v17 = vmul.f32 0.2, %v3104_v43  ;;  %v3105_v52 = vadd.f32 %v4468_v15, %v5789_v2 }
 0x220   : > { %v4286_v55 = vpop.f32.mrb[28].mxu1  ;;  %3922 = vst [vmem:[%s5799_s20 + $0x48] sm:$0xff] %v3872_v11   ;;  %vm3138_vm13 = vcmp.ge.f32.partialorder %v3102_v60, 0.0  ;;  %v3174_v33 = vmul.f32 0.2, %v3102_v60  ;;  %v3103_v18 = vadd.f32 %v4469_v32, %v5789_v2 }
 0x221   : > { %v1796_v40 = vpop.f32.mrb[29].mxu1  ;;  %3921 = vst [vmem:[%s5799_s20 + $0x40] sm:$0xff] %v3867_v9   ;;  %v3212_v57 = vsel %vm3140_vm12, %v3104_v43, %v3176_v17  ;;  %vm3141_vm14 = vcmp.ge.f32.partialorder %v3105_v52, 0.0  ;;  %v3177_v31 = vmul.f32 0.2, %v3105_v52 }
 0x222   : > { %v4287_v47 = vpop.f32.mrb[30].mxu1  ;;  %v3210_v51 = vsel %vm3138_vm13, %v3102_v60, %v3174_v33  ;;  %vm3139_vm15 = vcmp.ge.f32.partialorder %v3103_v18, 0.0  ;;  %v3175_v13 = vmul.f32 0.2, %v3103_v18  ;;  %v4434_v34 = vpop.f32.mrb[24].mxu0 }
 0x223   : > { %v3213_v26 = vsel %vm3141_vm14, %v3105_v52, %v3177_v31  ;;  %v4470_v62 = vadd.f32 %v4434_v34, %v4282_v59  ;;  %v2992_v41 = vpop.f32.mrb[25].mxu0  ;;  %v1799_v50 = vpop.f32.mrb[31].mxu1  ;;  %v3248_v46 = vmul.f32 1.4142135, %v3212_v57  ;;  %v3246_v24 = vmul.f32 1.4142135, %v3210_v51 }
 0x224   : > { %v3249_v35 = vmul.f32 1.4142135, %v3213_v26  ;;  %v3211_v1 = vsel %vm3139_vm15, %v3103_v18, %v3175_v13  ;;  %v4471_v36 = vadd.f32 %v2992_v41, %v1780_v25  ;;  %v4435_v12 = vpop.f32.mrb[26].mxu0 }
 0x225   : > { %v3247_v61 = vmul.f32 1.4142135, %v3211_v1  ;;  %v3108_v63 = vadd.f32 %v4470_v62, %v5789_v2  ;;  %v4472_v37 = vadd.f32 %v4435_v12, %v4283_v5  ;;  %v2995_v56 = vpop.f32.mrb[27].mxu0 }
 0x226   : > { %v3882_v14 = vpack.c.bf16 %v3249_v35, %v3248_v46  ;;  %v3106_v53 = vadd.f32 %v4471_v36, %v5789_v2  ;;  %v4473_v7 = vadd.f32 %v2995_v56, %v1783_v27 }
 0x227   : > { %v3877_v16 = vpack.c.bf16 %v3247_v61, %v3246_v24  ;;  %vm3144_vm0 = vcmp.ge.f32.partialorder %v3108_v63, 0.0  ;;  %v3180_v48 = vmul.f32 0.2, %v3108_v63  ;;  %v3109_v6 = vadd.f32 %v4472_v37, %v5789_v2 }
 0x228   : > { %v4290_v54 = vpop.f32.mrb[32].mxu1  ;;  %3924 = vst [vmem:[%s5799_s20 + $0x58] sm:$0xff] %v3882_v14   ;;  %vm3142_vm1 = vcmp.ge.f32.partialorder %v3106_v53, 0.0  ;;  %v3178_v30 = vmul.f32 0.2, %v3106_v53  ;;  %v3107_v10 = vadd.f32 %v4473_v7, %v5789_v2 }
 0x229   : > { %v1812_v59 = vpop.f32.mrb[33].mxu1  ;;  %3923 = vst [vmem:[%s5799_s20 + $0x50] sm:$0xff] %v3877_v16   ;;  %v3216_v23 = vsel %vm3144_vm0, %v3108_v63, %v3180_v48  ;;  %vm3145_vm2 = vcmp.ge.f32.partialorder %v3109_v6, 0.0  ;;  %v3181_v3 = vmul.f32 0.2, %v3109_v6 }
 0x22a   : > { %v4291_v25 = vpop.f32.mrb[34].mxu1  ;;  %v3214_v22 = vsel %vm3142_vm1, %v3106_v53, %v3178_v30  ;;  %vm3143_vm3 = vcmp.ge.f32.partialorder %v3107_v10, 0.0  ;;  %v3179_v29 = vmul.f32 0.2, %v3107_v10  ;;  %v4438_v5 = vpop.f32.mrb[28].mxu0 }
 0x22b   : > { %v3217_v38 = vsel %vm3145_vm2, %v3109_v6, %v3181_v3  ;;  %v4474_v28 = vadd.f32 %v4438_v5, %v4286_v55  ;;  %v3008_v42 = vpop.f32.mrb[29].mxu0  ;;  %v1815_v0 = vpop.f32.mrb[35].mxu1  ;;  %v3252_v20 = vmul.f32 1.4142135, %v3216_v23  ;;  %v3250_v19 = vmul.f32 1.4142135, %v3214_v22 }
 0x22c   : > { %v3253_v49 = vmul.f32 1.4142135, %v3217_v38  ;;  %v3215_v27 = vsel %vm3143_vm3, %v3107_v10, %v3179_v29  ;;  %v4475_v44 = vadd.f32 %v3008_v42, %v1796_v40  ;;  %v4439_v58 = vpop.f32.mrb[30].mxu0 }
 0x22d   : > { %v3251_v4 = vmul.f32 1.4142135, %v3215_v27  ;;  %v3112_v45 = vadd.f32 %v4474_v28, %v5789_v2  ;;  %v4476_v21 = vadd.f32 %v4439_v58, %v4287_v47  ;;  %v3011_v8 = vpop.f32.mrb[31].mxu0 }
 0x22e   : > { %v3892_v43 = vpack.c.bf16 %v3253_v49, %v3252_v20  ;;  %v3110_v15 = vadd.f32 %v4475_v44, %v5789_v2  ;;  %v4477_v39 = vadd.f32 %v3011_v8, %v1799_v50 }
 0x22f   : > { %v3887_v11 = vpack.c.bf16 %v3251_v4, %v3250_v19  ;;  %vm3148_vm4 = vcmp.ge.f32.partialorder %v3112_v45, 0.0  ;;  %v3184_v60 = vmul.f32 0.2, %v3112_v45  ;;  %v3113_v32 = vadd.f32 %v4476_v21, %v5789_v2 }
 0x230   : > { %3926 = vst [vmem:[%s5799_s20 + $0x68] sm:$0xff] %v3892_v43   ;;  %vm3146_vm5 = vcmp.ge.f32.partialorder %v3110_v15, 0.0  ;;  %v3182_v9 = vmul.f32 0.2, %v3110_v15  ;;  %v3111_v17 = vadd.f32 %v4477_v39, %v5789_v2 }
 0x231   : > { %3925 = vst [vmem:[%s5799_s20 + $0x60] sm:$0xff] %v3887_v11   ;;  %v3220_v52 = vsel %vm3148_vm4, %v3112_v45, %v3184_v60  ;;  %vm3149_vm6 = vcmp.ge.f32.partialorder %v3113_v32, 0.0  ;;  %v3185_v55 = vmul.f32 0.2, %v3113_v32 }
 0x232   : > { %v3218_v33 = vsel %vm3146_vm5, %v3110_v15, %v3182_v9  ;;  %vm3147_vm7 = vcmp.ge.f32.partialorder %v3111_v17, 0.0  ;;  %v3183_v18 = vmul.f32 0.2, %v3111_v17  ;;  %v4442_v40 = vpop.f32.mrb[32].mxu0  ;;  %v3256_v51 = vmul.f32 1.4142135, %v3220_v52 }
 0x233   : > { %v3221_v57 = vsel %vm3149_vm6, %v3113_v32, %v3185_v55  ;;  %v4478_v31 = vadd.f32 %v4442_v40, %v4290_v54  ;;  %v3024_v47 = vpop.f32.mrb[33].mxu0  ;;  %v3254_v41 = vmul.f32 1.4142135, %v3218_v33 }
 0x234   : > { %v3257_v13 = vmul.f32 1.4142135, %v3221_v57  ;;  %v3219_v34 = vsel %vm3147_vm7, %v3111_v17, %v3183_v18  ;;  %v4479_v26 = vadd.f32 %v3024_v47, %v1812_v59  ;;  %v4443_v62 = vpop.f32.mrb[34].mxu0 }
 0x235   : > { %v3255_v50 = vmul.f32 1.4142135, %v3219_v34  ;;  %v3116_v46 = vadd.f32 %v4478_v31, %v5789_v2  ;;  %v4480_v35 = vadd.f32 %v4443_v62, %v4291_v25  ;;  %v3027_v1 = vpop.f32.mrb[35].mxu0 }
 0x236   : > { %v3902_v36 = vpack.c.bf16 %v3257_v13, %v3256_v51  ;;  %v3114_v12 = vadd.f32 %v4479_v26, %v5789_v2  ;;  %v4481_v24 = vadd.f32 %v3027_v1, %v1815_v0 }
 0x237   : > { %v3897_v61 = vpack.c.bf16 %v3255_v50, %v3254_v41  ;;  %vm3152_vm8 = vcmp.ge.f32.partialorder %v3116_v46, 0.0  ;;  %v3188_v63 = vmul.f32 0.2, %v3116_v46  ;;  %v3117_v37 = vadd.f32 %v4480_v35, %v5789_v2 }
 0x238   : > { %3928 = vst [vmem:[%s5799_s20 + $0x78] sm:$0xff] %v3902_v36   ;;  %vm3150_vm9 = vcmp.ge.f32.partialorder %v3114_v12, 0.0  ;;  %v3186_v56 = vmul.f32 0.2, %v3114_v12  ;;  %v3115_v14 = vadd.f32 %v4481_v24, %v5789_v2 }
 0x239   : > { %3927 = vst [vmem:[%s5799_s20 + $0x70] sm:$0xff] %v3897_v61   ;;  %v3224_v53 = vsel %vm3152_vm8, %v3116_v46, %v3188_v63  ;;  %vm3153_vm10 = vcmp.ge.f32.partialorder %v3117_v37, 0.0  ;;  %v3189_v7 = vmul.f32 0.2, %v3117_v37 }
 0x23a   : > { %v3222_v16 = vsel %vm3150_vm9, %v3114_v12, %v3186_v56  ;;  %vm3151_vm11 = vcmp.ge.f32.partialorder %v3115_v14, 0.0  ;;  %v3187_v48 = vmul.f32 0.2, %v3115_v14  ;;  %v3260_v54 = vmul.f32 1.4142135, %v3224_v53 }
 0x23b   : > { %v3225_v6 = vsel %vm3153_vm10, %v3117_v37, %v3189_v7  ;;  %v3258_v59 = vmul.f32 1.4142135, %v3222_v16 }
 0x23c   : > { %v3261_v30 = vmul.f32 1.4142135, %v3225_v6  ;;  %v3223_v10 = vsel %vm3151_vm11, %v3115_v14, %v3187_v48 }
 0x23d   : > { %v3259_v23 = vmul.f32 1.4142135, %v3223_v10 }
 0x23e   : > { %v3912_v3 = vpack.c.bf16 %v3261_v30, %v3260_v54 }
 0x23f   : > { %v3907_v25 = vpack.c.bf16 %v3259_v23, %v3258_v59 }
 0x240   : > { %3930 = vst [vmem:[%s5799_s20 + $0x88] sm:$0xff] %v3912_v3  }
 0x241   : > { %3929 = vst [vmem:[%s5799_s20 + $0x80] sm:$0xff] %v3907_v25  }
 0x242 PF: > { %s13_s14 = sadd.s32 1, %s4815_s14   ;;  %s5943_s12 = smov %s4811_s13 }
 0x243   : > { %p10_p5 = scmp.ge.s32.totalorder %s13_s14, 4   ;;  %s5944_s13 = smov %s5946_s15 }
 0x245   :  { %12 = sbr.rel (!%p10_p5) target bundleno = 2 (0x2), region = 76 }

// kernel: res_block_forward.8
= control target key start
LH: loop header
LB: loop body
LE: loop exit
PB: predicated region body
PF: predicated region fallthrough
CT: control target
= control target key end

     0   :  { %s1916_s6 = smov 0   ;;  %s1918_s7 = smov 0   ;;  %s2796_s0 = inlined_call_operand.vmem [shape: bf16[2,20,20,4], index: 0, kind: input, shape index: {}]   ;;  %s2797_s1 = inlined_call_operand.vmem [shape: bf16[2,17,17,4], index: 1, kind: output, shape index: {}]  }
   0x1   :  { %s1920_s8 = smov 0  }
   0x2 LB: > { %s23_s9 = sadd.s32 1, %s1900_s7  ;;  %p1700_p0 = scmp.ge.s32.totalorder %s1904_s8, 1  ;;  %s1904_s8 = sphi %s1920_s8, %s11_s8   ;;  %s1900_s7 = sphi %s1918_s7, %s2801_s7   ;;  %s1896_s6 = sphi %s1916_s6, %s2800_s6  }
   0x3   : > { %p25_p1 = scmp.ge.s32.totalorder %s23_s9, 2  ;;  %p106_p2 = scmp.lt.s32.totalorder %s1904_s8, 3 }
   0x5   : > { %s2803_s9 = smov (%p25_p1, %s23_s9), 0  ;;  %p107_p3 = pnand %p1700_p0, %p106_p2 }
   0x6   : > { %p132_p4 = scmp.lt.s32.totalorder (!%p107_p3), %s1896_s6, 1  ;;  %vm688_vm0 = vcmask (!%p107_p3), 1046528   ;;  %vm876_vm1 = vcmask (!%p107_p3), 1045504   ;;  %vm1115_vm2 = vcmask (!%p107_p3), 1044480   ;;  %vm1527_vm3 = vcmask (!%p107_p3), 24576  }
   0x7   : > { %110 = sbr.rel (%p107_p3) target bundleno = 255 (0xff), region = 24  ;;  %vm1528_vm4 = vsmask.f32 (!%p107_p3), 256  ;;  %vm1524_vm5 = vcmask (!%p107_p3), 27648  }
   0x8   : > { %vm2036_vm6 = vmand (!%p107_p3), %vm1527_vm3, %vm1528_vm4 }
   0xe   : > { %s2805_s6 = smov (!%p132_p4, %s1896_s6), 1 }
   0xf   : > { %s1856_s10 = smul.u32 240, %s2805_s6 }
  0x10   : > { %s1857_s14 = smul.u32 204, %s2805_s6 }
  0x11   : > { %s1940_s13 = scalar_lea.vmem %s2796_s0, %s1856_s10 }
  0x12   : > { %v1808_v0 = vld [vmem:[%s1940_s13] sm:$0xff]   ;;  %v151_v1 = vld [vmem:[%s1940_s13 + $0xc] sm:$0xff]   ;;  %v1945_v2 = vld [vmem:[%s1940_s13 + $0x18] sm:$0xff]   ;;  %s2023_s17 = scalar_lea.vmem %s2797_s1, %s1857_s14 }
  0x13   : > { %v1809_v3 = vunpack.c.l.bf16 %v1808_v0  ;;  %v1810_v4 = vunpack.c.h.bf16 %v1808_v0  ;;  %v1813_v5 = vunpack.c.l.bf16 %v1945_v2  ;;  %v1814_v6 = vunpack.c.h.bf16 %v1945_v2  ;;  %v157_v7 = vld [vmem:[%s1940_s13 + $0x24] sm:$0xff]   ;;  %v153_v13 = vld [vmem:[%s1940_s13 + $0x14] sm:$0x3]  ;;  %v1953_v14 = vld [vmem:[%s1940_s13 + $0x20] sm:$0x3] }
  0x14   : > { %v150_v8 = vld [vmem:[%s1940_s13 + $0x8] sm:$0x3]  ;;  %v211_v9 = vunpack.c.l.bf16 %v151_v1  ;;  %v212_v10 = vunpack.c.h.bf16 %v151_v1  ;;  %v217_v11 = vunpack.c.l.bf16 %v157_v7  ;;  %v218_v12 = vunpack.c.h.bf16 %v157_v7  ;;  %v1956_v15 = vld [vmem:[%s1940_s13 + $0x2c] sm:$0x3]  ;;  %v1963_v20 = vld [vmem:[%s1940_s13 + $0x30] sm:$0xff]  }
  0x15   : > { %v268_v16 = vmul.f32 0.125, %v1809_v3  ;;  %v269_v17 = vmul.f32 0.125, %v1810_v4  ;;  %v322_v18 = vmul.f32 0.375, %v1813_v5  ;;  %v323_v19 = vmul.f32 0.375, %v1814_v6  ;;  %v1982_v41 = vld [vmem:[%s1940_s13 + $0x38] sm:$0x3] }
  0x16   : > { %v1965_v21 = vmul.f32 0.125, %v217_v11  ;;  %v1967_v22 = vmul.f32 0.125, %v218_v12  ;;  %v319_v23 = vmul.f32 0.375, %v211_v9  ;;  %v320_v24 = vmul.f32 0.375, %v212_v10 }
  0x17   : > { %v210_v25 = vunpack.c.l.bf16 %v150_v8  ;;  %v213_v26 = vunpack.c.l.bf16 %v153_v13  ;;  %v216_v27 = vunpack.c.l.bf16 %v1953_v14  ;;  %v219_v28 = vunpack.c.l.bf16 %v1956_v15 }
  0x18   : > { %v370_v29 = vadd.f32 %v319_v23, %v268_v16  ;;  %v371_v30 = vadd.f32 %v320_v24, %v269_v17  ;;  %v1817_v31 = vunpack.c.l.bf16 %v1963_v20  ;;  %v1818_v32 = vunpack.c.h.bf16 %v1963_v20 }
  0x19   : > { %v270_v33 = vmul.f32 0.125, %v210_v25  ;;  %v1975_v34 = vmul.f32 0.125, %v219_v28  ;;  %v321_v35 = vmul.f32 0.375, %v213_v26  ;;  %v1979_v36 = vmul.f32 0.375, %v216_v27 }
  0x1a   : > { %v424_v37 = vadd.f32 %v370_v29, %v322_v18  ;;  %v425_v38 = vadd.f32 %v371_v30, %v323_v19  ;;  %v271_v39 = vmul.f32 0.125, %v211_v9  ;;  %v272_v40 = vmul.f32 0.125, %v212_v10 }
  0x1b   : > { %v372_v42 = vadd.f32 %v321_v35, %v270_v33  ;;  %v1986_v43 = vmul.f32 0.125, %v1817_v31  ;;  %v1990_v44 = vmul.f32 0.125, %v1818_v32  ;;  %v1992_v45 = vmul.f32 0.375, %v217_v11 }
  0x1c   : > { %v484_v46 = vadd.f32 %v424_v37, %v1965_v21  ;;  %v485_v47 = vadd.f32 %v425_v38, %v1967_v22  ;;  %v1996_v48 = vmul.f32 0.375, %v218_v12  ;;  %v373_v49 = vadd.f32 %v322_v18, %v271_v39 }
  0x1d   : > { %v426_v50 = vadd.f32 %v372_v42, %v1979_v36  ;;  %v374_v51 = vadd.f32 %v323_v19, %v272_v40  ;;  %v222_v52 = vunpack.c.l.bf16 %v1982_v41  ;;  %v273_v53 = vmul.f32 0.125, %v213_v26 }
  0x1e   : > { %v535_v54 = vmul.f32 0.125, %v484_v46  ;;  %v536_v55 = vmul.f32 0.125, %v485_v47  ;;  %v586_v56 = vmul.f32 0.375, %v484_v46  ;;  %v587_v57 = vmul.f32 0.375, %v485_v47 }
  0x1f   : > { %v486_v58 = vadd.f32 %v426_v50, %v1975_v34  ;;  %v427_v59 = vadd.f32 %v373_v49, %v1992_v45  ;;  %v428_v60 = vadd.f32 %v374_v51, %v1996_v48  ;;  %v2005_v61 = vmul.f32 0.125, %v222_v52 }
  0x20   : > { %v689_v62 = vrot.slane %v586_v56, 1  ;;  %v690_v63 = vrot.slane %v587_v57, 1  ;;  %v877_v0 = vrot.slane %v586_v56, 2  ;;  %v878_v1 = vrot.slane %v587_v57, 2 }
  0x21   : > { %v1116_v3 = vrot.slane %v535_v54, 3  ;;  %v1117_v4 = vrot.slane %v536_v55, 3  ;;  %v537_v7 = vmul.f32 0.125, %v486_v58  ;;  %v588_v8 = vmul.f32 0.375, %v486_v58 }
  0x22   : > { %v691_v9 = vsel %vm688_vm0, %v689_v62, %v690_v63  ;;  %v879_v10 = vsel %vm876_vm1, %v877_v0, %v878_v1  ;;  %v487_v11 = vadd.f32 %v427_v59, %v1986_v43  ;;  %v488_v12 = vadd.f32 %v428_v60, %v1990_v44 }
  0x23   : > { %v825_v13 = vadd.f32 %v691_v9, %v535_v54  ;;  %v1118_v16 = vsel %vm1115_vm2, %v1116_v3, %v1117_v4  ;;  %v692_v17 = vrot.slane %v588_v8, 1  ;;  %v880_v18 = vrot.slane %v588_v8, 2 }
  0x24   : > { %v1119_v19 = vrot.slane %v537_v7, 3  ;;  %v538_v23 = vmul.f32 0.125, %v487_v11  ;;  %v2013_v24 = vmul.f32 0.125, %v488_v12  ;;  %v589_v25 = vmul.f32 0.375, %v487_v11 }
  0x25   : > { %v1013_v26 = vadd.f32 %v879_v10, %v825_v13  ;;  %v693_v29 = vsel %vm688_vm0, %v690_v63, %v692_v17  ;;  %v881_v30 = vsel %vm876_vm1, %v878_v1, %v880_v18  ;;  %v827_v33 = vadd.f32 %v692_v17, %v537_v7  ;;  %v1530_v63 = vld [vmem:[%s2023_s17 + $0x8] sm:$0x1] }
  0x26   : > { %v826_v35 = vadd.f32 %v693_v29, %v536_v55  ;;  %v1120_v37 = vsel %vm1115_vm2, %v1117_v4, %v1119_v19  ;;  %v2018_v38 = vmul.f32 0.375, %v488_v12  ;;  %v694_v39 = vrot.slane %v589_v25, 1  ;;  %v2029_v55 = vld [vmem:[%s1940_s13 + $0x3c] sm:$0xff]  }
  0x27   : > { %v1252_v40 = vadd.f32 %v1118_v16, %v1013_v26  ;;  %v1015_v42 = vadd.f32 %v880_v18, %v827_v33  ;;  %v882_v46 = vrot.slane %v589_v25, 2  ;;  %v1121_v47 = vrot.slane %v538_v23, 3  ;;  %v2060_v16 = vld [vmem:[%s1940_s13 + $0x44] sm:$0x3] }
  0x28   : > { %v1014_v49 = vadd.f32 %v881_v30, %v826_v35  ;;  %v695_v50 = vrot.slane %v2018_v38, 1  ;;  %v883_v51 = vrot.slane %v2018_v38, 2  ;;  %v1122_v54 = vrot.slane %v2013_v24, 3 }
  0x29   : > { %v1756_v56 = vpack.c.bf16 %v1252_v40, %v1252_v40  ;;  %v1254_v57 = vadd.f32 %v1119_v19, %v1015_v42  ;;  %v327_v58 = vmul.f32 0.375, %v219_v28  ;;  %v375_v59 = vadd.f32 %v1979_v36, %v273_v53 }
  0x2a   : > { %v1253_v60 = vadd.f32 %v1120_v37, %v1014_v49  ;;  %v696_v0 = vsel %vm688_vm0, %v694_v39, %v695_v50  ;;  %v884_v1 = vsel %vm876_vm1, %v882_v46, %v883_v51  ;;  %v1123_v3 = vsel %vm1115_vm2, %v1121_v47, %v1122_v54  ;;  %v2094_v39 = vld [vmem:[%s1940_s13 + $0x48] sm:$0xff]  }
  0x2b   : > { %1525 = vst.msk [vmem:[%s2023_s17] sm:$0xf] %vm1524_vm5, %v1756_v56  ;;  %v1758_v15 = vpack.c.bf16 %v1254_v57, %v1254_v57  ;;  %v828_v28 = vadd.f32 %v696_v0, %v538_v23  ;;  %v429_v36 = vadd.f32 %v375_v59, %v327_v58  ;;  %v223_v53 = vunpack.c.l.bf16 %v2029_v55 }
  0x2c   : > { %v1757_v4 = vpack.c.bf16 %v1253_v60, %v1253_v60  ;;  %v224_v7 = vunpack.c.h.bf16 %v2029_v55  ;;  %v274_v8 = vmul.f32 0.125, %v1813_v5  ;;  %v275_v9 = vmul.f32 0.125, %v1814_v6  ;;  %v2139_v55 = vld [vmem:[%s1940_s13 + $0x54] sm:$0xff]  }
  0x2d   : > { %v1531_v10 = vsel %vm2036_vm6, %v1758_v15, %v1530_v63  ;;  %v1016_v11 = vadd.f32 %v884_v1, %v828_v28  ;;  %v489_v12 = vadd.f32 %v429_v36, %v2005_v61  ;;  %v2057_v13 = vmul.f32 0.125, %v223_v53 }
  0x2e   : > { %1526 = vst.msk [vmem:[%s2023_s17 + $0x4] sm:$0xf] %vm1524_vm5, %v1757_v4  ;;  %1532 = vst [vmem:[%s2023_s17 + $0x8] sm:$0x1] %v1531_v10  ;;  %v2067_v5 = vmul.f32 0.125, %v224_v7  ;;  %v2071_v2 = vmul.f32 0.375, %v1817_v31  ;;  %v376_v17 = vadd.f32 %v1992_v45, %v274_v8  ;;  %v377_v25 = vadd.f32 %v1996_v48, %v275_v9 }
  0x2f   : > { %v2075_v6 = vmul.f32 0.375, %v1818_v32  ;;  %v1255_v18 = vadd.f32 %v1123_v3, %v1016_v11  ;;  %v540_v19 = vmul.f32 0.125, %v489_v12  ;;  %v591_v23 = vmul.f32 0.375, %v489_v12  ;;  %v1535_v3 = vld [vmem:[%s2023_s17 + $0x14] sm:$0x1] }
  0x30   : > { %v430_v26 = vadd.f32 %v376_v17, %v2071_v2  ;;  %v225_v29 = vunpack.c.l.bf16 %v2060_v16  ;;  %v276_v31 = vmul.f32 0.125, %v216_v27  ;;  %v2085_v20 = vmul.f32 0.375, %v222_v52 }
  0x31   : > { %v1759_v32 = vpack.c.bf16 %v1255_v18, %v1255_v18  ;;  %v697_v45 = vrot.slane %v591_v23, 1  ;;  %v885_v30 = vrot.slane %v591_v23, 2  ;;  %v1124_v33 = vrot.slane %v540_v19, 3 }
  0x32   : > { %v431_v35 = vadd.f32 %v377_v25, %v2075_v6  ;;  %v490_v37 = vadd.f32 %v430_v26, %v2057_v13  ;;  %v2091_v48 = vmul.f32 0.125, %v225_v29  ;;  %v378_v38 = vadd.f32 %v327_v58, %v276_v31 }
  0x33   : > { %1533 = vst.msk [vmem:[%s2023_s17 + $0xc] sm:$0xf] %vm1524_vm5, %v1759_v32  ;;  %v698_v14 = vsel %vm688_vm0, %v695_v50, %v697_v45  ;;  %v886_v27 = vsel %vm876_vm1, %v883_v51, %v885_v30  ;;  %v1125_v41 = vsel %vm1115_vm2, %v1122_v54, %v1124_v33  ;;  %v830_v52 = vadd.f32 %v697_v45, %v540_v19 }
  0x34   : > { %v829_v40 = vadd.f32 %v698_v14, %v2013_v24  ;;  %v491_v42 = vadd.f32 %v431_v35, %v2067_v5  ;;  %v541_v46 = vmul.f32 0.125, %v490_v37  ;;  %v592_v47 = vmul.f32 0.375, %v490_v37 }
  0x35   : > { %v1018_v49 = vadd.f32 %v885_v30, %v830_v52  ;;  %v432_v56 = vadd.f32 %v378_v38, %v2085_v20  ;;  %v1821_v57 = vunpack.c.l.bf16 %v2094_v39  ;;  %v1822_v58 = vunpack.c.h.bf16 %v2094_v39 }
  0x36   : > { %v1017_v50 = vadd.f32 %v886_v27, %v829_v40  ;;  %v542_v59 = vmul.f32 0.125, %v491_v42  ;;  %v593_v51 = vmul.f32 0.375, %v491_v42  ;;  %v699_v60 = vrot.slane %v592_v47, 1 }
  0x37   : > { %v1257_v54 = vadd.f32 %v1124_v33, %v1018_v49  ;;  %v887_v63 = vrot.slane %v592_v47, 2  ;;  %v1126_v0 = vrot.slane %v541_v46, 3  ;;  %v492_v24 = vadd.f32 %v432_v56, %v2091_v48  ;;  %v2129_v33 = vld [vmem:[%s1940_s13 + $0x50] sm:$0x3] }
  0x38   : > { %v1256_v1 = vadd.f32 %v1125_v41, %v1017_v50  ;;  %v700_v15 = vrot.slane %v593_v51, 1  ;;  %v888_v28 = vrot.slane %v593_v51, 2  ;;  %v1127_v36 = vrot.slane %v542_v59, 3  ;;  %v1540_v51 = vld [vmem:[%s2023_s17 + $0x20] sm:$0x1] }
  0x39   : > { %v1761_v4 = vpack.c.bf16 %v1257_v54, %v1257_v54  ;;  %v543_v8 = vmul.f32 0.125, %v492_v24  ;;  %v594_v9 = vmul.f32 0.375, %v492_v24  ;;  %v2110_v10 = vmul.f32 0.125, %v1821_v57 }
  0x3a   : > { %v1760_v11 = vpack.c.bf16 %v1256_v1, %v1256_v1  ;;  %v701_v12 = vsel %vm688_vm0, %v699_v60, %v700_v15  ;;  %v889_v17 = vsel %vm876_vm1, %v887_v63, %v888_v28  ;;  %v1128_v18 = vsel %vm1115_vm2, %v1126_v0, %v1127_v36 }
  0x3b   : > { %v1536_v19 = vsel %vm2036_vm6, %v1761_v4, %v1535_v3  ;;  %v831_v23 = vadd.f32 %v701_v12, %v541_v46  ;;  %v702_v25 = vrot.slane %v594_v9, 1  ;;  %v890_v26 = vrot.slane %v594_v9, 2 }
  0x3c   : > { %1534 = vst.msk [vmem:[%s2023_s17 + $0x10] sm:$0xf] %vm1524_vm5, %v1760_v11  ;;  %1537 = vst [vmem:[%s2023_s17 + $0x14] sm:$0x1] %v1536_v19  ;;  %v1129_v31 = vrot.slane %v543_v8, 3  ;;  %v2122_v32 = vmul.f32 0.125, %v1822_v58  ;;  %v379_v52 = vadd.f32 %v2071_v2, %v1965_v21  ;;  %v228_v42 = vunpack.c.l.bf16 %v2129_v33 }
  0x3d   : > { %v331_v45 = vmul.f32 0.375, %v223_v53  ;;  %v332_v30 = vmul.f32 0.375, %v224_v7  ;;  %v1019_v35 = vadd.f32 %v889_v17, %v831_v23  ;;  %v703_v37 = vsel %vm688_vm0, %v700_v15, %v702_v25  ;;  %v2184_v33 = vld [vmem:[%s1940_s13 + $0x5c] sm:$0x3] }
  0x3e   : > { %v891_v38 = vsel %vm876_vm1, %v888_v28, %v890_v26  ;;  %v833_v14 = vadd.f32 %v702_v25, %v543_v8  ;;  %v832_v27 = vadd.f32 %v703_v37, %v542_v59  ;;  %v1130_v41 = vsel %vm1115_vm2, %v1127_v36, %v1129_v31 }
  0x3f   : > { %v380_v53 = vadd.f32 %v2075_v6, %v1967_v22  ;;  %v1258_v7 = vadd.f32 %v1128_v18, %v1019_v35  ;;  %v2144_v46 = vmul.f32 0.375, %v225_v29  ;;  %v433_v49 = vadd.f32 %v379_v52, %v331_v45 }
  0x40   : > { %v1021_v40 = vadd.f32 %v890_v26, %v833_v14  ;;  %v1020_v47 = vadd.f32 %v891_v38, %v832_v27  ;;  %v381_v21 = vadd.f32 %v2085_v20, %v1975_v34  ;;  %v2148_v22 = vmul.f32 0.125, %v228_v42 }
  0x41   : > { %v434_v56 = vadd.f32 %v380_v53, %v332_v30  ;;  %v1762_v2 = vpack.c.bf16 %v1258_v7, %v1258_v7  ;;  %v229_v6 = vunpack.c.l.bf16 %v2139_v55  ;;  %v493_v60 = vadd.f32 %v433_v49, %v2110_v10 }
  0x42   : > { %v1260_v50 = vadd.f32 %v1129_v31, %v1021_v40  ;;  %v1259_v59 = vadd.f32 %v1130_v41, %v1020_v47  ;;  %v435_v29 = vadd.f32 %v381_v21, %v2144_v46  ;;  %v230_v34 = vunpack.c.h.bf16 %v2139_v55 }
  0x43   : > { %v494_v16 = vadd.f32 %v434_v56, %v2122_v32  ;;  %1538 = vst.msk [vmem:[%s2023_s17 + $0x18] sm:$0xf] %vm1524_vm5, %v1762_v2  ;;  %v2160_v20 = vmul.f32 0.125, %v229_v6  ;;  %v2164_v63 = vmul.f32 0.375, %v1821_v57  ;;  %v544_v24 = vmul.f32 0.125, %v493_v60 }
  0x44   : > { %v1764_v54 = vpack.c.bf16 %v1260_v50, %v1260_v50  ;;  %v1763_v0 = vpack.c.bf16 %v1259_v59, %v1259_v59  ;;  %v595_v3 = vmul.f32 0.375, %v493_v60  ;;  %v495_v36 = vadd.f32 %v435_v29, %v2148_v22 }
  0x45   : > { %v545_v1 = vmul.f32 0.125, %v494_v16  ;;  %v596_v28 = vmul.f32 0.375, %v494_v16  ;;  %v2171_v4 = vmul.f32 0.125, %v230_v34  ;;  %v1131_v9 = vrot.slane %v544_v24, 3 }
  0x46   : > { %v1541_v15 = vsel %vm2036_vm6, %v1764_v54, %v1540_v51  ;;  %1539 = vst.msk [vmem:[%s2023_s17 + $0x1c] sm:$0xf] %vm1524_vm5, %v1763_v0  ;;  %v704_v57 = vrot.slane %v595_v3, 1  ;;  %v892_v8 = vrot.slane %v595_v3, 2  ;;  %v546_v18 = vmul.f32 0.125, %v495_v36  ;;  %v2201_v0 = vld [vmem:[%s1940_s13 + $0x60] sm:$0xff]  }
  0x47   : > { %1542 = vst [vmem:[%s2023_s17 + $0x20] sm:$0x1] %v1541_v15  ;;  %v1132_v11 = vrot.slane %v545_v1, 3  ;;  %v705_v12 = vrot.slane %v596_v28, 1  ;;  %v893_v17 = vrot.slane %v596_v28, 2  ;;  %v597_v19 = vmul.f32 0.375, %v495_v36 }
  0x48   : > { %v2179_v25 = vmul.f32 0.375, %v1822_v58  ;;  %v382_v26 = vadd.f32 %v331_v45, %v1986_v43  ;;  %v383_v31 = vadd.f32 %v332_v30, %v1990_v44  ;;  %v1134_v41 = vrot.slane %v546_v18, 3  ;;  %v1545_v3 = vld [vmem:[%s2023_s17 + $0x2c] sm:$0x1] }
  0x49   : > { %v1133_v23 = vsel %vm1115_vm2, %v1131_v9, %v1132_v11  ;;  %v706_v35 = vsel %vm688_vm0, %v704_v57, %v705_v12  ;;  %v894_v37 = vsel %vm876_vm1, %v892_v8, %v893_v17  ;;  %v707_v38 = vrot.slane %v597_v19, 1 }
  0x4a   : > { %v895_v14 = vrot.slane %v597_v19, 2  ;;  %v834_v27 = vadd.f32 %v706_v35, %v544_v24  ;;  %v436_v52 = vadd.f32 %v382_v26, %v2164_v63  ;;  %v437_v39 = vadd.f32 %v383_v31, %v2179_v25  ;;  %v2222_v35 = vld [vmem:[%s1940_s13 + $0x68] sm:$0x3] }
  0x4b   : > { %v708_v58 = vsel %vm688_vm0, %v705_v12, %v707_v38  ;;  %v836_v45 = vadd.f32 %v707_v38, %v546_v18  ;;  %v231_v44 = vunpack.c.l.bf16 %v2184_v33  ;;  %v1135_v7 = vsel %vm1115_vm2, %v1132_v11, %v1134_v41 }
  0x4c   : > { %v896_v43 = vsel %vm876_vm1, %v893_v17, %v895_v14  ;;  %v1022_v30 = vadd.f32 %v894_v37, %v834_v27  ;;  %v835_v53 = vadd.f32 %v708_v58, %v545_v1  ;;  %v496_v40 = vadd.f32 %v436_v52, %v2160_v20 }
  0x4d   : > { %v1024_v47 = vadd.f32 %v895_v14, %v836_v45  ;;  %v497_v49 = vadd.f32 %v437_v39, %v2171_v4  ;;  %v2196_v56 = vmul.f32 0.125, %v231_v44  ;;  %v336_v21 = vmul.f32 0.375, %v228_v42 }
  0x4e   : > { %v1261_v2 = vadd.f32 %v1133_v23, %v1022_v30  ;;  %v1023_v50 = vadd.f32 %v896_v43, %v835_v53  ;;  %v547_v59 = vmul.f32 0.125, %v496_v40  ;;  %v598_v51 = vmul.f32 0.375, %v496_v40  ;;  %v2253_v40 = vld [vmem:[%s1940_s13 + $0x6c] sm:$0xff]  }
  0x4f   : > { %v1263_v60 = vadd.f32 %v1134_v41, %v1024_v47  ;;  %v548_v16 = vmul.f32 0.125, %v497_v49  ;;  %v599_v29 = vmul.f32 0.375, %v497_v49  ;;  %v384_v54 = vadd.f32 %v2144_v46, %v2005_v61 }
  0x50   : > { %v1765_v24 = vpack.c.bf16 %v1261_v2, %v1261_v2  ;;  %v1262_v1 = vadd.f32 %v1135_v7, %v1023_v50  ;;  %v709_v15 = vrot.slane %v598_v51, 1  ;;  %v897_v42 = vrot.slane %v598_v51, 2 }
  0x51   : > { %v1767_v28 = vpack.c.bf16 %v1263_v60, %v1263_v60  ;;  %v710_v36 = vrot.slane %v599_v29, 1  ;;  %v898_v57 = vrot.slane %v599_v29, 2  ;;  %v1136_v8 = vrot.slane %v547_v59, 3 }
  0x52   : > { %1543 = vst.msk [vmem:[%s2023_s17 + $0x24] sm:$0xf] %vm1524_vm5, %v1765_v24  ;;  %v1766_v9 = vpack.c.bf16 %v1262_v1, %v1262_v1  ;;  %v1137_v11 = vrot.slane %v548_v16, 3  ;;  %v438_v12 = vadd.f32 %v384_v54, %v336_v21  ;;  %v1825_v61 = vunpack.c.l.bf16 %v2201_v0 }
  0x53   : > { %v1546_v46 = vsel %vm2036_vm6, %v1767_v28, %v1545_v3  ;;  %v711_v17 = vsel %vm688_vm0, %v709_v15, %v710_v36  ;;  %v899_v18 = vsel %vm876_vm1, %v897_v42, %v898_v57  ;;  %v1826_v19 = vunpack.c.h.bf16 %v2201_v0 }
  0x54   : > { %1544 = vst.msk [vmem:[%s2023_s17 + $0x28] sm:$0xf] %vm1524_vm5, %v1766_v9  ;;  %1547 = vst [vmem:[%s2023_s17 + $0x2c] sm:$0x1] %v1546_v46  ;;  %v837_v23 = vadd.f32 %v711_v17, %v547_v59  ;;  %v1138_v26 = vsel %vm1115_vm2, %v1136_v8, %v1137_v11  ;;  %v498_v31 = vadd.f32 %v438_v12, %v2196_v56  ;;  %v2219_v33 = vmul.f32 0.125, %v1825_v61 }
  0x55   : > { %v2226_v37 = vmul.f32 0.125, %v1826_v19  ;;  %v2230_v38 = vmul.f32 0.375, %v229_v6  ;;  %v2234_v14 = vmul.f32 0.375, %v230_v34  ;;  %v385_v27 = vadd.f32 %v2164_v63, %v2057_v13  ;;  %v1550_v12 = vld [vmem:[%s2023_s17 + $0x38] sm:$0x1] }
  0x56   : > { %v1025_v41 = vadd.f32 %v899_v18, %v837_v23  ;;  %v549_v52 = vmul.f32 0.125, %v498_v31  ;;  %v600_v39 = vmul.f32 0.375, %v498_v31  ;;  %v386_v58 = vadd.f32 %v2179_v25, %v2067_v5 }
  0x57   : > { %v439_v43 = vadd.f32 %v385_v27, %v2230_v38  ;;  %v234_v45 = vunpack.c.l.bf16 %v2222_v35  ;;  %v2242_v6 = vmul.f32 0.375, %v231_v44  ;;  %v387_v55 = vadd.f32 %v336_v21, %v2091_v48 }
  0x58   : > { %v1264_v34 = vadd.f32 %v1138_v26, %v1025_v41  ;;  %v712_v30 = vrot.slane %v600_v39, 1  ;;  %v900_v53 = vrot.slane %v600_v39, 2  ;;  %v1139_v13 = vrot.slane %v549_v52, 3 }
  0x59   : > { %v440_v63 = vadd.f32 %v386_v58, %v2234_v14  ;;  %v499_v7 = vadd.f32 %v439_v43, %v2219_v33  ;;  %v2249_v5 = vmul.f32 0.125, %v234_v45  ;;  %v441_v25 = vadd.f32 %v387_v55, %v2242_v6 }
  0x5a   : > { %v1768_v44 = vpack.c.bf16 %v1264_v34, %v1264_v34  ;;  %v713_v48 = vsel %vm688_vm0, %v710_v36, %v712_v30  ;;  %v901_v47 = vsel %vm876_vm1, %v898_v57, %v900_v53  ;;  %v1140_v49 = vsel %vm1115_vm2, %v1137_v11, %v1139_v13 }
  0x5b   : > { %v838_v21 = vadd.f32 %v713_v48, %v548_v16  ;;  %v839_v2 = vadd.f32 %v712_v30, %v549_v52  ;;  %v500_v50 = vadd.f32 %v440_v63, %v2226_v37  ;;  %v550_v59 = vmul.f32 0.125, %v499_v7 }
  0x5c   : > { %1548 = vst.msk [vmem:[%s2023_s17 + $0x30] sm:$0xf] %vm1524_vm5, %v1768_v44  ;;  %v601_v51 = vmul.f32 0.375, %v499_v7  ;;  %v501_v60 = vadd.f32 %v441_v25, %v2249_v5  ;;  %v235_v29 = vunpack.c.l.bf16 %v2253_v40  ;;  %v236_v54 = vunpack.c.h.bf16 %v2253_v40 }
  0x5d   : > { %v1026_v24 = vadd.f32 %v901_v47, %v838_v21  ;;  %v1027_v1 = vadd.f32 %v900_v53, %v839_v2  ;;  %v551_v3 = vmul.f32 0.125, %v500_v50  ;;  %v602_v15 = vmul.f32 0.375, %v500_v50  ;;  %v2296_v21 = vld [vmem:[%s1940_s13 + $0x78] sm:$0xff]  }
  0x5e   : > { %v714_v42 = vrot.slane %v601_v51, 1  ;;  %v902_v16 = vrot.slane %v601_v51, 2  ;;  %v1141_v28 = vrot.slane %v550_v59, 3  ;;  %v552_v36 = vmul.f32 0.125, %v501_v60 }
  0x5f   : > { %v1265_v57 = vadd.f32 %v1140_v49, %v1026_v24  ;;  %v1266_v8 = vadd.f32 %v1139_v13, %v1027_v1  ;;  %v715_v9 = vrot.slane %v602_v15, 1  ;;  %v903_v11 = vrot.slane %v602_v15, 2  ;;  %v2284_v13 = vld [vmem:[%s1940_s13 + $0x74] sm:$0x3] }
  0x60   : > { %v1142_v46 = vrot.slane %v551_v3, 3  ;;  %v603_v17 = vmul.f32 0.375, %v501_v60  ;;  %v1144_v18 = vrot.slane %v552_v36, 3  ;;  %v2267_v23 = vmul.f32 0.125, %v235_v29 }
  0x61   : > { %v1769_v26 = vpack.c.bf16 %v1265_v57, %v1265_v57  ;;  %v1770_v31 = vpack.c.bf16 %v1266_v8, %v1266_v8  ;;  %v716_v27 = vsel %vm688_vm0, %v714_v42, %v715_v9  ;;  %v904_v41 = vsel %vm876_vm1, %v902_v16, %v903_v11 }
  0x62   : > { %v840_v52 = vadd.f32 %v716_v27, %v550_v59  ;;  %v1143_v39 = vsel %vm1115_vm2, %v1141_v28, %v1142_v46  ;;  %v717_v58 = vrot.slane %v603_v17, 1  ;;  %v905_v43 = vrot.slane %v603_v17, 2 }
  0x63   : > { %1549 = vst.msk [vmem:[%s2023_s17 + $0x34] sm:$0xf] %vm1524_vm5, %v1769_v26  ;;  %v1551_v55 = vsel %vm2036_vm6, %v1770_v31, %v1550_v12  ;;  %v1145_v34 = vsel %vm1115_vm2, %v1142_v46, %v1144_v18  ;;  %v2279_v30 = vmul.f32 0.125, %v236_v54  ;;  %v340_v53 = vmul.f32 0.375, %v1825_v61 }
  0x64   : > { %1552 = vst [vmem:[%s2023_s17 + $0x38] sm:$0x1] %v1551_v55  ;;  %v1028_v63 = vadd.f32 %v904_v41, %v840_v52  ;;  %v718_v7 = vsel %vm688_vm0, %v715_v9, %v717_v58  ;;  %v906_v25 = vsel %vm876_vm1, %v903_v11, %v905_v43  ;;  %v842_v44 = vadd.f32 %v717_v58, %v552_v36 }
  0x65   : > { %v841_v48 = vadd.f32 %v718_v7, %v551_v3  ;;  %v341_v47 = vmul.f32 0.375, %v1826_v19  ;;  %v388_v49 = vadd.f32 %v2230_v38, %v2110_v10  ;;  %v389_v61 = vadd.f32 %v2234_v14, %v2122_v32  ;;  %v1555_v3 = vld [vmem:[%s2023_s17 + $0x44] sm:$0x1] }
  0x66   : > { %v1267_v2 = vadd.f32 %v1143_v39, %v1028_v63  ;;  %v1030_v50 = vadd.f32 %v905_v43, %v842_v44  ;;  %v237_v59 = vunpack.c.l.bf16 %v2284_v13  ;;  %v2301_v51 = vmul.f32 0.375, %v234_v45 }
  0x67   : > { %v1029_v0 = vadd.f32 %v906_v25, %v841_v48  ;;  %v442_v19 = vadd.f32 %v388_v49, %v340_v53  ;;  %v443_v60 = vadd.f32 %v389_v61, %v341_v47  ;;  %v390_v10 = vadd.f32 %v2242_v6, %v2148_v22 }
  0x68   : > { %v1771_v38 = vpack.c.bf16 %v1267_v2, %v1267_v2  ;;  %v1269_v24 = vadd.f32 %v1144_v18, %v1030_v50  ;;  %v2305_v32 = vmul.f32 0.125, %v237_v59  ;;  %v1829_v14 = vunpack.c.l.bf16 %v2296_v21 }
  0x69   : > { %v1268_v1 = vadd.f32 %v1145_v34, %v1029_v0  ;;  %v502_v15 = vadd.f32 %v442_v19, %v2267_v23  ;;  %v503_v35 = vadd.f32 %v443_v60, %v2279_v30  ;;  %v444_v45 = vadd.f32 %v390_v10, %v2301_v51  ;;  %v2341_v34 = vld [vmem:[%s1940_s13 + $0x80] sm:$0x3] }
  0x6a   : > { %1553 = vst.msk [vmem:[%s2023_s17 + $0x3c] sm:$0xf] %vm1524_vm5, %v1771_v38  ;;  %v1773_v42 = vpack.c.bf16 %v1269_v24, %v1269_v24  ;;  %v1830_v22 = vunpack.c.h.bf16 %v2296_v21  ;;  %v2317_v6 = vmul.f32 0.125, %v1829_v14  ;;  %v2321_v16 = vmul.f32 0.375, %v235_v29 }
  0x6b   : > { %v1772_v28 = vpack.c.bf16 %v1268_v1, %v1268_v1  ;;  %v553_v36 = vmul.f32 0.125, %v502_v15  ;;  %v554_v57 = vmul.f32 0.125, %v503_v35  ;;  %v604_v8 = vmul.f32 0.375, %v502_v15 }
  0x6c   : > { %v1556_v9 = vsel %vm2036_vm6, %v1773_v42, %v1555_v3  ;;  %v605_v11 = vmul.f32 0.375, %v503_v35  ;;  %v504_v12 = vadd.f32 %v444_v45, %v2305_v32  ;;  %v2328_v46 = vmul.f32 0.125, %v1830_v22 }
  0x6d   : > { %1554 = vst.msk [vmem:[%s2023_s17 + $0x40] sm:$0xf] %vm1524_vm5, %v1772_v28  ;;  %1557 = vst [vmem:[%s2023_s17 + $0x44] sm:$0x1] %v1556_v9  ;;  %v719_v29 = vrot.slane %v604_v8, 1  ;;  %v907_v17 = vrot.slane %v604_v8, 2  ;;  %v391_v43 = vadd.f32 %v340_v53, %v2160_v20  ;;  %v392_v55 = vadd.f32 %v341_v47, %v2171_v4 }
  0x6e   : > { %v1146_v18 = vrot.slane %v553_v36, 3  ;;  %v1147_v26 = vrot.slane %v554_v57, 3  ;;  %v720_v31 = vrot.slane %v605_v11, 1  ;;  %v908_v27 = vrot.slane %v605_v11, 2  ;;  %v2358_v28 = vld [vmem:[%s1940_s13 + $0x84] sm:$0xff]  }
  0x6f   : > { %v555_v41 = vmul.f32 0.125, %v504_v12  ;;  %v606_v52 = vmul.f32 0.375, %v504_v12  ;;  %v2336_v58 = vmul.f32 0.375, %v236_v54  ;;  %v445_v49 = vadd.f32 %v391_v43, %v2321_v16  ;;  %v1560_v8 = vld [vmem:[%s2023_s17 + $0x50] sm:$0x1] }
  0x70   : > { %v1148_v39 = vsel %vm1115_vm2, %v1146_v18, %v1147_v26  ;;  %v721_v13 = vsel %vm688_vm0, %v719_v29, %v720_v31  ;;  %v909_v63 = vsel %vm876_vm1, %v907_v17, %v908_v27  ;;  %v240_v4 = vunpack.c.l.bf16 %v2341_v34 }
  0x71   : > { %v722_v7 = vrot.slane %v606_v52, 1  ;;  %v910_v25 = vrot.slane %v606_v52, 2  ;;  %v843_v44 = vadd.f32 %v721_v13, %v553_v36  ;;  %v1149_v48 = vrot.slane %v555_v41, 3  ;;  %v2379_v13 = vld [vmem:[%s1940_s13 + $0x8c] sm:$0x3] }
  0x72   : > { %v446_v40 = vadd.f32 %v392_v55, %v2336_v58  ;;  %v505_v50 = vadd.f32 %v445_v49, %v2317_v6  ;;  %v2353_v60 = vmul.f32 0.125, %v240_v4  ;;  %v345_v10 = vmul.f32 0.375, %v237_v59 }
  0x73   : > { %v723_v54 = vsel %vm688_vm0, %v720_v31, %v722_v7  ;;  %v911_v20 = vsel %vm876_vm1, %v908_v27, %v910_v25  ;;  %v845_v53 = vadd.f32 %v722_v7, %v555_v41  ;;  %v1031_v47 = vadd.f32 %v909_v63, %v843_v44 }
  0x74   : > { %v844_v61 = vadd.f32 %v723_v54, %v554_v57  ;;  %v1150_v2 = vsel %vm1115_vm2, %v1147_v26, %v1149_v48  ;;  %v506_v19 = vadd.f32 %v446_v40, %v2328_v46  ;;  %v556_v1 = vmul.f32 0.125, %v505_v50 }
  0x75   : > { %v1033_v0 = vadd.f32 %v910_v25, %v845_v53  ;;  %v1270_v38 = vadd.f32 %v1148_v39, %v1031_v47  ;;  %v607_v3 = vmul.f32 0.375, %v505_v50  ;;  %v393_v42 = vadd.f32 %v2301_v51, %v2196_v56  ;;  %v2410_v50 = vld [vmem:[%s1940_s13 + $0x90] sm:$0xff]  }
  0x76   : > { %v1032_v24 = vadd.f32 %v911_v20, %v844_v61  ;;  %v557_v35 = vmul.f32 0.125, %v506_v19  ;;  %v608_v45 = vmul.f32 0.375, %v506_v19  ;;  %v1151_v17 = vrot.slane %v556_v1, 3 }
  0x77   : > { %v1272_v15 = vadd.f32 %v1149_v48, %v1033_v0  ;;  %v1774_v36 = vpack.c.bf16 %v1270_v38, %v1270_v38  ;;  %v724_v9 = vrot.slane %v607_v3, 1  ;;  %v912_v59 = vrot.slane %v607_v3, 2 }
  0x78   : > { %v1271_v57 = vadd.f32 %v1150_v2, %v1032_v24  ;;  %v725_v12 = vrot.slane %v608_v45, 1  ;;  %v913_v29 = vrot.slane %v608_v45, 2  ;;  %v1152_v26 = vrot.slane %v557_v35, 3 }
  0x79   : > { %v1776_v11 = vpack.c.bf16 %v1272_v15, %v1272_v15  ;;  %1558 = vst.msk [vmem:[%s2023_s17 + $0x48] sm:$0xf] %vm1524_vm5, %v1774_v36  ;;  %v447_v31 = vadd.f32 %v393_v42, %v345_v10  ;;  %v241_v56 = vunpack.c.l.bf16 %v2358_v28  ;;  %v242_v52 = vunpack.c.h.bf16 %v2358_v28 }
  0x7a   : > { %v1775_v18 = vpack.c.bf16 %v1271_v57, %v1271_v57  ;;  %v726_v27 = vsel %vm688_vm0, %v724_v9, %v725_v12  ;;  %v914_v41 = vsel %vm876_vm1, %v912_v59, %v913_v29  ;;  %v1153_v43 = vsel %vm1115_vm2, %v1151_v17, %v1152_v26 }
  0x7b   : > { %v1561_v51 = vsel %vm2036_vm6, %v1776_v11, %v1560_v8  ;;  %v846_v39 = vadd.f32 %v726_v27, %v556_v1  ;;  %v507_v55 = vadd.f32 %v447_v31, %v2353_v60  ;;  %v2376_v34 = vmul.f32 0.125, %v241_v56  ;;  %v1565_v31 = vld [vmem:[%s2023_s17 + $0x5c] sm:$0x1] }
  0x7c   : > { %1559 = vst.msk [vmem:[%s2023_s17 + $0x4c] sm:$0xf] %vm1524_vm5, %v1775_v18  ;;  %1562 = vst [vmem:[%s2023_s17 + $0x50] sm:$0x1] %v1561_v51  ;;  %v2383_v63 = vmul.f32 0.125, %v242_v52  ;;  %v2387_v7 = vmul.f32 0.375, %v1829_v14  ;;  %v394_v44 = vadd.f32 %v2321_v16, %v2219_v33  ;;  %v395_v54 = vadd.f32 %v2336_v58, %v2226_v37 }
  0x7d   : > { %v2391_v25 = vmul.f32 0.375, %v1830_v22  ;;  %v1034_v48 = vadd.f32 %v914_v41, %v846_v39  ;;  %v558_v49 = vmul.f32 0.125, %v507_v55  ;;  %v609_v40 = vmul.f32 0.375, %v507_v55 }
  0x7e   : > { %v448_v20 = vadd.f32 %v394_v44, %v2387_v7  ;;  %v243_v53 = vunpack.c.l.bf16 %v2379_v13  ;;  %v2399_v14 = vmul.f32 0.375, %v240_v4  ;;  %v396_v21 = vadd.f32 %v345_v10, %v2249_v5 }
  0x7f   : > { %v1273_v22 = vadd.f32 %v1153_v43, %v1034_v48  ;;  %v727_v47 = vrot.slane %v609_v40, 1  ;;  %v915_v61 = vrot.slane %v609_v40, 2  ;;  %v1154_v33 = vrot.slane %v558_v49, 3 }
  0x80   : > { %v449_v16 = vadd.f32 %v395_v54, %v2391_v25  ;;  %v508_v2 = vadd.f32 %v448_v20, %v2376_v34  ;;  %v2406_v37 = vmul.f32 0.125, %v243_v53  ;;  %v450_v58 = vadd.f32 %v396_v21, %v2399_v14 }
  0x81   : > { %v1777_v4 = vpack.c.bf16 %v1273_v22, %v1273_v22  ;;  %v728_v5 = vsel %vm688_vm0, %v725_v12, %v727_v47  ;;  %v916_v0 = vsel %vm876_vm1, %v913_v29, %v915_v61  ;;  %v1155_v19 = vsel %vm1115_vm2, %v1152_v26, %v1154_v33 }
  0x82   : > { %v847_v10 = vadd.f32 %v728_v5, %v557_v35  ;;  %v848_v38 = vadd.f32 %v727_v47, %v558_v49  ;;  %v509_v24 = vadd.f32 %v449_v16, %v2383_v63  ;;  %v559_v1 = vmul.f32 0.125, %v508_v2 }
  0x83   : > { %1563 = vst.msk [vmem:[%s2023_s17 + $0x54] sm:$0xf] %vm1524_vm5, %v1777_v4  ;;  %v610_v3 = vmul.f32 0.375, %v508_v2  ;;  %v510_v15 = vadd.f32 %v450_v58, %v2406_v37  ;;  %v1833_v45 = vunpack.c.l.bf16 %v2410_v50  ;;  %v1834_v42 = vunpack.c.h.bf16 %v2410_v50 }
  0x84   : > { %v1035_v36 = vadd.f32 %v916_v0, %v847_v10  ;;  %v1036_v57 = vadd.f32 %v915_v61, %v848_v38  ;;  %v560_v8 = vmul.f32 0.125, %v509_v24  ;;  %v611_v9 = vmul.f32 0.375, %v509_v24  ;;  %v2453_v10 = vld [vmem:[%s1940_s13 + $0x9c] sm:$0xff]  }
  0x85   : > { %v729_v59 = vrot.slane %v610_v3, 1  ;;  %v917_v35 = vrot.slane %v610_v3, 2  ;;  %v1156_v11 = vrot.slane %v559_v1, 3  ;;  %v561_v12 = vmul.f32 0.125, %v510_v15 }
  0x86   : > { %v1274_v29 = vadd.f32 %v1155_v19, %v1035_v36  ;;  %v1275_v17 = vadd.f32 %v1154_v33, %v1036_v57  ;;  %v730_v18 = vrot.slane %v611_v9, 1  ;;  %v918_v26 = vrot.slane %v611_v9, 2  ;;  %v2441_v33 = vld [vmem:[%s1940_s13 + $0x98] sm:$0x3] }
  0x87   : > { %v1157_v51 = vrot.slane %v560_v8, 3  ;;  %v612_v27 = vmul.f32 0.375, %v510_v15  ;;  %v1159_v41 = vrot.slane %v561_v12, 3  ;;  %v2424_v39 = vmul.f32 0.125, %v1833_v45 }
  0x88   : > { %v1778_v43 = vpack.c.bf16 %v1274_v29, %v1274_v29  ;;  %v1779_v55 = vpack.c.bf16 %v1275_v17, %v1275_v17  ;;  %v731_v44 = vsel %vm688_vm0, %v729_v59, %v730_v18  ;;  %v919_v48 = vsel %vm876_vm1, %v917_v35, %v918_v26 }
  0x89   : > { %v849_v49 = vadd.f32 %v731_v44, %v559_v1  ;;  %v1158_v40 = vsel %vm1115_vm2, %v1156_v11, %v1157_v51  ;;  %v732_v54 = vrot.slane %v612_v27, 1  ;;  %v920_v20 = vrot.slane %v612_v27, 2 }
  0x8a   : > { %1564 = vst.msk [vmem:[%s2023_s17 + $0x58] sm:$0xf] %vm1524_vm5, %v1778_v43  ;;  %v1566_v21 = vsel %vm2036_vm6, %v1779_v55, %v1565_v31  ;;  %v1160_v22 = vsel %vm1115_vm2, %v1157_v51, %v1159_v41  ;;  %v2436_v47 = vmul.f32 0.125, %v1834_v42  ;;  %v349_v61 = vmul.f32 0.375, %v241_v56 }
  0x8b   : > { %1567 = vst [vmem:[%s2023_s17 + $0x5c] sm:$0x1] %v1566_v21  ;;  %v1037_v16 = vadd.f32 %v919_v48, %v849_v49  ;;  %v733_v2 = vsel %vm688_vm0, %v730_v18, %v732_v54  ;;  %v921_v58 = vsel %vm876_vm1, %v918_v26, %v920_v20  ;;  %v851_v4 = vadd.f32 %v732_v54, %v561_v12 }
  0x8c   : > { %v850_v5 = vadd.f32 %v733_v2, %v560_v8  ;;  %v350_v0 = vmul.f32 0.375, %v242_v52  ;;  %v397_v19 = vadd.f32 %v2387_v7, %v2267_v23  ;;  %v398_v56 = vadd.f32 %v2391_v25, %v2279_v30  ;;  %v1570_v8 = vld [vmem:[%s2023_s17 + $0x68] sm:$0x1] }
  0x8d   : > { %v1276_v38 = vadd.f32 %v1158_v40, %v1037_v16  ;;  %v1039_v24 = vadd.f32 %v920_v20, %v851_v4  ;;  %v246_v1 = vunpack.c.l.bf16 %v2441_v33  ;;  %v2458_v3 = vmul.f32 0.375, %v243_v53 }
  0x8e   : > { %v1038_v28 = vadd.f32 %v921_v58, %v850_v5  ;;  %v451_v52 = vadd.f32 %v397_v19, %v349_v61  ;;  %v452_v15 = vadd.f32 %v398_v56, %v350_v0  ;;  %v399_v23 = vadd.f32 %v2399_v14, %v2305_v32 }
  0x8f   : > { %v1780_v7 = vpack.c.bf16 %v1276_v38, %v1276_v38  ;;  %v1278_v36 = vadd.f32 %v1159_v41, %v1039_v24  ;;  %v2462_v30 = vmul.f32 0.125, %v246_v1  ;;  %v247_v25 = vunpack.c.l.bf16 %v2453_v10 }
  0x90   : > { %v1277_v57 = vadd.f32 %v1160_v22, %v1038_v28  ;;  %v511_v9 = vadd.f32 %v451_v52, %v2424_v39  ;;  %v512_v13 = vadd.f32 %v452_v15, %v2436_v47  ;;  %v453_v53 = vadd.f32 %v399_v23, %v2458_v3  ;;  %v2498_v22 = vld [vmem:[%s1940_s13 + $0xa4] sm:$0x3] }
  0x91   : > { %1568 = vst.msk [vmem:[%s2023_s17 + $0x60] sm:$0xf] %vm1524_vm5, %v1780_v7  ;;  %v1782_v59 = vpack.c.bf16 %v1278_v36, %v1278_v36  ;;  %v248_v32 = vunpack.c.h.bf16 %v2453_v10  ;;  %v2474_v14 = vmul.f32 0.125, %v247_v25  ;;  %v2478_v35 = vmul.f32 0.375, %v1833_v45 }
  0x92   : > { %v1781_v11 = vpack.c.bf16 %v1277_v57, %v1277_v57  ;;  %v562_v12 = vmul.f32 0.125, %v511_v9  ;;  %v563_v29 = vmul.f32 0.125, %v512_v13  ;;  %v613_v17 = vmul.f32 0.375, %v511_v9 }
  0x93   : > { %v1571_v18 = vsel %vm2036_vm6, %v1782_v59, %v1570_v8  ;;  %v614_v26 = vmul.f32 0.375, %v512_v13  ;;  %v513_v31 = vadd.f32 %v453_v53, %v2462_v30  ;;  %v2485_v51 = vmul.f32 0.125, %v248_v32 }
  0x94   : > { %1569 = vst.msk [vmem:[%s2023_s17 + $0x64] sm:$0xf] %vm1524_vm5, %v1781_v11  ;;  %1572 = vst [vmem:[%s2023_s17 + $0x68] sm:$0x1] %v1571_v18  ;;  %v734_v45 = vrot.slane %v613_v17, 1  ;;  %v922_v27 = vrot.slane %v613_v17, 2  ;;  %v400_v20 = vadd.f32 %v349_v61, %v2317_v6  ;;  %v401_v21 = vadd.f32 %v350_v0, %v2328_v46 }
  0x95   : > { %v1161_v41 = vrot.slane %v562_v12, 3  ;;  %v1162_v43 = vrot.slane %v563_v29, 3  ;;  %v735_v55 = vrot.slane %v614_v26, 1  ;;  %v923_v44 = vrot.slane %v614_v26, 2  ;;  %v2515_v11 = vld [vmem:[%s1940_s13 + $0xa8] sm:$0xff]  }
  0x96   : > { %v564_v48 = vmul.f32 0.125, %v513_v31  ;;  %v615_v49 = vmul.f32 0.375, %v513_v31  ;;  %v2493_v54 = vmul.f32 0.375, %v1834_v42  ;;  %v454_v19 = vadd.f32 %v400_v20, %v2478_v35  ;;  %v1575_v17 = vld [vmem:[%s2023_s17 + $0x74] sm:$0x1] }
  0x97   : > { %v1163_v40 = vsel %vm1115_vm2, %v1161_v41, %v1162_v43  ;;  %v736_v33 = vsel %vm688_vm0, %v734_v45, %v735_v55  ;;  %v924_v16 = vsel %vm876_vm1, %v922_v27, %v923_v44  ;;  %v249_v46 = vunpack.c.l.bf16 %v2498_v22 }
  0x98   : > { %v737_v2 = vrot.slane %v615_v49, 1  ;;  %v925_v58 = vrot.slane %v615_v49, 2  ;;  %v852_v4 = vadd.f32 %v736_v33, %v562_v12  ;;  %v1164_v5 = vrot.slane %v564_v48, 3  ;;  %v2536_v33 = vld [vmem:[%s1940_s13 + $0xb0] sm:$0x3] }
  0x99   : > { %v455_v50 = vadd.f32 %v401_v21, %v2493_v54  ;;  %v514_v24 = vadd.f32 %v454_v19, %v2474_v14  ;;  %v2510_v15 = vmul.f32 0.125, %v249_v46  ;;  %v354_v23 = vmul.f32 0.375, %v246_v1 }
  0x9a   : > { %v738_v42 = vsel %vm688_vm0, %v735_v55, %v737_v2  ;;  %v926_v6 = vsel %vm876_vm1, %v923_v44, %v925_v58  ;;  %v854_v61 = vadd.f32 %v737_v2, %v564_v48  ;;  %v1040_v0 = vadd.f32 %v924_v16, %v852_v4 }
  0x9b   : > { %v853_v56 = vadd.f32 %v738_v42, %v563_v29  ;;  %v1165_v38 = vsel %vm1115_vm2, %v1162_v43, %v1164_v5  ;;  %v515_v52 = vadd.f32 %v455_v50, %v2485_v51  ;;  %v565_v57 = vmul.f32 0.125, %v514_v24 }
  0x9c   : > { %v1042_v28 = vadd.f32 %v925_v58, %v854_v61  ;;  %v1279_v7 = vadd.f32 %v1163_v40, %v1040_v0  ;;  %v616_v8 = vmul.f32 0.375, %v514_v24  ;;  %v402_v59 = vadd.f32 %v2458_v3, %v2353_v60  ;;  %v2567_v24 = vld [vmem:[%s1940_s13 + $0xb4] sm:$0xff]  }
  0x9d   : > { %v1041_v36 = vadd.f32 %v926_v6, %v853_v56  ;;  %v566_v13 = vmul.f32 0.125, %v515_v52  ;;  %v617_v53 = vmul.f32 0.375, %v515_v52  ;;  %v1166_v27 = vrot.slane %v565_v57, 3 }
  0x9e   : > { %v1281_v9 = vadd.f32 %v1164_v5, %v1042_v28  ;;  %v1783_v12 = vpack.c.bf16 %v1279_v7, %v1279_v7  ;;  %v739_v18 = vrot.slane %v616_v8, 1  ;;  %v927_v1 = vrot.slane %v616_v8, 2 }
  0x9f   : > { %v1280_v29 = vadd.f32 %v1165_v38, %v1041_v36  ;;  %v740_v31 = vrot.slane %v617_v53, 1  ;;  %v928_v45 = vrot.slane %v617_v53, 2  ;;  %v1167_v43 = vrot.slane %v566_v13, 3 }
  0xa0   : > { %v1785_v26 = vpack.c.bf16 %v1281_v9, %v1281_v9  ;;  %1573 = vst.msk [vmem:[%s2023_s17 + $0x6c] sm:$0xf] %vm1524_vm5, %v1783_v12  ;;  %v456_v55 = vadd.f32 %v402_v59, %v354_v23  ;;  %v1837_v60 = vunpack.c.l.bf16 %v2515_v11  ;;  %v1838_v49 = vunpack.c.h.bf16 %v2515_v11 }
  0xa1   : > { %v1784_v41 = vpack.c.bf16 %v1280_v29, %v1280_v29  ;;  %v741_v44 = vsel %vm688_vm0, %v739_v18, %v740_v31  ;;  %v929_v48 = vsel %vm876_vm1, %v927_v1, %v928_v45  ;;  %v1168_v20 = vsel %vm1115_vm2, %v1166_v27, %v1167_v43 }
  0xa2   : > { %v1576_v3 = vsel %vm2036_vm6, %v1785_v26, %v1575_v17  ;;  %v855_v40 = vadd.f32 %v741_v44, %v565_v57  ;;  %v516_v21 = vadd.f32 %v456_v55, %v2510_v15  ;;  %v2533_v22 = vmul.f32 0.125, %v1837_v60  ;;  %v1580_v55 = vld [vmem:[%s2023_s17 + $0x80] sm:$0x1] }
  0xa3   : > { %1574 = vst.msk [vmem:[%s2023_s17 + $0x70] sm:$0xf] %vm1524_vm5, %v1784_v41  ;;  %1577 = vst [vmem:[%s2023_s17 + $0x74] sm:$0x1] %v1576_v3  ;;  %v2540_v16 = vmul.f32 0.125, %v1838_v49  ;;  %v2544_v2 = vmul.f32 0.375, %v247_v25  ;;  %v403_v4 = vadd.f32 %v2478_v35, %v2376_v34  ;;  %v404_v42 = vadd.f32 %v2493_v54, %v2383_v63 }
  0xa4   : > { %v2548_v58 = vmul.f32 0.375, %v248_v32  ;;  %v1043_v5 = vadd.f32 %v929_v48, %v855_v40  ;;  %v567_v19 = vmul.f32 0.125, %v516_v21  ;;  %v618_v50 = vmul.f32 0.375, %v516_v21 }
  0xa5   : > { %v457_v6 = vadd.f32 %v403_v4, %v2544_v2  ;;  %v252_v61 = vunpack.c.l.bf16 %v2536_v33  ;;  %v2556_v25 = vmul.f32 0.375, %v249_v46  ;;  %v405_v10 = vadd.f32 %v354_v23, %v2406_v37 }
  0xa6   : > { %v1282_v32 = vadd.f32 %v1168_v20, %v1043_v5  ;;  %v742_v0 = vrot.slane %v618_v50, 1  ;;  %v930_v56 = vrot.slane %v618_v50, 2  ;;  %v1169_v34 = vrot.slane %v567_v19, 3 }
  0xa7   : > { %v458_v35 = vadd.f32 %v404_v42, %v2548_v58  ;;  %v517_v38 = vadd.f32 %v457_v6, %v2533_v22  ;;  %v2563_v63 = vmul.f32 0.125, %v252_v61  ;;  %v459_v54 = vadd.f32 %v405_v10, %v2556_v25 }
  0xa8   : > { %v1786_v46 = vpack.c.bf16 %v1282_v32, %v1282_v32  ;;  %v743_v37 = vsel %vm688_vm0, %v740_v31, %v742_v0  ;;  %v931_v28 = vsel %vm876_vm1, %v928_v45, %v930_v56  ;;  %v1170_v52 = vsel %vm1115_vm2, %v1167_v43, %v1169_v34 }
  0xa9   : > { %v856_v23 = vadd.f32 %v743_v37, %v566_v13  ;;  %v857_v7 = vadd.f32 %v742_v0, %v567_v19  ;;  %v518_v36 = vadd.f32 %v458_v35, %v2540_v16  ;;  %v568_v57 = vmul.f32 0.125, %v517_v38 }
  0xaa   : > { %1578 = vst.msk [vmem:[%s2023_s17 + $0x78] sm:$0xf] %vm1524_vm5, %v1786_v46  ;;  %v619_v8 = vmul.f32 0.375, %v517_v38  ;;  %v519_v9 = vadd.f32 %v459_v54, %v2563_v63  ;;  %v253_v53 = vunpack.c.l.bf16 %v2567_v24  ;;  %v254_v59 = vunpack.c.h.bf16 %v2567_v24 }
  0xab   : > { %v1044_v12 = vadd.f32 %v931_v28, %v856_v23  ;;  %v1045_v29 = vadd.f32 %v930_v56, %v857_v7  ;;  %v569_v17 = vmul.f32 0.125, %v518_v36  ;;  %v620_v18 = vmul.f32 0.375, %v518_v36  ;;  %v2610_v23 = vld [vmem:[%s1940_s13 + $0xc0] sm:$0xff]  }
  0xac   : > { %v744_v1 = vrot.slane %v619_v8, 1  ;;  %v932_v13 = vrot.slane %v619_v8, 2  ;;  %v1171_v26 = vrot.slane %v568_v57, 3  ;;  %v570_v31 = vmul.f32 0.125, %v519_v9 }
  0xad   : > { %v1283_v45 = vadd.f32 %v1170_v52, %v1044_v12  ;;  %v1284_v27 = vadd.f32 %v1169_v34, %v1045_v29  ;;  %v745_v41 = vrot.slane %v620_v18, 1  ;;  %v933_v43 = vrot.slane %v620_v18, 2  ;;  %v2598_v34 = vld [vmem:[%s1940_s13 + $0xbc] sm:$0x3] }
  0xae   : > { %v1172_v3 = vrot.slane %v569_v17, 3  ;;  %v621_v44 = vmul.f32 0.375, %v519_v9  ;;  %v1174_v48 = vrot.slane %v570_v31, 3  ;;  %v2581_v40 = vmul.f32 0.125, %v253_v53 }
  0xaf   : > { %v1787_v20 = vpack.c.bf16 %v1283_v45, %v1283_v45  ;;  %v1788_v21 = vpack.c.bf16 %v1284_v27, %v1284_v27  ;;  %v746_v4 = vsel %vm688_vm0, %v744_v1, %v745_v41  ;;  %v934_v5 = vsel %vm876_vm1, %v932_v13, %v933_v43 }
  0xb0   : > { %v858_v19 = vadd.f32 %v746_v4, %v568_v57  ;;  %v1173_v50 = vsel %vm1115_vm2, %v1171_v26, %v1172_v3  ;;  %v747_v42 = vrot.slane %v621_v44, 1  ;;  %v935_v6 = vrot.slane %v621_v44, 2 }
  0xb1   : > { %1579 = vst.msk [vmem:[%s2023_s17 + $0x7c] sm:$0xf] %vm1524_vm5, %v1787_v20  ;;  %v1581_v10 = vsel %vm2036_vm6, %v1788_v21, %v1580_v55  ;;  %v1175_v32 = vsel %vm1115_vm2, %v1172_v3, %v1174_v48  ;;  %v2593_v0 = vmul.f32 0.125, %v254_v59  ;;  %v358_v56 = vmul.f32 0.375, %v1837_v60 }
  0xb2   : > { %1582 = vst [vmem:[%s2023_s17 + $0x80] sm:$0x1] %v1581_v10  ;;  %v1046_v35 = vadd.f32 %v934_v5, %v858_v19  ;;  %v748_v38 = vsel %vm688_vm0, %v745_v41, %v747_v42  ;;  %v936_v54 = vsel %vm876_vm1, %v933_v43, %v935_v6  ;;  %v860_v46 = vadd.f32 %v747_v42, %v570_v31 }
  0xb3   : > { %v859_v37 = vadd.f32 %v748_v38, %v569_v17  ;;  %v359_v28 = vmul.f32 0.375, %v1838_v49  ;;  %v406_v52 = vadd.f32 %v2544_v2, %v2424_v39  ;;  %v407_v60 = vadd.f32 %v2548_v58, %v2436_v47  ;;  %v1585_v17 = vld [vmem:[%s2023_s17 + $0x8c] sm:$0x1] }
  0xb4   : > { %v1285_v7 = vadd.f32 %v1173_v50, %v1046_v35  ;;  %v1048_v36 = vadd.f32 %v935_v6, %v860_v46  ;;  %v255_v57 = vunpack.c.l.bf16 %v2598_v34  ;;  %v2615_v8 = vmul.f32 0.375, %v252_v61 }
  0xb5   : > { %v1047_v11 = vadd.f32 %v936_v54, %v859_v37  ;;  %v460_v49 = vadd.f32 %v406_v52, %v358_v56  ;;  %v461_v9 = vadd.f32 %v407_v60, %v359_v28  ;;  %v408_v39 = vadd.f32 %v2556_v25, %v2462_v30 }
  0xb6   : > { %v1789_v2 = vpack.c.bf16 %v1285_v7, %v1285_v7  ;;  %v1287_v12 = vadd.f32 %v1174_v48, %v1048_v36  ;;  %v2619_v47 = vmul.f32 0.125, %v255_v57  ;;  %v1841_v58 = vunpack.c.l.bf16 %v2610_v23 }
  0xb7   : > { %v1286_v29 = vadd.f32 %v1175_v32, %v1047_v11  ;;  %v520_v18 = vadd.f32 %v460_v49, %v2581_v40  ;;  %v521_v33 = vadd.f32 %v461_v9, %v2593_v0  ;;  %v462_v61 = vadd.f32 %v408_v39, %v2615_v8  ;;  %v2653_v32 = vld [vmem:[%s1940_s13 + $0xc8] sm:$0x3] }
  0xb8   : > { %1583 = vst.msk [vmem:[%s2023_s17 + $0x84] sm:$0xf] %vm1524_vm5, %v1789_v2  ;;  %v1791_v1 = vpack.c.bf16 %v1287_v12, %v1287_v12  ;;  %v1842_v30 = vunpack.c.h.bf16 %v2610_v23  ;;  %v2631_v25 = vmul.f32 0.125, %v1841_v58  ;;  %v2635_v13 = vmul.f32 0.375, %v253_v53 }
  0xb9   : > { %v1790_v26 = vpack.c.bf16 %v1286_v29, %v1286_v29  ;;  %v571_v31 = vmul.f32 0.125, %v520_v18  ;;  %v572_v45 = vmul.f32 0.125, %v521_v33  ;;  %v622_v27 = vmul.f32 0.375, %v520_v18 }
  0xba   : > { %v1586_v41 = vsel %vm2036_vm6, %v1791_v1, %v1585_v17  ;;  %v623_v43 = vmul.f32 0.375, %v521_v33  ;;  %v522_v55 = vadd.f32 %v462_v61, %v2619_v47  ;;  %v2642_v3 = vmul.f32 0.125, %v1842_v30 }
  0xbb   : > { %1584 = vst.msk [vmem:[%s2023_s17 + $0x88] sm:$0xf] %vm1524_vm5, %v1790_v26  ;;  %1587 = vst [vmem:[%s2023_s17 + $0x8c] sm:$0x1] %v1586_v41  ;;  %v749_v53 = vrot.slane %v622_v27, 1  ;;  %v937_v44 = vrot.slane %v622_v27, 2  ;;  %v409_v6 = vadd.f32 %v358_v56, %v2474_v14  ;;  %v410_v10 = vadd.f32 %v359_v28, %v2485_v51 }
  0xbc   : > { %v1176_v48 = vrot.slane %v571_v31, 3  ;;  %v1177_v20 = vrot.slane %v572_v45, 3  ;;  %v750_v21 = vrot.slane %v623_v43, 1  ;;  %v938_v4 = vrot.slane %v623_v43, 2  ;;  %v2669_v26 = vld [vmem:[%s1940_s13 + $0xcc] sm:$0xff]  }
  0xbd   : > { %v573_v5 = vmul.f32 0.125, %v522_v55  ;;  %v624_v19 = vmul.f32 0.375, %v522_v55  ;;  %v362_v42 = vmul.f32 0.375, %v254_v59  ;;  %v463_v52 = vadd.f32 %v409_v6, %v2635_v13  ;;  %v1590_v27 = vld [vmem:[%s2023_s17 + $0x98] sm:$0x1] }
  0xbe   : > { %v1178_v50 = vsel %vm1115_vm2, %v1176_v48, %v1177_v20  ;;  %v751_v34 = vsel %vm688_vm0, %v749_v53, %v750_v21  ;;  %v939_v35 = vsel %vm876_vm1, %v937_v44, %v938_v4  ;;  %v258_v51 = vunpack.c.l.bf16 %v2653_v32 }
  0xbf   : > { %v752_v38 = vrot.slane %v624_v19, 1  ;;  %v940_v54 = vrot.slane %v624_v19, 2  ;;  %v861_v46 = vadd.f32 %v751_v34, %v571_v31  ;;  %v1179_v37 = vrot.slane %v573_v5, 3  ;;  %v2688_v34 = vld [vmem:[%s1940_s13 + $0xd4] sm:$0x3] }
  0xc0   : > { %v464_v60 = vadd.f32 %v410_v10, %v362_v42  ;;  %v523_v36 = vadd.f32 %v463_v52, %v2631_v25  ;;  %v2664_v9 = vmul.f32 0.125, %v258_v51  ;;  %v363_v39 = vmul.f32 0.375, %v255_v57 }
  0xc1   : > { %v753_v24 = vsel %vm688_vm0, %v750_v21, %v752_v38  ;;  %v941_v59 = vsel %vm876_vm1, %v938_v4, %v940_v54  ;;  %v863_v14 = vadd.f32 %v752_v38, %v573_v5  ;;  %v1049_v56 = vadd.f32 %v939_v35, %v861_v46 }
  0xc2   : > { %v862_v28 = vadd.f32 %v753_v24, %v572_v45  ;;  %v1180_v7 = vsel %vm1115_vm2, %v1177_v20, %v1179_v37  ;;  %v524_v49 = vadd.f32 %v464_v60, %v2642_v3  ;;  %v574_v29 = vmul.f32 0.125, %v523_v36 }
  0xc3   : > { %v1051_v11 = vadd.f32 %v940_v54, %v863_v14  ;;  %v1288_v2 = vadd.f32 %v1178_v50, %v1049_v56  ;;  %v625_v17 = vmul.f32 0.375, %v523_v36  ;;  %v411_v1 = vadd.f32 %v2615_v8, %v2510_v15  ;;  %v2704_v36 = vld [vmem:[%s1940_s13 + $0xd8] sm:$0xff]  }
  0xc4   : > { %v1050_v12 = vadd.f32 %v941_v59, %v862_v28  ;;  %v575_v33 = vmul.f32 0.125, %v524_v49  ;;  %v626_v61 = vmul.f32 0.375, %v524_v49  ;;  %v1181_v44 = vrot.slane %v574_v29, 3 }
  0xc5   : > { %v1290_v18 = vadd.f32 %v1179_v37, %v1051_v11  ;;  %v1792_v31 = vpack.c.bf16 %v1288_v2, %v1288_v2  ;;  %v754_v41 = vrot.slane %v625_v17, 1  ;;  %v942_v57 = vrot.slane %v625_v17, 2 }
  0xc6   : > { %v1289_v45 = vadd.f32 %v1180_v7, %v1050_v12  ;;  %v755_v55 = vrot.slane %v626_v61, 1  ;;  %v943_v53 = vrot.slane %v626_v61, 2  ;;  %v1182_v20 = vrot.slane %v575_v33, 3 }
  0xc7   : > { %v1794_v43 = vpack.c.bf16 %v1290_v18, %v1290_v18  ;;  %1588 = vst.msk [vmem:[%s2023_s17 + $0x90] sm:$0xf] %vm1524_vm5, %v1792_v31  ;;  %v465_v21 = vadd.f32 %v411_v1, %v363_v39  ;;  %v259_v15 = vunpack.c.l.bf16 %v2669_v26  ;;  %v260_v19 = vunpack.c.h.bf16 %v2669_v26 }
  0xc8   : > { %v1793_v48 = vpack.c.bf16 %v1289_v45, %v1289_v45  ;;  %v756_v4 = vsel %vm688_vm0, %v754_v41, %v755_v55  ;;  %v944_v5 = vsel %vm876_vm1, %v942_v57, %v943_v53  ;;  %v1183_v6 = vsel %vm1115_vm2, %v1181_v44, %v1182_v20 }
  0xc9   : > { %v1591_v8 = vsel %vm2036_vm6, %v1794_v43, %v1590_v27  ;;  %v864_v50 = vadd.f32 %v756_v4, %v574_v29  ;;  %v525_v10 = vadd.f32 %v465_v21, %v2664_v9  ;;  %v364_v32 = vmul.f32 0.375, %v1841_v58  ;;  %v1595_v21 = vld [vmem:[%s2023_s17 + $0xa4] sm:$0x1] }
  0xca   : > { %1589 = vst.msk [vmem:[%s2023_s17 + $0x94] sm:$0xf] %vm1524_vm5, %v1793_v48  ;;  %1592 = vst [vmem:[%s2023_s17 + $0x98] sm:$0x1] %v1591_v8  ;;  %v365_v35 = vmul.f32 0.375, %v1842_v30  ;;  %v412_v38 = vadd.f32 %v2635_v13, %v2533_v22  ;;  %v413_v54 = vadd.f32 %v362_v42, %v2540_v16  ;;  %v475_v46 = vmul.f32 0.125, %v259_v15 }
  0xcb   : > { %v1052_v37 = vadd.f32 %v944_v5, %v864_v50  ;;  %v576_v52 = vmul.f32 0.125, %v525_v10  ;;  %v627_v60 = vmul.f32 0.375, %v525_v10  ;;  %v476_v24 = vmul.f32 0.125, %v260_v19 }
  0xcc   : > { %v466_v59 = vadd.f32 %v412_v38, %v364_v32  ;;  %v467_v58 = vadd.f32 %v413_v54, %v365_v35  ;;  %v261_v14 = vunpack.c.l.bf16 %v2688_v34  ;;  %v2698_v56 = vmul.f32 0.375, %v258_v51 }
  0xcd   : > { %v1291_v23 = vadd.f32 %v1183_v6, %v1052_v37  ;;  %v757_v30 = vrot.slane %v627_v60, 1  ;;  %v945_v22 = vrot.slane %v627_v60, 2  ;;  %v1184_v13 = vrot.slane %v576_v52, 3 }
  0xce   : > { %v526_v16 = vadd.f32 %v475_v46, %v466_v59  ;;  %v527_v42 = vadd.f32 %v476_v24, %v467_v58  ;;  %v414_v28 = vadd.f32 %v363_v39, %v2563_v63  ;;  %v477_v7 = vmul.f32 0.125, %v261_v14  ;;  %v2723_v24 = vld [vmem:[%s1940_s13 + $0xe0] sm:$0x3] }
  0xcf   : > { %v1795_v11 = vpack.c.bf16 %v1291_v23, %v1291_v23  ;;  %v758_v49 = vsel %vm688_vm0, %v755_v55, %v757_v30  ;;  %v946_v51 = vsel %vm876_vm1, %v943_v53, %v945_v22  ;;  %v1185_v2 = vsel %vm1115_vm2, %v1182_v20, %v1184_v13 }
  0xd0   : > { %v865_v12 = vadd.f32 %v758_v49, %v575_v33  ;;  %v866_v29 = vadd.f32 %v757_v30, %v576_v52  ;;  %v577_v17 = vmul.f32 0.125, %v526_v16  ;;  %v578_v18 = vmul.f32 0.125, %v527_v42 }
  0xd1   : > { %1593 = vst.msk [vmem:[%s2023_s17 + $0x9c] sm:$0xf] %vm1524_vm5, %v1795_v11  ;;  %v628_v61 = vmul.f32 0.375, %v526_v16  ;;  %v629_v63 = vmul.f32 0.375, %v527_v42  ;;  %v468_v39 = vadd.f32 %v414_v28, %v2698_v56  ;;  %v1845_v1 = vunpack.c.l.bf16 %v2704_v36 }
  0xd2   : > { %v1053_v31 = vadd.f32 %v946_v51, %v865_v12  ;;  %v1054_v45 = vadd.f32 %v945_v22, %v866_v29  ;;  %v1186_v27 = vrot.slane %v577_v17, 3  ;;  %v1187_v41 = vrot.slane %v578_v18, 3 }
  0xd3   : > { %v759_v57 = vrot.slane %v628_v61, 1  ;;  %v760_v43 = vrot.slane %v629_v63, 1  ;;  %v947_v55 = vrot.slane %v628_v61, 2  ;;  %v948_v33 = vrot.slane %v629_v63, 2 }
  0xd4   : > { %v1292_v53 = vadd.f32 %v1185_v2, %v1053_v31  ;;  %v1293_v44 = vadd.f32 %v1184_v13, %v1054_v45  ;;  %v1188_v48 = vsel %vm1115_vm2, %v1186_v27, %v1187_v41  ;;  %v528_v20 = vadd.f32 %v477_v7, %v468_v39  ;;  %v205_v45 = vld [vmem:[%s1940_s13 + $0xe4] sm:$0xff]  }
  0xd5   : > { %v761_v8 = vsel %vm688_vm0, %v759_v57, %v760_v43  ;;  %v949_v4 = vsel %vm876_vm1, %v947_v55, %v948_v33  ;;  %v1846_v5 = vunpack.c.h.bf16 %v2704_v36  ;;  %v367_v50 = vmul.f32 0.375, %v259_v15 }
  0xd6   : > { %v1796_v6 = vpack.c.bf16 %v1292_v53, %v1292_v53  ;;  %v1797_v10 = vpack.c.bf16 %v1293_v44, %v1293_v44  ;;  %v867_v38 = vadd.f32 %v761_v8, %v577_v17  ;;  %v579_v54 = vmul.f32 0.125, %v528_v20 }
  0xd7   : > { %v630_v46 = vmul.f32 0.375, %v528_v20  ;;  %v368_v37 = vmul.f32 0.375, %v260_v19  ;;  %v415_v52 = vadd.f32 %v364_v32, %v2581_v40  ;;  %v416_v60 = vadd.f32 %v365_v35, %v2593_v0 }
  0xd8   : > { %1594 = vst.msk [vmem:[%s2023_s17 + $0xa0] sm:$0xf] %vm1524_vm5, %v1796_v6  ;;  %v1596_v59 = vsel %vm2036_vm6, %v1797_v10, %v1595_v21  ;;  %v1055_v15 = vadd.f32 %v949_v4, %v867_v38  ;;  %v1189_v58 = vrot.slane %v579_v54, 3  ;;  %v478_v23 = vmul.f32 0.125, %v1845_v1 }
  0xd9   : > { %1597 = vst [vmem:[%s2023_s17 + $0xa4] sm:$0x1] %v1596_v59  ;;  %v762_v30 = vrot.slane %v630_v46, 1  ;;  %v950_v26 = vrot.slane %v630_v46, 2  ;;  %v469_v19 = vadd.f32 %v415_v52, %v367_v50  ;;  %v470_v22 = vadd.f32 %v416_v60, %v368_v37 }
  0xda   : > { %v1294_v40 = vadd.f32 %v1188_v48, %v1055_v15  ;;  %v1190_v0 = vsel %vm1115_vm2, %v1187_v41, %v1189_v58  ;;  %v479_v32 = vmul.f32 0.125, %v1846_v5  ;;  %v264_v35 = vunpack.c.l.bf16 %v2723_v24 }
  0xdb   : > { %v763_v13 = vsel %vm688_vm0, %v760_v43, %v762_v30  ;;  %v951_v16 = vsel %vm876_vm1, %v948_v33, %v950_v26  ;;  %v869_v42 = vadd.f32 %v762_v30, %v579_v54  ;;  %v529_v28 = vadd.f32 %v478_v23, %v469_v19  ;;  %v207_v54 = vld [vmem:[%s1940_s13 + $0xec] sm:$0x3] }
  0xdc   : > { %v1798_v7 = vpack.c.bf16 %v1294_v40, %v1294_v40  ;;  %v868_v11 = vadd.f32 %v763_v13, %v578_v18  ;;  %v530_v49 = vadd.f32 %v479_v32, %v470_v22  ;;  %v369_v51 = vmul.f32 0.375, %v261_v14  ;;  %v1600_v14 = vld [vmem:[%s2023_s17 + $0xb0] sm:$0x1] }
  0xdd   : > { %v1057_v2 = vadd.f32 %v950_v26, %v869_v42  ;;  %v580_v12 = vmul.f32 0.125, %v529_v28  ;;  %v631_v29 = vmul.f32 0.375, %v529_v28  ;;  %v417_v17 = vadd.f32 %v2698_v56, %v2619_v47 }
  0xde   : > { %1598 = vst.msk [vmem:[%s2023_s17 + $0xa8] sm:$0xf] %vm1524_vm5, %v1798_v7  ;;  %v1056_v61 = vadd.f32 %v951_v16, %v868_v11  ;;  %v581_v63 = vmul.f32 0.125, %v530_v49  ;;  %v632_v39 = vmul.f32 0.375, %v530_v49  ;;  %v480_v31 = vmul.f32 0.125, %v264_v35 }
  0xdf   : > { %v1296_v27 = vadd.f32 %v1189_v58, %v1057_v2  ;;  %v764_v18 = vrot.slane %v631_v29, 1  ;;  %v952_v41 = vrot.slane %v631_v29, 2  ;;  %v1191_v57 = vrot.slane %v580_v12, 3 }
  0xe0   : > { %v1295_v34 = vadd.f32 %v1190_v0, %v1056_v61  ;;  %v765_v43 = vrot.slane %v632_v39, 1  ;;  %v953_v55 = vrot.slane %v632_v39, 2  ;;  %v1192_v33 = vrot.slane %v581_v63, 3 }
  0xe1   : > { %v1800_v47 = vpack.c.bf16 %v1296_v27, %v1296_v27  ;;  %v471_v56 = vadd.f32 %v417_v17, %v369_v51  ;;  %v265_v53 = vunpack.c.l.bf16 %v205_v45  ;;  %v266_v44 = vunpack.c.h.bf16 %v205_v45 }
  0xe2   : > { %v1799_v48 = vpack.c.bf16 %v1295_v34, %v1295_v34  ;;  %v766_v20 = vsel %vm688_vm0, %v764_v18, %v765_v43  ;;  %v954_v21 = vsel %vm876_vm1, %v952_v41, %v953_v55  ;;  %v1193_v8 = vsel %vm1115_vm2, %v1191_v57, %v1192_v33  ;;  %v1605_v18 = vld [vmem:[%s2023_s17 + $0xbc] sm:$0x1] }
  0xe3   : > { %v1601_v4 = vsel %vm2036_vm6, %v1800_v47, %v1600_v14  ;;  %v870_v6 = vadd.f32 %v766_v20, %v580_v12  ;;  %v531_v10 = vadd.f32 %v480_v31, %v471_v56  ;;  %v418_v38 = vadd.f32 %v367_v50, %v2631_v25 }
  0xe4   : > { %1599 = vst.msk [vmem:[%s2023_s17 + $0xac] sm:$0xf] %vm1524_vm5, %v1799_v48  ;;  %1602 = vst [vmem:[%s2023_s17 + $0xb0] sm:$0x1] %v1601_v4  ;;  %v419_v46 = vadd.f32 %v368_v37, %v2642_v3  ;;  %v421_v52 = vmul.f32 0.375, %v1845_v1  ;;  %v422_v60 = vmul.f32 0.375, %v1846_v5  ;;  %v267_v25 = vunpack.c.l.bf16 %v207_v54 }
  0xe5   : > { %v481_v24 = vmul.f32 0.125, %v265_v53  ;;  %v1058_v59 = vadd.f32 %v954_v21, %v870_v6  ;;  %v582_v15 = vmul.f32 0.125, %v531_v10  ;;  %v633_v58 = vmul.f32 0.375, %v531_v10 }
  0xe6   : > { %v482_v23 = vmul.f32 0.125, %v266_v44  ;;  %v472_v30 = vadd.f32 %v421_v52, %v418_v38  ;;  %v473_v26 = vadd.f32 %v422_v60, %v419_v46  ;;  %v420_v50 = vadd.f32 %v369_v51, %v2664_v9 }
  0xe7   : > { %v1297_v19 = vadd.f32 %v1193_v8, %v1058_v59  ;;  %v767_v22 = vrot.slane %v633_v58, 1  ;;  %v955_v3 = vrot.slane %v633_v58, 2  ;;  %v1194_v37 = vrot.slane %v582_v15, 3  ;;  %v1610_v59 = vld [vmem:[%s2023_s17 + $0xc8] sm:$0x1] }
  0xe8   : > { %v532_v40 = vadd.f32 %v481_v24, %v472_v30  ;;  %v533_v1 = vadd.f32 %v482_v23, %v473_v26  ;;  %v423_v0 = vmul.f32 0.375, %v264_v35  ;;  %v483_v13 = vmul.f32 0.125, %v267_v25 }
  0xe9   : > { %v1801_v36 = vpack.c.bf16 %v1297_v19, %v1297_v19  ;;  %v768_v5 = vsel %vm688_vm0, %v765_v43, %v767_v22  ;;  %v956_v32 = vsel %vm876_vm1, %v953_v55, %v955_v3  ;;  %v872_v42 = vadd.f32 %v767_v22, %v582_v15 }
  0xea   : > { %v871_v16 = vadd.f32 %v768_v5, %v581_v63  ;;  %v583_v28 = vmul.f32 0.125, %v532_v40  ;;  %v584_v7 = vmul.f32 0.125, %v533_v1  ;;  %v1195_v9 = vsel %vm1115_vm2, %v1192_v33, %v1194_v37 }
  0xeb   : > { %1603 = vst.msk [vmem:[%s2023_s17 + $0xb4] sm:$0xf] %vm1524_vm5, %v1801_v36  ;;  %v634_v11 = vmul.f32 0.375, %v532_v40  ;;  %v635_v49 = vmul.f32 0.375, %v533_v1  ;;  %v474_v51 = vadd.f32 %v423_v0, %v420_v50  ;;  %v1060_v35 = vadd.f32 %v955_v3, %v872_v42 }
  0xec   : > { %v1059_v2 = vadd.f32 %v956_v32, %v871_v16  ;;  %v1196_v12 = vrot.slane %v583_v28, 3  ;;  %v1197_v29 = vrot.slane %v584_v7, 3 }
  0xed   : > { %v769_v17 = vrot.slane %v634_v11, 1  ;;  %v770_v61 = vrot.slane %v635_v49, 1  ;;  %v957_v39 = vrot.slane %v634_v11, 2  ;;  %v958_v63 = vrot.slane %v635_v49, 2 }
  0xee   : > { %v1298_v31 = vadd.f32 %v1195_v9, %v1059_v2  ;;  %v1299_v45 = vadd.f32 %v1194_v37, %v1060_v35  ;;  %v534_v27 = vadd.f32 %v483_v13, %v474_v51  ;;  %v1198_v55 = vsel %vm1115_vm2, %v1196_v12, %v1197_v29 }
  0xef   : > { %v771_v41 = vsel %vm688_vm0, %v769_v17, %v770_v61  ;;  %v959_v57 = vsel %vm876_vm1, %v957_v39, %v958_v63 }
  0xf0   : > { %v1802_v34 = vpack.c.bf16 %v1298_v31, %v1298_v31  ;;  %v1803_v14 = vpack.c.bf16 %v1299_v45, %v1299_v45  ;;  %v873_v43 = vadd.f32 %v771_v41, %v583_v28  ;;  %v585_v33 = vmul.f32 0.125, %v534_v27 }
  0xf1   : > { %v636_v47 = vmul.f32 0.375, %v534_v27 }
  0xf2   : > { %1604 = vst.msk [vmem:[%s2023_s17 + $0xb8] sm:$0xf] %vm1524_vm5, %v1802_v34  ;;  %v1606_v56 = vsel %vm2036_vm6, %v1803_v14, %v1605_v18  ;;  %v1061_v53 = vadd.f32 %v959_v57, %v873_v43  ;;  %v1199_v20 = vrot.slane %v585_v33, 3 }
  0xf3   : > { %1607 = vst [vmem:[%s2023_s17 + $0xbc] sm:$0x1] %v1606_v56  ;;  %v772_v44 = vrot.slane %v636_v47, 1  ;;  %v960_v48 = vrot.slane %v636_v47, 2 }
  0xf4   : > { %v1300_v21 = vadd.f32 %v1198_v55, %v1061_v53  ;;  %v1200_v54 = vsel %vm1115_vm2, %v1197_v29, %v1199_v20 }
  0xf5   : > { %v773_v8 = vsel %vm688_vm0, %v770_v61, %v772_v44  ;;  %v961_v4 = vsel %vm876_vm1, %v958_v63, %v960_v48  ;;  %v875_v6 = vadd.f32 %v772_v44, %v585_v33 }
  0xf6   : > { %v1804_v10 = vpack.c.bf16 %v1300_v21, %v1300_v21  ;;  %v874_v38 = vadd.f32 %v773_v8, %v584_v7 }
  0xf7   : > { %v1063_v46 = vadd.f32 %v960_v48, %v875_v6 }
  0xf8   : > { %1608 = vst.msk [vmem:[%s2023_s17 + $0xc0] sm:$0xf] %vm1524_vm5, %v1804_v10  ;;  %v1062_v52 = vadd.f32 %v961_v4, %v874_v38 }
  0xf9   : > { %v1302_v60 = vadd.f32 %v1199_v20, %v1063_v46 }
  0xfa   : > { %v1301_v24 = vadd.f32 %v1200_v54, %v1062_v52 }
  0xfb   : > { %v1806_v15 = vpack.c.bf16 %v1302_v60, %v1302_v60 }
  0xfc   : > { %v1805_v58 = vpack.c.bf16 %v1301_v24, %v1301_v24 }
  0xfd   : > { %v1611_v23 = vsel %vm2036_vm6, %v1806_v15, %v1610_v59 }
  0xfe   : > { %1609 = vst.msk [vmem:[%s2023_s17 + $0xc4] sm:$0xf] %vm1524_vm5, %v1805_v58  ;;  %1612 = vst [vmem:[%s2023_s17 + $0xc8] sm:$0x1] %v1611_v23 }
  0xff PF: > { %s11_s8 = sadd.s32 1, %s1904_s8   ;;  %s2800_s6 = smov %s1900_s7 }
 0x100   : > { %p8_p5 = scmp.ge.s32.totalorder %s11_s8, 4   ;;  %s2801_s7 = smov %s2803_s9 }
 0x102   :  { %10 = sbr.rel (!%p8_p5) target bundleno = 2 (0x2), region = 54 }

// kernel: res_block_forward.9
= control target key start
LH: loop header
LB: loop body
LE: loop exit
PB: predicated region body
PF: predicated region fallthrough
CT: control target
= control target key end

     0   :  { %s855_s1 = inlined_call_operand.vmem [shape: bf16[128,128], index: 1, kind: input, shape index: {}]   ;;  %s856_s0 = inlined_call_operand.vmem [shape: bf16[128,128], index: 0, kind: input, shape index: {}]   ;;  %s857_s3 = inlined_call_operand.vmem [shape: bf16[128,128], index: 3, kind: input, shape index: {}]   ;;  %s858_s2 = inlined_call_operand.vmem [shape: f32[1,128], index: 2, kind: input, shape index: {}]   ;;  %s859_s4 = inlined_call_operand.vmem [shape: f32[128,128], index: 4, kind: output, shape index: {}]  }
   0x1   :  { %v621_v0 = vld [vmem:[%s855_s1] sm:$0xff]   ;;  %v622_v1 = vld [vmem:[%s855_s1 + $0x8] sm:$0xff]   ;;  %v623_v2 = vld [vmem:[%s855_s1 + $0x10] sm:$0xff]  }
   0x2   :  { %573 = vmatprep.subr.bf16.mxu0 %v621_v0  ;;  %605 = vmatprep.subr.bf16.mxu1 %v621_v0  ;;  %v624_v3 = vld [vmem:[%s855_s1 + $0x18] sm:$0xff]   ;;  %v629_v4 = vld [vmem:[%s856_s0] sm:$0xff]   ;;  %v626_v7 = vld [vmem:[%s855_s1 + $0x28] sm:$0xff]  }
   0x3   :  { %574 = vmatpush3.bf16.msra.mxu0 %v621_v0  ;;  %613 = vmatpush3.bf16.msra.mxu1 %v621_v0  ;;  %v630_v5 = vld [vmem:[%s856_s0 + $0x20] sm:$0xff]   ;;  %v627_v8 = vld [vmem:[%s855_s1 + $0x30] sm:$0xff]   ;;  %v628_v9 = vld [vmem:[%s855_s1 + $0x38] sm:$0xff]  }
   0x4   :  { %575 = vmatprep.subr.bf16.mxu0 %v622_v1  ;;  %606 = vmatprep.subr.bf16.mxu1 %v622_v1  ;;  %v625_v6 = vld [vmem:[%s855_s1 + $0x20] sm:$0xff]   ;;  %v631_v10 = vld [vmem:[%s856_s0 + $0x8] sm:$0xff]   ;;  %v633_v12 = vld [vmem:[%s856_s0 + $0x10] sm:$0xff]  }
   0x5   :  { %589 = vmatprep.mubr.bf16.mxu0 %v629_v4  ;;  %597 = vmatprep.mubr.bf16.mxu1 %v630_v5  ;;  %v632_v11 = vld [vmem:[%s856_s0 + $0x28] sm:$0xff]   ;;  %v634_v13 = vld [vmem:[%s856_s0 + $0x30] sm:$0xff]   ;;  %v635_v14 = vld [vmem:[%s856_s0 + $0x18] sm:$0xff]  }
   0x6   :  { %v636_v15 = vld [vmem:[%s856_s0 + $0x38] sm:$0xff]   ;;  %v713_v16 = vld [vmem:[%s857_s3 + $0x8] sm:$0xff]   ;;  %v723_v18 = vld [vmem:[%s857_s3] sm:$0xff]  }
   0x7   :  { %576 = vmatpush3.bf16.msra.mxu0 %v622_v1  ;;  %614 = vmatpush3.bf16.msra.mxu1 %v622_v1  ;;  %v718_v17 = vld [vmem:[%s857_s3 + $0x28] sm:$0xff]   ;;  %v728_v19 = vld [vmem:[%s857_s3 + $0x20] sm:$0xff]   ;;  %v733_v20 = vld [vmem:[%s857_s3 + $0x18] sm:$0xff]   ;;  %v524_v22 = vunpack.c.l.bf16 %v713_v16  ;;  %v520_v26 = vunpack.c.l.bf16 %v723_v18  ;;  %v525_v28 = vunpack.c.h.bf16 %v713_v16  ;;  %v521_v33 = vunpack.c.h.bf16 %v723_v18 }
   0x8   :  { %577 = vmatprep.subr.bf16.mxu0 %v623_v2  ;;  %607 = vmatprep.subr.bf16.mxu1 %v623_v2  ;;  %v738_v21 = vld [vmem:[%s858_s2] ss:$0 sm:$0xff]  ;;  %v744_v23 = vld [vmem:[%s857_s3 + $0x38] sm:$0xff]   ;;  %v749_v24 = vld [vmem:[%s857_s3 + $0x10] sm:$0xff]   ;;  %v540_v25 = vunpack.c.l.bf16 %v718_v17  ;;  %v536_v27 = vunpack.c.l.bf16 %v728_v19  ;;  %v541_v32 = vunpack.c.h.bf16 %v718_v17  ;;  %v537_v34 = vunpack.c.h.bf16 %v728_v19 }
   0x9   :  { %v758_v29 = vld [vmem:[%s857_s3 + $0x30] sm:$0xff]   ;;  %v532_v35 = vunpack.c.l.bf16 %v733_v20  ;;  %v548_v40 = vunpack.c.l.bf16 %v744_v23  ;;  %v528_v41 = vunpack.c.l.bf16 %v749_v24  ;;  %v533_v47 = vunpack.c.h.bf16 %v733_v20 }
   0xa   :  { %v544_v46 = vunpack.c.l.bf16 %v758_v29 }
   0xb   :  { %578 = vmatpush3.bf16.msra.mxu0 %v623_v2  ;;  %615 = vmatpush3.bf16.msra.mxu1 %v623_v2 }
   0xc   :  { %579 = vmatprep.subr.bf16.mxu0 %v624_v3  ;;  %608 = vmatprep.subr.bf16.mxu1 %v624_v3 }
   0xf   :  { %580 = vmatpush3.bf16.msra.mxu0 %v624_v3  ;;  %616 = vmatpush3.bf16.msra.mxu1 %v624_v3 }
  0x10   :  { %581 = vmatprep.subr.bf16.mxu0 %v625_v6  ;;  %609 = vmatprep.subr.bf16.mxu1 %v625_v6 }
  0x13   :  { %582 = vmatpush3.bf16.msra.mxu0 %v625_v6  ;;  %617 = vmatpush3.bf16.msra.mxu1 %v625_v6 }
  0x14   :  { %583 = vmatprep.subr.bf16.mxu0 %v626_v7  ;;  %610 = vmatprep.subr.bf16.mxu1 %v626_v7 }
  0x17   :  { %584 = vmatpush3.bf16.msra.mxu0 %v626_v7  ;;  %618 = vmatpush3.bf16.msra.mxu1 %v626_v7 }
  0x18   :  { %585 = vmatprep.subr.bf16.mxu0 %v627_v8  ;;  %611 = vmatprep.subr.bf16.mxu1 %v627_v8 }
  0x1b   :  { %586 = vmatpush3.bf16.msra.mxu0 %v627_v8  ;;  %619 = vmatpush3.bf16.msra.mxu1 %v627_v8 }
  0x1c   :  { %587 = vmatprep.subr.bf16.mxu0 %v628_v9  ;;  %612 = vmatprep.subr.bf16.mxu1 %v628_v9 }
  0x1f   :  { %588 = vmatpush3.bf16.msra.mxu0 %v628_v9  ;;  %620 = vmatpush3.bf16.msra.mxu1 %v628_v9 }
  0x22   :  { %590 = vmatmul.mubr.bf16.vlgmr.msra.gmra.mrb[0].mxu0 %v631_v10  ;;  %598 = vmatmul.mubr.bf16.vlgmr.msra.gmra.mrb[0].mxu1 %v632_v11 }
  0x23   :  { %593 = vmatprep.mubr.bf16.mxu0 %v633_v12  ;;  %601 = vmatprep.mubr.bf16.mxu1 %v634_v13 }
  0x2a   :  { %594 = vmatmul.mubr.bf16.gmra.mrb[4].mxu0 %v635_v14  ;;  %602 = vmatmul.mubr.bf16.gmra.mrb[4].mxu1 %v636_v15 }
  0xf5   :  { %v591_v30 = vpop.f32.mrb[0].mxu0  ;;  %v599_v31 = vpop.f32.mrb[0].mxu1 }
  0xf6   :  { %v339_v36 = vadd.f32 %v591_v30, %v738_v21  ;;  %v347_v37 = vadd.f32 %v599_v31, %v738_v21  ;;  %v216_v38 = vpop.f32.mrb[1].mxu0  ;;  %v248_v39 = vpop.f32.mrb[1].mxu1 }
  0xf7   :  { %v337_v42 = vadd.f32 %v738_v21, %v216_v38  ;;  %v345_v43 = vadd.f32 %v738_v21, %v248_v39  ;;  %v592_v44 = vpop.f32.mrb[2].mxu0  ;;  %v600_v45 = vpop.f32.mrb[2].mxu1 }
  0xf8   :  { %vm355_vm0 = vcmp.ge.f32.partialorder %v339_v36, 0.0  ;;  %v371_v48 = vmul.f32 0.2, %v339_v36  ;;  %vm363_vm1 = vcmp.ge.f32.partialorder %v347_v37, 0.0  ;;  %v379_v49 = vmul.f32 0.2, %v347_v37 }
  0xf9   :  { %vm353_vm2 = vcmp.ge.f32.partialorder %v337_v42, 0.0  ;;  %v369_v50 = vmul.f32 0.2, %v337_v42  ;;  %vm361_vm3 = vcmp.ge.f32.partialorder %v345_v43, 0.0  ;;  %v377_v51 = vmul.f32 0.2, %v345_v43 }
  0xfa   :  { %v387_v52 = vsel %vm355_vm0, %v339_v36, %v371_v48  ;;  %v395_v53 = vsel %vm363_vm1, %v347_v37, %v379_v49  ;;  %v340_v54 = vadd.f32 %v592_v44, %v738_v21  ;;  %v348_v55 = vadd.f32 %v600_v45, %v738_v21  ;;  %v219_v56 = vpop.f32.mrb[3].mxu0  ;;  %v251_v57 = vpop.f32.mrb[3].mxu1 }
  0xfb   :  { %v403_v58 = vmul.f32 1.4142135, %v387_v52  ;;  %v411_v59 = vmul.f32 1.4142135, %v395_v53  ;;  %v385_v60 = vsel %vm353_vm2, %v337_v42, %v369_v50  ;;  %v393_v61 = vsel %vm361_vm3, %v345_v43, %v377_v51 }
  0xfc   :  { %v401_v62 = vmul.f32 1.4142135, %v385_v60  ;;  %v409_v63 = vmul.f32 1.4142135, %v393_v61  ;;  %vm356_vm4 = vcmp.ge.f32.partialorder %v340_v54, 0.0  ;;  %vm364_vm5 = vcmp.ge.f32.partialorder %v348_v55, 0.0 }
  0xfd   :  { %v451_v0 = vadd.f32 %v524_v22, %v403_v58  ;;  %v459_v1 = vadd.f32 %v540_v25, %v411_v59  ;;  %v372_v2 = vmul.f32 0.2, %v340_v54  ;;  %v380_v3 = vmul.f32 0.2, %v348_v55  ;;  %v595_v4 = vpop.f32.mrb[4].mxu0  ;;  %v603_v5 = vpop.f32.mrb[4].mxu1 }
  0xfe   :  { %v449_v6 = vadd.f32 %v520_v26, %v401_v62  ;;  %v457_v7 = vadd.f32 %v536_v27, %v409_v63  ;;  %v338_v8 = vadd.f32 %v738_v21, %v219_v56  ;;  %v346_v9 = vadd.f32 %v738_v21, %v251_v57  ;;  %v232_v10 = vpop.f32.mrb[5].mxu0  ;;  %v264_v11 = vpop.f32.mrb[5].mxu1 }
  0xff   :  { %v467_v12 = vmul.f32 0.70710677, %v451_v0  ;;  %v475_v13 = vmul.f32 0.70710677, %v459_v1  ;;  %v388_v14 = vsel %vm356_vm4, %v340_v54, %v372_v2  ;;  %v396_v15 = vsel %vm364_vm5, %v348_v55, %v380_v3  ;;  %v596_v22 = vpop.f32.mrb[6].mxu0  ;;  %v604_v25 = vpop.f32.mrb[6].mxu1 }
 0x100   :  { %v465_v30 = vmul.f32 0.70710677, %v449_v6  ;;  %v473_v31 = vmul.f32 0.70710677, %v457_v7  ;;  %v404_v36 = vmul.f32 1.4142135, %v388_v14  ;;  %v343_v26 = vadd.f32 %v595_v4, %v738_v21 }
 0x101   :  { %483 = vst [vmem:[%s859_s4 + $0x10] sm:$0xff] %v467_v12  ;;  %491 = vst [vmem:[%s859_s4 + $0x50] sm:$0xff] %v475_v13  ;;  %v412_v27 = vmul.f32 1.4142135, %v396_v15  ;;  %vm354_vm6 = vcmp.ge.f32.partialorder %v338_v8, 0.0  ;;  %vm362_vm7 = vcmp.ge.f32.partialorder %v346_v9, 0.0  ;;  %v351_v48 = vadd.f32 %v603_v5, %v738_v21 }
 0x102   :  { %v370_v37 = vmul.f32 0.2, %v338_v8  ;;  %481 = vst [vmem:[%s859_s4] sm:$0xff] %v465_v30  ;;  %489 = vst [vmem:[%s859_s4 + $0x40] sm:$0xff] %v473_v31  ;;  %v452_v38 = vadd.f32 %v525_v28, %v404_v36  ;;  %v378_v39 = vmul.f32 0.2, %v346_v9  ;;  %vm359_vm8 = vcmp.ge.f32.partialorder %v343_v26, 0.0 }
 0x103   :  { %v375_v42 = vmul.f32 0.2, %v343_v26  ;;  %v235_v43 = vpop.f32.mrb[7].mxu0  ;;  %v460_v44 = vadd.f32 %v541_v32, %v412_v27  ;;  %v341_v49 = vadd.f32 %v738_v21, %v232_v10  ;;  %v267_v50 = vpop.f32.mrb[7].mxu1  ;;  %v349_v56 = vadd.f32 %v738_v21, %v264_v11 }
 0x104   :  { %v386_v45 = vsel %vm354_vm6, %v338_v8, %v370_v37  ;;  %v468_v51 = vmul.f32 0.70710677, %v452_v38  ;;  %v394_v53 = vsel %vm362_vm7, %v346_v9, %v378_v39  ;;  %vm367_vm9 = vcmp.ge.f32.partialorder %v351_v48, 0.0 }
 0x105   :  { %v402_v52 = vmul.f32 1.4142135, %v386_v45  ;;  %v391_v54 = vsel %vm359_vm8, %v343_v26, %v375_v42  ;;  %v476_v55 = vmul.f32 0.70710677, %v460_v44  ;;  %v410_v16 = vmul.f32 1.4142135, %v394_v53 }
 0x106   :  { %v407_v28 = vmul.f32 1.4142135, %v391_v54  ;;  %484 = vst [vmem:[%s859_s4 + $0x18] sm:$0xff] %v468_v51  ;;  %v383_v32 = vmul.f32 0.2, %v351_v48  ;;  %vm357_vm10 = vcmp.ge.f32.partialorder %v341_v49, 0.0  ;;  %v344_v18 = vadd.f32 %v596_v22, %v738_v21 }
 0x107   :  { %v450_v17 = vadd.f32 %v521_v33, %v402_v52  ;;  %492 = vst [vmem:[%s859_s4 + $0x58] sm:$0xff] %v476_v55  ;;  %v458_v57 = vadd.f32 %v537_v34, %v410_v16  ;;  %v373_v59 = vmul.f32 0.2, %v341_v49  ;;  %vm365_vm11 = vcmp.ge.f32.partialorder %v349_v56, 0.0 }
 0x108   :  { %v455_v58 = vadd.f32 %v532_v35, %v407_v28  ;;  %v399_v61 = vsel %vm367_vm9, %v351_v48, %v383_v32  ;;  %v381_v62 = vmul.f32 0.2, %v349_v56  ;;  %vm360_vm12 = vcmp.ge.f32.partialorder %v344_v18, 0.0 }
 0x109   :  { %v466_v60 = vmul.f32 0.70710677, %v450_v17  ;;  %v474_v33 = vmul.f32 0.70710677, %v458_v57  ;;  %v415_v0 = vmul.f32 1.4142135, %v399_v61  ;;  %v389_v1 = vsel %vm357_vm10, %v341_v49, %v373_v59 }
 0x10a   :  { %v471_v63 = vmul.f32 0.70710677, %v455_v58  ;;  %v405_v19 = vmul.f32 1.4142135, %v389_v1  ;;  %v397_v34 = vsel %vm365_vm11, %v349_v56, %v381_v62  ;;  %v376_v2 = vmul.f32 0.2, %v344_v18 }
 0x10b   :  { %482 = vst [vmem:[%s859_s4 + $0x8] sm:$0xff] %v466_v60  ;;  %490 = vst [vmem:[%s859_s4 + $0x48] sm:$0xff] %v474_v33  ;;  %v463_v35 = vadd.f32 %v548_v40, %v415_v0  ;;  %v413_v3 = vmul.f32 1.4142135, %v397_v34  ;;  %v352_v4 = vadd.f32 %v604_v25, %v738_v21  ;;  %v342_v5 = vadd.f32 %v738_v21, %v235_v43 }
 0x10c   :  { %487 = vst [vmem:[%s859_s4 + $0x30] sm:$0xff] %v471_v63  ;;  %v453_v6 = vadd.f32 %v528_v41, %v405_v19  ;;  %v392_v7 = vsel %vm360_vm12, %v344_v18, %v376_v2  ;;  %v549_v8 = vunpack.c.h.bf16 %v744_v23  ;;  %v350_v9 = vadd.f32 %v738_v21, %v267_v50 }
 0x10d   :  { %v479_v10 = vmul.f32 0.70710677, %v463_v35  ;;  %v461_v11 = vadd.f32 %v544_v46, %v413_v3  ;;  %v408_v12 = vmul.f32 1.4142135, %v392_v7  ;;  %vm368_vm13 = vcmp.ge.f32.partialorder %v352_v4, 0.0 }
 0x10e   :  { %v469_v40 = vmul.f32 0.70710677, %v453_v6  ;;  %v384_v13 = vmul.f32 0.2, %v352_v4  ;;  %vm358_vm14 = vcmp.ge.f32.partialorder %v342_v5, 0.0  ;;  %vm366_vm15 = vcmp.ge.f32.partialorder %v350_v9, 0.0 }
 0x10f   :  { %495 = vst [vmem:[%s859_s4 + $0x70] sm:$0xff] %v479_v10  ;;  %v477_v41 = vmul.f32 0.70710677, %v461_v11  ;;  %v456_v23 = vadd.f32 %v533_v47, %v408_v12  ;;  %v374_v14 = vmul.f32 0.2, %v342_v5  ;;  %v529_v15 = vunpack.c.h.bf16 %v749_v24 }
 0x110   :  { %v382_v21 = vmul.f32 0.2, %v350_v9  ;;  %485 = vst [vmem:[%s859_s4 + $0x20] sm:$0xff] %v469_v40  ;;  %v400_v46 = vsel %vm368_vm13, %v352_v4, %v384_v13  ;;  %v545_v22 = vunpack.c.h.bf16 %v758_v29 }
 0x111   :  { %493 = vst [vmem:[%s859_s4 + $0x60] sm:$0xff] %v477_v41  ;;  %v472_v25 = vmul.f32 0.70710677, %v456_v23  ;;  %v416_v30 = vmul.f32 1.4142135, %v400_v46  ;;  %v390_v31 = vsel %vm358_vm14, %v342_v5, %v374_v14 }
 0x112   :  { %v398_v20 = vsel %vm366_vm15, %v350_v9, %v382_v21  ;;  %v406_v47 = vmul.f32 1.4142135, %v390_v31 }
 0x113   :  { %v414_v36 = vmul.f32 1.4142135, %v398_v20  ;;  %488 = vst [vmem:[%s859_s4 + $0x38] sm:$0xff] %v472_v25  ;;  %v464_v26 = vadd.f32 %v549_v8, %v416_v30 }
 0x114   :  { %v454_v27 = vadd.f32 %v529_v15, %v406_v47 }
 0x115   :  { %v462_v37 = vadd.f32 %v545_v22, %v414_v36  ;;  %v480_v24 = vmul.f32 0.70710677, %v464_v26 }
 0x116   :  { %v470_v38 = vmul.f32 0.70710677, %v454_v27 }
 0x117   :  { %v478_v29 = vmul.f32 0.70710677, %v462_v37  ;;  %496 = vst [vmem:[%s859_s4 + $0x78] sm:$0xff] %v480_v24 }
 0x118   :  { %486 = vst [vmem:[%s859_s4 + $0x28] sm:$0xff] %v470_v38 }
 0x119   :  { %494 = vst [vmem:[%s859_s4 + $0x68] sm:$0xff] %v478_v29 }

</bundles_post_ra>
